<compile_context>
chip_gen: v7x
topology: tpu7x:2x2x1
jax: 0.10.0
libtpu: 0.0.40
codegen_flags: <defaults>
</compile_context>

<pallas_src>
import functools

import jax
import jax.numpy as jnp
from jax.experimental import pallas as pl
from jax.experimental.pallas import tpu as pltpu


_TARGET_BLOCK_BYTES = 2 * 1024 * 1024  # ~2 MiB per input block (~6 MiB double-buffered in+out)


def _round_up(x: int, m: int) -> int:
    return (x + m - 1) // m * m


def _sublane(dtype) -> int:
    # 32-bit dtypes: 8 rows per vreg; bf16/f16: 16; int8/fp8: 32 (sublane packing).
    return 8 * max(1, 4 // jnp.dtype(dtype).itemsize)


def _tensorcores_per_chip() -> int:
    try:
        kind = jax.devices()[0].device_kind.lower()
    except Exception:
        return 1
    # Chips where one program drives 2 TensorCores (megacore / v7x).
    return 2 if any(t in kind for t in ("v7", "v4", "v5p", "v5 p")) else 1


def _sigmoid_mul_kernel(gate_ref, x_ref, o_ref, *, tm: int, sublane: int):
    # gate_ref: (grid*tm, 1)  -- grid-invariant, resident across all steps
    # x_ref / o_ref: (tm, HW) -- per-step tiles
    start = pl.multiple_of(pl.program_id(0) * tm, sublane)
    gate = gate_ref[pl.ds(start, tm), :].astype(jnp.float32)
    gate = jax.nn.sigmoid(gate)                                   # EUP sigmoid, f32
    o_ref[...] = (x_ref[...].astype(jnp.float32) * gate).astype(o_ref.dtype)


def sigmoid_mul(x421: jax.Array, x417: jax.Array) -> jax.Array:
    """x417 * sigmoid(x421): (N,C,1,1) gate broadcast onto (N,C,H,W) features."""
    n, c, h, w = x417.shape
    assert x421.shape == (n, c, 1, 1), (x421.shape, x417.shape)
    nc, hw = n * c, h * w
    itemsize = jnp.dtype(x417.dtype).itemsize
    sublane = _sublane(x417.dtype)

    # ---- choose row tile -----------------------------------------------------
    total_bytes = nc * hw * itemsize
    steps = max(_tensorcores_per_chip(), pl.cdiv(total_bytes, _TARGET_BLOCK_BYTES))
    steps = min(steps, pl.cdiv(nc, sublane))            # at least one sublane group / block
    tm = _round_up(pl.cdiv(nc, steps), sublane)         # divides NC exactly for the SE shape
    grid_steps = pl.cdiv(nc, tm)

    # ---- transpose-free 2-D views ---------------------------------------------
    x2d = x417.reshape(nc, hw)                          # rows = N*C (sublanes), cols = H*W (lanes)
    g2d = x421.reshape(nc, 1)
    nc_pad = tm * grid_steps                            # keep the per-step gate slice in bounds
    if nc_pad > nc:
        g2d = jnp.pad(g2d, ((0, nc_pad - nc), (0, 0)))

    kernel = functools.partial(_sigmoid_mul_kernel, tm=tm, sublane=sublane)

    out2d = pl.pallas_call(
        kernel,
        out_shape=jax.ShapeDtypeStruct((nc, hw), x417.dtype),
        grid=(grid_steps,),
        in_specs=[
            # Gate: one grid-invariant block, DMA'd once and kept resident.
            pl.BlockSpec((nc_pad, 1), lambda i: (0, 0)),
            # Feature map: one (tm, hw) tile per grid step.
            pl.BlockSpec((tm, hw), lambda i: (i, 0)),
        ],
        out_specs=pl.BlockSpec((tm, hw), lambda i: (i, 0)),
        compiler_params=pltpu.CompilerParams(
            dimension_semantics=("parallel",),          # shard row tiles across TCs (v7x / megacore)
        ),
        cost_estimate=pl.CostEstimate(
            flops=nc * hw,
            transcendentals=nc,
            bytes_accessed=(2 * nc * hw + nc) * itemsize,
        ),
    )(g2d, x2d)

    return out2d.reshape(n, c, h, w)


if __name__ == "__main__":
    key = jax.random.PRNGKey(0)
    k1, k2 = jax.random.split(key)

    # Module spec shape: x417 [1,1824,7,7], x421 [1,1824,1,1]  (~357 KB, small).
    N, C, H, W = 1, 1824, 7, 7
    x417 = jax.random.normal(k1, (N, C, H, W), dtype=jnp.float32)
    x421 = jax.random.normal(k2, (N, C, 1, 1), dtype=jnp.float32)

    ref = x417 * jax.nn.sigmoid(x421)
    out = jax.block_until_ready(jax.jit(sigmoid_mul)(x421, x417))
    assert out.shape == (N, C, H, W)
    assert jnp.allclose(out, ref, atol=1e-6, rtol=1e-6)

    # Extra coverage: odd shape (NC not a multiple of 8) exercising tail masking
    # and the padded grid-invariant gate slice.
    k3, k4 = jax.random.split(k1)
    a = jax.random.normal(k3, (2, 19, 5, 5), dtype=jnp.float32)
    g = jax.random.normal(k4, (2, 19, 1, 1), dtype=jnp.float32)
    ref2 = a * jax.nn.sigmoid(g)
    out2 = jax.block_until_ready(jax.jit(sigmoid_mul)(g, a))
    assert jnp.allclose(out2, ref2, atol=1e-6, rtol=1e-6)

    print("KERNEL_OK")
</pallas_src>

<mosaic_0001>
module attributes {stable_mosaic.version = 11 : i64} {
  func.func @_sigmoid_mul_kernel(%arg0: i32, %arg1: memref<1824x1xf32, #tpu.memory_space<vmem>>, %arg2: memref<1824x49xf32, #tpu.memory_space<vmem>>, %arg3: memref<1824x49xf32, #tpu.memory_space<vmem>>) attributes {dimension_semantics = [#tpu.dimension_semantics<parallel>], iteration_bounds = array<i64: 1>, scalar_prefetch = 0 : i64, scratch_operands = 0 : i64, tpu.core_type = #tpu.core_type<tc>, window_params = [{pipeline_mode = #tpu.pipeline_mode<synchronous>, transform_indices = @transform_0, window_bounds = array<i64: 1824, 1>}, {transform_indices = @transform_1, window_bounds = array<i64: 1824, 49>}, {transform_indices = @transform_2, window_bounds = array<i64: 1824, 49>}]} {
    %c1824_i32 = arith.constant 1824 : i32
    %0 = arith.muli %arg0, %c1824_i32 : i32
    %1 = tpu.assume_multiple %0, 8 : i32
    %2 = arith.index_cast %1 : i32 to index
    %c0 = arith.constant 0 : index
    %3 = vector.load %arg1[%2, %c0] : memref<1824x1xf32, #tpu.memory_space<vmem>>, vector<1824x1xf32>
    %4 = arith.negf %3 : vector<1824x1xf32>
    %5 = math.exp %4 : vector<1824x1xf32>
    %cst = arith.constant 1.000000e+00 : f32
    %6 = vector.broadcast %cst : f32 to vector<1824x1xf32>
    %7 = arith.addf %6, %5 : vector<1824x1xf32>
    %8 = arith.divf %6, %7 : vector<1824x1xf32>
    %c0_0 = arith.constant 0 : index
    %c0_1 = arith.constant 0 : index
    %9 = vector.load %arg2[%c0_0, %c0_1] : memref<1824x49xf32, #tpu.memory_space<vmem>>, vector<1824x49xf32>
    %10 = vector.broadcast %8 : vector<1824x1xf32> to vector<1824x49xf32>
    %11 = arith.mulf %9, %10 : vector<1824x49xf32>
    %c0_2 = arith.constant 0 : index
    %c0_3 = arith.constant 0 : index
    %12 = vector.load %arg3[%c0_2, %c0_3] : memref<1824x49xf32, #tpu.memory_space<vmem>>, vector<1824x49xf32>
    tpu.vector_store %arg3[%c0_2, %c0_3], %11 {strides = array<i32>} : memref<1824x49xf32, #tpu.memory_space<vmem>>, vector<1824x49xf32>,
    return
  }
  func.func @transform_0(%arg0: i32) -> (i32, i32) {
    %c0_i32 = arith.constant 0 : i32
    %c0_i32_0 = arith.constant 0 : i32
    %c0_i32_1 = arith.constant 0 : i32
    return %c0_i32, %c0_i32_0 : i32, i32
  }
  func.func @transform_1(%arg0: i32) -> (i32, i32) {
    %c0_i32 = arith.constant 0 : i32
    %c0_i32_0 = arith.constant 0 : i32
    return %arg0, %c0_i32 : i32, i32
  }
  func.func @transform_2(%arg0: i32) -> (i32, i32) {
    %c0_i32 = arith.constant 0 : i32
    %c0_i32_0 = arith.constant 0 : i32
    return %arg0, %c0_i32 : i32, i32
  }
}

</mosaic_0001>

<bundles_post_ra>
// kernel: sigmoid_mul.1
= control target key start
LH: loop header
LB: loop body
LE: loop exit
PB: predicated region body
PF: predicated region fallthrough
CT: control target
= control target key end

     0   :  { %v4581_v0 = vmov 0   ;;  %vm3205_vm0 = vcmask 400384   ;;  %s6943_s0 = inlined_call_operand.vmem [shape: f32[1824,1], index: 0, kind: input, shape index: {}]   ;;  %s6944_s1 = inlined_call_operand.vmem [shape: f32[1824,49], index: 1, kind: input, shape index: {}]   ;;  %s6945_s2 = inlined_call_operand.vmem [shape: f32[1824,49], index: 2, kind: output, shape index: {}]  }
   0x1   :  { %3668 = vset.pattern.permute.xlu1 %v4581_v0  ;;  %3667 = vset.pattern.permute.xlu0 %v4581_v0  ;;  %v15_v1 = vld [vmem:[%s6943_s0 + $0x10] sm:$0xff]  ;;  %v13_v2 = vld [vmem:[%s6943_s0] sm:$0xff]  ;;  %v16_v3 = vld [vmem:[%s6943_s0 + $0x18] sm:$0xff] }
   0x2   :  { %v3440_v4 = vmul.f32 -1.442695, %v15_v1  ;;  %v3438_v5 = vmul.f32 -1.442695, %v13_v2  ;;  %v3441_v6 = vmul.f32 -1.442695, %v16_v3 }
   0x3   :  { %v14_v7 = vld [vmem:[%s6943_s0 + $0x8] sm:$0xff]  ;;  %v17_v9 = vld [vmem:[%s6943_s0 + $0x20] sm:$0xff]  ;;  %v20_v13 = vld [vmem:[%s6943_s0 + $0x38] sm:$0xff] }
   0x4   :  { %v18_v8 = vld [vmem:[%s6943_s0 + $0x28] sm:$0xff]  ;;  %3669 = vpow2.f32 %v3440_v4  ;;  %v3439_v10 = vmul.f32 -1.442695, %v14_v7  ;;  %v3442_v12 = vmul.f32 -1.442695, %v17_v9  ;;  %v19_v14 = vld [vmem:[%s6943_s0 + $0x30] sm:$0xff] }
   0x5   :  { %v3443_v11 = vmul.f32 -1.442695, %v18_v8  ;;  %3671 = vpow2.f32 %v3438_v5  ;;  %v22_v15 = vld [vmem:[%s6943_s0 + $0x48] sm:$0xff]  ;;  %v3445_v16 = vmul.f32 -1.442695, %v20_v13  ;;  %v21_v18 = vld [vmem:[%s6943_s0 + $0x40] sm:$0xff] }
   0x6   :  { %3673 = vpow2.f32 %v3441_v6  ;;  %v3444_v17 = vmul.f32 -1.442695, %v19_v14  ;;  %v24_v19 = vld [vmem:[%s6943_s0 + $0x58] sm:$0xff]  ;;  %v3447_v20 = vmul.f32 -1.442695, %v22_v15  ;;  %v23_v21 = vld [vmem:[%s6943_s0 + $0x50] sm:$0xff] }
   0x7   :  { %3675 = vpow2.f32 %v3439_v10  ;;  %v3446_v22 = vmul.f32 -1.442695, %v21_v18  ;;  %v26_v23 = vld [vmem:[%s6943_s0 + $0x68] sm:$0xff]  ;;  %v3449_v24 = vmul.f32 -1.442695, %v24_v19  ;;  %v25_v46 = vld [vmem:[%s6943_s0 + $0x60] sm:$0xff] }
   0x8   :  { %3677 = vpow2.f32 %v3443_v11  ;;  %v3448_v25 = vmul.f32 -1.442695, %v23_v21  ;;  %v3451_v26 = vmul.f32 -1.442695, %v26_v23  ;;  %v28_v49 = vld [vmem:[%s6943_s0 + $0x78] sm:$0xff]  ;;  %v27_v52 = vld [vmem:[%s6943_s0 + $0x70] sm:$0xff] }
   0x9   :  { %3679 = vpow2.f32 %v3442_v12  ;;  %v3450_v55 = vmul.f32 -1.442695, %v25_v46  ;;  %v30_v56 = vld [vmem:[%s6943_s0 + $0x88] sm:$0xff]  ;;  %v3453_v59 = vmul.f32 -1.442695, %v28_v49  ;;  %v29_v60 = vld [vmem:[%s6943_s0 + $0x80] sm:$0xff] }
   0xa   :  { %3681 = vpow2.f32 %v3445_v16  ;;  %v3452_v62 = vmul.f32 -1.442695, %v27_v52  ;;  %v32_v63 = vld [vmem:[%s6943_s0 + $0x98] sm:$0xff]  ;;  %v3455_v1 = vmul.f32 -1.442695, %v30_v56  ;;  %v31_v2 = vld [vmem:[%s6943_s0 + $0x90] sm:$0xff] }
   0xb   :  { %3683 = vpow2.f32 %v3444_v17  ;;  %v3454_v4 = vmul.f32 -1.442695, %v29_v60  ;;  %v34_v5 = vld [vmem:[%s6943_s0 + $0xa8] sm:$0xff]  ;;  %v3457_v7 = vmul.f32 -1.442695, %v32_v63  ;;  %v33_v8 = vld [vmem:[%s6943_s0 + $0xa0] sm:$0xff] }
   0xc   :  { %3685 = vpow2.f32 %v3447_v20  ;;  %v3456_v10 = vmul.f32 -1.442695, %v31_v2  ;;  %v36_v11 = vld [vmem:[%s6943_s0 + $0xb8] sm:$0xff]  ;;  %v3459_v13 = vmul.f32 -1.442695, %v34_v5  ;;  %v35_v14 = vld [vmem:[%s6943_s0 + $0xb0] sm:$0xff] }
   0xd   :  { %3687 = vpow2.f32 %v3446_v22  ;;  %v3458_v16 = vmul.f32 -1.442695, %v33_v8  ;;  %v38_v17 = vld [vmem:[%s6943_s0 + $0xc8] sm:$0xff]  ;;  %v3461_v19 = vmul.f32 -1.442695, %v36_v11  ;;  %v37_v20 = vld [vmem:[%s6943_s0 + $0xc0] sm:$0xff] }
   0xe   :  { %v3670_v27 = vpop.eup %3669  ;;  %3689 = vpow2.f32 %v3449_v24  ;;  %v3460_v22 = vmul.f32 -1.442695, %v35_v14  ;;  %v3463_v24 = vmul.f32 -1.442695, %v38_v17 }
   0xf   :  { %v3672_v28 = vpop.eup %3671  ;;  %v927_v29 = vadd.f32 1.0, %v3670_v27  ;;  %3691 = vpow2.f32 %v3448_v25 }
  0x10   :  { %v3674_v30 = vpop.eup %3673  ;;  %v925_v31 = vadd.f32 1.0, %v3672_v28  ;;  %3693 = vpow2.f32 %v3451_v26  ;;  %v3462_v26 = vmul.f32 -1.442695, %v37_v20 }
  0x11   :  { %v3676_v32 = vpop.eup %3675  ;;  %3695 = vrcp.f32 %v927_v29  ;;  %v928_v33 = vadd.f32 1.0, %v3674_v30 }
  0x12   :  { %v3678_v34 = vpop.eup %3677  ;;  %3697 = vrcp.f32 %v925_v31  ;;  %v926_v35 = vadd.f32 1.0, %v3676_v32 }
  0x13   :  { %v3680_v36 = vpop.eup %3679  ;;  %3699 = vrcp.f32 %v928_v33  ;;  %v930_v37 = vadd.f32 1.0, %v3678_v34 }
  0x14   :  { %v3682_v38 = vpop.eup %3681  ;;  %3701 = vrcp.f32 %v926_v35  ;;  %v929_v39 = vadd.f32 1.0, %v3680_v36 }
  0x15   :  { %v3684_v40 = vpop.eup %3683  ;;  %3703 = vrcp.f32 %v930_v37  ;;  %v932_v41 = vadd.f32 1.0, %v3682_v38 }
  0x16   :  { %v3686_v42 = vpop.eup %3685  ;;  %3705 = vrcp.f32 %v929_v39  ;;  %v931_v43 = vadd.f32 1.0, %v3684_v40 }
  0x17   :  { %v3688_v44 = vpop.eup %3687  ;;  %3707 = vrcp.f32 %v932_v41  ;;  %v934_v45 = vadd.f32 1.0, %v3686_v42 }
  0x18   :  { %v3690_v47 = vpop.eup %3689  ;;  %3709 = vrcp.f32 %v931_v43  ;;  %v933_v48 = vadd.f32 1.0, %v3688_v44 }
  0x19   :  { %v3692_v50 = vpop.eup %3691  ;;  %3711 = vrcp.f32 %v934_v45  ;;  %v936_v51 = vadd.f32 1.0, %v3690_v47  ;;  %v40_v47 = vld [vmem:[%s6943_s0 + $0xd8] sm:$0xff] }
  0x1a   :  { %v3694_v53 = vpop.eup %3693  ;;  %3713 = vrcp.f32 %v933_v48  ;;  %v935_v54 = vadd.f32 1.0, %v3692_v50  ;;  %v39_v50 = vld [vmem:[%s6943_s0 + $0xd0] sm:$0xff]  ;;  %v3465_v56 = vmul.f32 -1.442695, %v40_v47 }
  0x1b   :  { %v3696_v57 = vpop.eup %3695  ;;  %3715 = vrcp.f32 %v936_v51  ;;  %v938_v58 = vadd.f32 1.0, %v3694_v53  ;;  %v42_v53 = vld [vmem:[%s6943_s0 + $0xe8] sm:$0xff]  ;;  %v3464_v60 = vmul.f32 -1.442695, %v39_v50 }
  0x1c   :  { %v3698_v61 = vpop.eup %3697  ;;  %1849 = vperm.xlu1 %3668, %v3696_v57   ;;  %3717 = vrcp.f32 %v935_v54  ;;  %v41_v57 = vld [vmem:[%s6943_s0 + $0xe0] sm:$0xff]  ;;  %v3467_v63 = vmul.f32 -1.442695, %v42_v53 }
  0x1d   :  { %v3700_v0 = vpop.eup %3699  ;;  %1839 = vperm.xlu0 %3667, %v3698_v61   ;;  %3719 = vrcp.f32 %v938_v58  ;;  %v44_v61 = vld [vmem:[%s6943_s0 + $0xf8] sm:$0xff]  ;;  %v3466_v2 = vmul.f32 -1.442695, %v41_v57 }
  0x1e   :  { %v3702_v3 = vpop.eup %3701  ;;  %3721 = vpow2.f32 %v3450_v55  ;;  %v3469_v5 = vmul.f32 -1.442695, %v44_v61 }
  0x1f   :  { %v3704_v6 = vpop.eup %3703  ;;  %3723 = vpow2.f32 %v3453_v59 }
  0x20   :  { %v3706_v9 = vpop.eup %3705  ;;  %1854 = vperm.xlu1 %3668, %v3700_v0   ;;  %3725 = vpow2.f32 %v3452_v62  ;;  %v43_v0 = vld [vmem:[%s6943_s0 + $0xf0] sm:$0xff] }
  0x21   :  { %v3708_v12 = vpop.eup %3707  ;;  %1844 = vperm.xlu0 %3667, %v3702_v3   ;;  %3727 = vpow2.f32 %v3455_v1  ;;  %v46_v3 = vld [vmem:[%s6943_s0 + $0x108] sm:$0xff]  ;;  %v3468_v8 = vmul.f32 -1.442695, %v43_v0 }
  0x22   :  { %v3710_v15 = vpop.eup %3709  ;;  %3729 = vpow2.f32 %v3454_v4  ;;  %v3471_v11 = vmul.f32 -1.442695, %v46_v3 }
  0x23   :  { %v3712_v18 = vpop.eup %3711  ;;  %3731 = vpow2.f32 %v3457_v7 }
  0x24   :  { %v3714_v21 = vpop.eup %3713  ;;  %1864 = vperm.xlu1 %3668, %v3704_v6   ;;  %3733 = vpow2.f32 %v3456_v10  ;;  %v45_v6 = vld [vmem:[%s6943_s0 + $0x100] sm:$0xff] }
  0x25   :  { %v3716_v23 = vpop.eup %3715  ;;  %1859 = vperm.xlu0 %3667, %v3706_v9   ;;  %3735 = vpow2.f32 %v3459_v13  ;;  %v48_v9 = vld [vmem:[%s6943_s0 + $0x118] sm:$0xff]  ;;  %v3470_v14 = vmul.f32 -1.442695, %v45_v6 }
  0x26   :  { %v3718_v25 = vpop.eup %3717  ;;  %3737 = vpow2.f32 %v3458_v16  ;;  %v3473_v17 = vmul.f32 -1.442695, %v48_v9 }
  0x27   :  { %v3720_v27 = vpop.eup %3719  ;;  %3739 = vpow2.f32 %v3461_v19 }
  0x28   :  { %v3722_v28 = vpop.eup %3721  ;;  %1874 = vperm.xlu1 %3668, %v3708_v12   ;;  %3741 = vpow2.f32 %v3460_v22  ;;  %v47_v12 = vld [vmem:[%s6943_s0 + $0x110] sm:$0xff] }
  0x29   :  { %v3724_v29 = vpop.eup %3723  ;;  %1869 = vperm.xlu0 %3667, %v3710_v15   ;;  %v937_v30 = vadd.f32 1.0, %v3722_v28  ;;  %3743 = vpow2.f32 %v3463_v24  ;;  %v50_v15 = vld [vmem:[%s6943_s0 + $0x128] sm:$0xff]  ;;  %v3472_v20 = vmul.f32 -1.442695, %v47_v12 }
  0x2a   :  { %v3726_v31 = vpop.eup %3725  ;;  %v940_v32 = vadd.f32 1.0, %v3724_v29  ;;  %3745 = vpow2.f32 %v3462_v26 }
  0x2b   :  { %v3728_v33 = vpop.eup %3727  ;;  %3747 = vrcp.f32 %v937_v30  ;;  %v939_v34 = vadd.f32 1.0, %v3726_v31 }
  0x2c   :  { %v3730_v35 = vpop.eup %3729  ;;  %1884 = vperm.xlu1 %3668, %v3712_v18   ;;  %3749 = vrcp.f32 %v940_v32  ;;  %v942_v36 = vadd.f32 1.0, %v3728_v33  ;;  %v49_v18 = vld [vmem:[%s6943_s0 + $0x120] sm:$0xff] }
  0x2d   :  { %v3732_v37 = vpop.eup %3731  ;;  %1879 = vperm.xlu0 %3667, %v3714_v21   ;;  %3751 = vrcp.f32 %v939_v34  ;;  %v941_v38 = vadd.f32 1.0, %v3730_v35  ;;  %v52_v21 = vld [vmem:[%s6943_s0 + $0x138] sm:$0xff] }
  0x2e   :  { %v3734_v39 = vpop.eup %3733  ;;  %3753 = vrcp.f32 %v942_v36  ;;  %v944_v40 = vadd.f32 1.0, %v3732_v37 }
  0x2f   :  { %v3736_v41 = vpop.eup %3735  ;;  %3755 = vrcp.f32 %v941_v38  ;;  %v943_v42 = vadd.f32 1.0, %v3734_v39 }
  0x30   :  { %v3738_v43 = vpop.eup %3737  ;;  %1894 = vperm.xlu1 %3668, %v3716_v23   ;;  %3757 = vrcp.f32 %v944_v40  ;;  %v946_v44 = vadd.f32 1.0, %v3736_v41  ;;  %v3475_v23 = vmul.f32 -1.442695, %v50_v15 }
  0x31   :  { %v3740_v45 = vpop.eup %3739  ;;  %1889 = vperm.xlu0 %3667, %v3718_v25   ;;  %3759 = vrcp.f32 %v943_v42  ;;  %v945_v46 = vadd.f32 1.0, %v3738_v43  ;;  %v3474_v25 = vmul.f32 -1.442695, %v49_v18 }
  0x32   :  { %v3742_v48 = vpop.eup %3741  ;;  %3761 = vrcp.f32 %v946_v44  ;;  %v948_v49 = vadd.f32 1.0, %v3740_v45 }
  0x33   :  { %v3744_v51 = vpop.eup %3743  ;;  %3763 = vrcp.f32 %v945_v46  ;;  %v947_v52 = vadd.f32 1.0, %v3742_v48  ;;  %v51_v48 = vld [vmem:[%s6943_s0 + $0x130] sm:$0xff] }
  0x34   :  { %v3746_v54 = vpop.eup %3745  ;;  %1904 = vperm.xlu1 %3668, %v3720_v27   ;;  %3765 = vrcp.f32 %v948_v49  ;;  %v950_v55 = vadd.f32 1.0, %v3744_v51  ;;  %v3477_v27 = vmul.f32 -1.442695, %v52_v21  ;;  %v54_v51 = vld [vmem:[%s6943_s0 + $0x148] sm:$0xff]  ;;  %v3476_v57 = vmul.f32 -1.442695, %v51_v48 }
  0x35   :  { %v3748_v58 = vpop.eup %3747  ;;  %3767 = vrcp.f32 %v947_v52  ;;  %v949_v59 = vadd.f32 1.0, %v3746_v54  ;;  %v53_v54 = vld [vmem:[%s6943_s0 + $0x140] sm:$0xff]  ;;  %v3479_v61 = vmul.f32 -1.442695, %v54_v51 }
  0x36   :  { %v3750_v62 = vpop.eup %3749  ;;  %1899 = vperm.xlu0 %3667, %v3748_v58   ;;  %3769 = vrcp.f32 %v950_v55  ;;  %v56_v58 = vld [vmem:[%s6943_s0 + $0x158] sm:$0xff]  ;;  %v3478_v0 = vmul.f32 -1.442695, %v53_v54 }
  0x37   :  { %v3752_v1 = vpop.eup %3751  ;;  %3771 = vrcp.f32 %v949_v59  ;;  %v3481_v3 = vmul.f32 -1.442695, %v56_v58 }
  0x38   :  { %v3754_v4 = vpop.eup %3753  ;;  %1914 = vperm.xlu1 %3668, %v3750_v62   ;;  %3773 = vpow2.f32 %v3465_v56  ;;  %v55_v62 = vld [vmem:[%s6943_s0 + $0x150] sm:$0xff] }
  0x39   :  { %v3756_v7 = vpop.eup %3755  ;;  %3775 = vpow2.f32 %v3464_v60  ;;  %v3480_v6 = vmul.f32 -1.442695, %v55_v62 }
  0x3a   :  { %v3758_v10 = vpop.eup %3757  ;;  %1909 = vperm.xlu0 %3667, %v3752_v1   ;;  %3777 = vpow2.f32 %v3467_v63  ;;  %v58_v1 = vld [vmem:[%s6943_s0 + $0x168] sm:$0xff] }
  0x3b   :  { %v3760_v13 = vpop.eup %3759  ;;  %3779 = vpow2.f32 %v3466_v2  ;;  %v3483_v9 = vmul.f32 -1.442695, %v58_v1 }
  0x3c   :  { %v3762_v16 = vpop.eup %3761  ;;  %1924 = vperm.xlu1 %3668, %v3754_v4   ;;  %3781 = vpow2.f32 %v3469_v5  ;;  %v57_v4 = vld [vmem:[%s6943_s0 + $0x160] sm:$0xff] }
  0x3d   :  { %v3764_v19 = vpop.eup %3763  ;;  %3783 = vpow2.f32 %v3468_v8  ;;  %v3482_v12 = vmul.f32 -1.442695, %v57_v4 }
  0x3e   :  { %v3766_v22 = vpop.eup %3765  ;;  %1919 = vperm.xlu0 %3667, %v3756_v7   ;;  %3785 = vpow2.f32 %v3471_v11  ;;  %v60_v7 = vld [vmem:[%s6943_s0 + $0x178] sm:$0xff] }
  0x3f   :  { %v3768_v24 = vpop.eup %3767  ;;  %3787 = vpow2.f32 %v3470_v14  ;;  %v3485_v15 = vmul.f32 -1.442695, %v60_v7 }
  0x40   :  { %v3770_v26 = vpop.eup %3769  ;;  %1934 = vperm.xlu1 %3668, %v3758_v10   ;;  %3789 = vpow2.f32 %v3473_v17  ;;  %v59_v10 = vld [vmem:[%s6943_s0 + $0x170] sm:$0xff] }
  0x41   :  { %v3772_v28 = vpop.eup %3771  ;;  %3791 = vpow2.f32 %v3472_v20  ;;  %v3484_v18 = vmul.f32 -1.442695, %v59_v10 }
  0x42   :  { %v3774_v29 = vpop.eup %3773  ;;  %1929 = vperm.xlu0 %3667, %v3760_v13   ;;  %3793 = vpow2.f32 %v3475_v23  ;;  %v62_v13 = vld [vmem:[%s6943_s0 + $0x188] sm:$0xff] }
  0x43   :  { %v3776_v30 = vpop.eup %3775  ;;  %v952_v31 = vadd.f32 1.0, %v3774_v29  ;;  %3795 = vpow2.f32 %v3474_v25  ;;  %v3487_v21 = vmul.f32 -1.442695, %v62_v13 }
  0x44   :  { %v3778_v32 = vpop.eup %3777  ;;  %1944 = vperm.xlu1 %3668, %v3762_v16   ;;  %v951_v33 = vadd.f32 1.0, %v3776_v30  ;;  %3797 = vpow2.f32 %v3477_v27  ;;  %v61_v16 = vld [vmem:[%s6943_s0 + $0x180] sm:$0xff] }
  0x45   :  { %v3780_v34 = vpop.eup %3779  ;;  %3799 = vrcp.f32 %v952_v31  ;;  %v954_v35 = vadd.f32 1.0, %v3778_v32 }
  0x46   :  { %v3782_v36 = vpop.eup %3781  ;;  %1939 = vperm.xlu0 %3667, %v3764_v19   ;;  %3801 = vrcp.f32 %v951_v33  ;;  %v953_v37 = vadd.f32 1.0, %v3780_v34  ;;  %v64_v19 = vld [vmem:[%s6943_s0 + $0x198] sm:$0xff] }
  0x47   :  { %v3784_v38 = vpop.eup %3783  ;;  %3803 = vrcp.f32 %v954_v35  ;;  %v956_v39 = vadd.f32 1.0, %v3782_v36 }
  0x48   :  { %v3786_v40 = vpop.eup %3785  ;;  %1954 = vperm.xlu1 %3668, %v3766_v22   ;;  %3805 = vrcp.f32 %v953_v37  ;;  %v955_v41 = vadd.f32 1.0, %v3784_v38  ;;  %v63_v22 = vld [vmem:[%s6943_s0 + $0x190] sm:$0xff] }
  0x49   :  { %v3788_v42 = vpop.eup %3787  ;;  %3807 = vrcp.f32 %v956_v39  ;;  %v958_v43 = vadd.f32 1.0, %v3786_v40 }
  0x4a   :  { %v3790_v44 = vpop.eup %3789  ;;  %1949 = vperm.xlu0 %3667, %v3768_v24   ;;  %3809 = vrcp.f32 %v955_v41  ;;  %v957_v45 = vadd.f32 1.0, %v3788_v42  ;;  %v3486_v24 = vmul.f32 -1.442695, %v61_v16 }
  0x4b   :  { %v3792_v46 = vpop.eup %3791  ;;  %3811 = vrcp.f32 %v958_v43  ;;  %v960_v47 = vadd.f32 1.0, %v3790_v44 }
  0x4c   :  { %v3794_v49 = vpop.eup %3793  ;;  %1964 = vperm.xlu1 %3668, %v3770_v26   ;;  %3813 = vrcp.f32 %v957_v45  ;;  %v959_v50 = vadd.f32 1.0, %v3792_v46  ;;  %v3489_v26 = vmul.f32 -1.442695, %v64_v19 }
  0x4d   :  { %v3796_v52 = vpop.eup %3795  ;;  %3815 = vrcp.f32 %v960_v47  ;;  %v962_v53 = vadd.f32 1.0, %v3794_v49  ;;  %v66_v49 = vld [vmem:[%s6943_s0 + $0x1a8] sm:$0xff] }
  0x4e   :  { %v3798_v55 = vpop.eup %3797  ;;  %1959 = vperm.xlu0 %3667, %v3772_v28   ;;  %3817 = vrcp.f32 %v959_v50  ;;  %v961_v56 = vadd.f32 1.0, %v3796_v52  ;;  %v3488_v28 = vmul.f32 -1.442695, %v63_v22  ;;  %v65_v52 = vld [vmem:[%s6943_s0 + $0x1a0] sm:$0xff]  ;;  %v3491_v58 = vmul.f32 -1.442695, %v66_v49 }
  0x4f   :  { %v3800_v59 = vpop.eup %3799  ;;  %3819 = vrcp.f32 %v962_v53  ;;  %v964_v60 = vadd.f32 1.0, %v3798_v55  ;;  %v68_v55 = vld [vmem:[%s6943_s0 + $0x1b8] sm:$0xff]  ;;  %v3490_v62 = vmul.f32 -1.442695, %v65_v52 }
  0x50   :  { %v3802_v63 = vpop.eup %3801  ;;  %1974 = vperm.xlu1 %3668, %v3800_v59   ;;  %3821 = vrcp.f32 %v961_v56  ;;  %v67_v59 = vld [vmem:[%s6943_s0 + $0x1b0] sm:$0xff]  ;;  %v3493_v1 = vmul.f32 -1.442695, %v68_v55 }
  0x51   :  { %v3804_v2 = vpop.eup %3803  ;;  %3823 = vrcp.f32 %v964_v60  ;;  %v3492_v4 = vmul.f32 -1.442695, %v67_v59 }
  0x52   :  { %v3806_v5 = vpop.eup %3805  ;;  %1969 = vperm.xlu0 %3667, %v3802_v63   ;;  %3825 = vpow2.f32 %v3476_v57  ;;  %v70_v63 = vld [vmem:[%s6943_s0 + $0x1c8] sm:$0xff] }
  0x53   :  { %v3808_v8 = vpop.eup %3807  ;;  %3827 = vpow2.f32 %v3479_v61  ;;  %v3495_v7 = vmul.f32 -1.442695, %v70_v63 }
  0x54   :  { %v3810_v11 = vpop.eup %3809  ;;  %1984 = vperm.xlu1 %3668, %v3804_v2   ;;  %3829 = vpow2.f32 %v3478_v0  ;;  %v69_v2 = vld [vmem:[%s6943_s0 + $0x1c0] sm:$0xff] }
  0x55   :  { %v3812_v14 = vpop.eup %3811  ;;  %3831 = vpow2.f32 %v3481_v3  ;;  %v3494_v10 = vmul.f32 -1.442695, %v69_v2 }
  0x56   :  { %v3814_v17 = vpop.eup %3813  ;;  %1979 = vperm.xlu0 %3667, %v3806_v5   ;;  %3833 = vpow2.f32 %v3480_v6  ;;  %v72_v5 = vld [vmem:[%s6943_s0 + $0x1d8] sm:$0xff] }
  0x57   :  { %v3816_v20 = vpop.eup %3815  ;;  %3835 = vpow2.f32 %v3483_v9  ;;  %v3497_v13 = vmul.f32 -1.442695, %v72_v5 }
  0x58   :  { %v3818_v23 = vpop.eup %3817  ;;  %1994 = vperm.xlu1 %3668, %v3808_v8   ;;  %3837 = vpow2.f32 %v3482_v12  ;;  %v71_v8 = vld [vmem:[%s6943_s0 + $0x1d0] sm:$0xff] }
  0x59   :  { %v3820_v25 = vpop.eup %3819  ;;  %3839 = vpow2.f32 %v3485_v15  ;;  %v3496_v16 = vmul.f32 -1.442695, %v71_v8 }
  0x5a   :  { %v3822_v27 = vpop.eup %3821  ;;  %1989 = vperm.xlu0 %3667, %v3810_v11   ;;  %3841 = vpow2.f32 %v3484_v18  ;;  %v74_v11 = vld [vmem:[%s6943_s0 + $0x1e8] sm:$0xff] }
  0x5b   :  { %v3824_v29 = vpop.eup %3823  ;;  %3843 = vpow2.f32 %v3487_v21  ;;  %v3499_v19 = vmul.f32 -1.442695, %v74_v11 }
  0x5c   :  { %v3826_v30 = vpop.eup %3825  ;;  %2004 = vperm.xlu1 %3668, %v3812_v14   ;;  %3845 = vpow2.f32 %v3486_v24  ;;  %v73_v14 = vld [vmem:[%s6943_s0 + $0x1e0] sm:$0xff] }
  0x5d   :  { %v3828_v31 = vpop.eup %3827  ;;  %v963_v32 = vadd.f32 1.0, %v3826_v30  ;;  %3847 = vpow2.f32 %v3489_v26  ;;  %v3498_v22 = vmul.f32 -1.442695, %v73_v14 }
  0x5e   :  { %v3830_v33 = vpop.eup %3829  ;;  %1999 = vperm.xlu0 %3667, %v3814_v17   ;;  %v966_v34 = vadd.f32 1.0, %v3828_v31  ;;  %3849 = vpow2.f32 %v3488_v28  ;;  %v76_v17 = vld [vmem:[%s6943_s0 + $0x1f8] sm:$0xff] }
  0x5f   :  { %v3832_v35 = vpop.eup %3831  ;;  %3851 = vrcp.f32 %v963_v32  ;;  %v965_v36 = vadd.f32 1.0, %v3830_v33 }
  0x60   :  { %v3834_v37 = vpop.eup %3833  ;;  %2014 = vperm.xlu1 %3668, %v3816_v20   ;;  %3853 = vrcp.f32 %v966_v34  ;;  %v968_v38 = vadd.f32 1.0, %v3832_v35  ;;  %v75_v20 = vld [vmem:[%s6943_s0 + $0x1f0] sm:$0xff] }
  0x61   :  { %v3836_v39 = vpop.eup %3835  ;;  %3855 = vrcp.f32 %v965_v36  ;;  %v967_v40 = vadd.f32 1.0, %v3834_v37 }
  0x62   :  { %v3838_v41 = vpop.eup %3837  ;;  %2009 = vperm.xlu0 %3667, %v3818_v23   ;;  %3857 = vrcp.f32 %v968_v38  ;;  %v970_v42 = vadd.f32 1.0, %v3836_v39  ;;  %v78_v23 = vld [vmem:[%s6943_s0 + $0x208] sm:$0xff] }
  0x63   :  { %v3840_v43 = vpop.eup %3839  ;;  %3859 = vrcp.f32 %v967_v40  ;;  %v969_v44 = vadd.f32 1.0, %v3838_v41 }
  0x64   :  { %v3842_v45 = vpop.eup %3841  ;;  %2024 = vperm.xlu1 %3668, %v3820_v25   ;;  %3861 = vrcp.f32 %v970_v42  ;;  %v972_v46 = vadd.f32 1.0, %v3840_v43  ;;  %v3501_v25 = vmul.f32 -1.442695, %v76_v17 }
  0x65   :  { %v3844_v47 = vpop.eup %3843  ;;  %3863 = vrcp.f32 %v969_v44  ;;  %v971_v48 = vadd.f32 1.0, %v3842_v45 }
  0x66   :  { %v3846_v50 = vpop.eup %3845  ;;  %2019 = vperm.xlu0 %3667, %v3822_v27   ;;  %3865 = vrcp.f32 %v972_v46  ;;  %v974_v51 = vadd.f32 1.0, %v3844_v47  ;;  %v3500_v27 = vmul.f32 -1.442695, %v75_v20 }
  0x67   :  { %v3848_v53 = vpop.eup %3847  ;;  %3867 = vrcp.f32 %v971_v48  ;;  %v973_v54 = vadd.f32 1.0, %v3846_v50  ;;  %v77_v50 = vld [vmem:[%s6943_s0 + $0x200] sm:$0xff] }
  0x68   :  { %v3850_v56 = vpop.eup %3849  ;;  %2034 = vperm.xlu1 %3668, %v3824_v29   ;;  %3869 = vrcp.f32 %v974_v51  ;;  %v976_v57 = vadd.f32 1.0, %v3848_v53  ;;  %v3503_v29 = vmul.f32 -1.442695, %v78_v23  ;;  %v80_v53 = vld [vmem:[%s6943_s0 + $0x218] sm:$0xff]  ;;  %v3502_v59 = vmul.f32 -1.442695, %v77_v50 }
  0x69   :  { %v3852_v60 = vpop.eup %3851  ;;  %3871 = vrcp.f32 %v973_v54  ;;  %v975_v61 = vadd.f32 1.0, %v3850_v56  ;;  %v79_v56 = vld [vmem:[%s6943_s0 + $0x210] sm:$0xff]  ;;  %v3505_v63 = vmul.f32 -1.442695, %v80_v53 }
  0x6a   :  { %v3854_v0 = vpop.eup %3853  ;;  %2029 = vperm.xlu0 %3667, %v3852_v60   ;;  %3873 = vrcp.f32 %v976_v57  ;;  %v82_v60 = vld [vmem:[%s6943_s0 + $0x228] sm:$0xff]  ;;  %v3504_v2 = vmul.f32 -1.442695, %v79_v56  ;;  %v1611_v50 = vld [vmem:[%s6944_s1 + $0x10] sm:$0xff] }
  0x6b   :  { %v3856_v3 = vpop.eup %3855  ;;  %3875 = vrcp.f32 %v975_v61  ;;  %v3507_v5 = vmul.f32 -1.442695, %v82_v60  ;;  %v91_v56 = vld [vmem:[%s6943_s0 + $0x270] sm:$0xff]  ;;  %v94_v60 = vld [vmem:[%s6943_s0 + $0x288] sm:$0xff] }
  0x6c   :  { %v3858_v6 = vpop.eup %3857  ;;  %2044 = vperm.xlu1 %3668, %v3854_v0   ;;  %3877 = vpow2.f32 %v3491_v58  ;;  %v81_v0 = vld [vmem:[%s6943_s0 + $0x220] sm:$0xff] }
  0x6d   :  { %v3860_v9 = vpop.eup %3859  ;;  %3879 = vpow2.f32 %v3490_v62  ;;  %v3506_v8 = vmul.f32 -1.442695, %v81_v0 }
  0x6e   :  { %v3862_v12 = vpop.eup %3861  ;;  %2039 = vperm.xlu0 %3667, %v3856_v3   ;;  %3881 = vpow2.f32 %v3493_v1  ;;  %v84_v3 = vld [vmem:[%s6943_s0 + $0x238] sm:$0xff] }
  0x6f   :  { %v3864_v15 = vpop.eup %3863  ;;  %3883 = vpow2.f32 %v3492_v4  ;;  %v3509_v11 = vmul.f32 -1.442695, %v84_v3 }
  0x70   :  { %v3866_v18 = vpop.eup %3865  ;;  %2054 = vperm.xlu1 %3668, %v3858_v6   ;;  %3885 = vpow2.f32 %v3495_v7  ;;  %v83_v6 = vld [vmem:[%s6943_s0 + $0x230] sm:$0xff] }
  0x71   :  { %v3868_v21 = vpop.eup %3867  ;;  %3887 = vpow2.f32 %v3494_v10  ;;  %v3508_v14 = vmul.f32 -1.442695, %v83_v6 }
  0x72   :  { %v3870_v24 = vpop.eup %3869  ;;  %2049 = vperm.xlu0 %3667, %v3860_v9   ;;  %3889 = vpow2.f32 %v3497_v13  ;;  %v86_v9 = vld [vmem:[%s6943_s0 + $0x248] sm:$0xff] }
  0x73   :  { %v3872_v26 = vpop.eup %3871  ;;  %3891 = vpow2.f32 %v3496_v16  ;;  %v3511_v17 = vmul.f32 -1.442695, %v86_v9 }
  0x74   :  { %v3874_v28 = vpop.eup %3873  ;;  %2064 = vperm.xlu1 %3668, %v3862_v12   ;;  %3893 = vpow2.f32 %v3499_v19  ;;  %v85_v12 = vld [vmem:[%s6943_s0 + $0x240] sm:$0xff] }
  0x75   :  { %v3876_v30 = vpop.eup %3875  ;;  %3895 = vpow2.f32 %v3498_v22  ;;  %v3510_v20 = vmul.f32 -1.442695, %v85_v12  ;;  %v95_v12 = vld [vmem:[%s6943_s0 + $0x290] sm:$0xff] }
  0x76   :  { %v3878_v31 = vpop.eup %3877  ;;  %2059 = vperm.xlu0 %3667, %v3864_v15   ;;  %3897 = vpow2.f32 %v3501_v25  ;;  %v88_v15 = vld [vmem:[%s6943_s0 + $0x258] sm:$0xff] }
  0x77   :  { %v3880_v32 = vpop.eup %3879  ;;  %v978_v33 = vadd.f32 1.0, %v3878_v31  ;;  %3899 = vpow2.f32 %v3500_v27  ;;  %v3513_v23 = vmul.f32 -1.442695, %v88_v15 }
  0x78   :  { %v3882_v34 = vpop.eup %3881  ;;  %2074 = vperm.xlu1 %3668, %v3866_v18   ;;  %v977_v35 = vadd.f32 1.0, %v3880_v32  ;;  %3901 = vpow2.f32 %v3503_v29  ;;  %v87_v18 = vld [vmem:[%s6943_s0 + $0x250] sm:$0xff] }
  0x79   :  { %v3884_v36 = vpop.eup %3883  ;;  %3903 = vrcp.f32 %v978_v33  ;;  %v980_v37 = vadd.f32 1.0, %v3882_v34 }
  0x7a   :  { %v3886_v38 = vpop.eup %3885  ;;  %2069 = vperm.xlu0 %3667, %v3868_v21   ;;  %3905 = vrcp.f32 %v977_v35  ;;  %v979_v39 = vadd.f32 1.0, %v3884_v36  ;;  %v90_v21 = vld [vmem:[%s6943_s0 + $0x268] sm:$0xff] }
  0x7b   :  { %v3888_v40 = vpop.eup %3887  ;;  %3907 = vrcp.f32 %v980_v37  ;;  %v982_v41 = vadd.f32 1.0, %v3886_v38 }
  0x7c   :  { %v3890_v42 = vpop.eup %3889  ;;  %2084 = vperm.xlu1 %3668, %v3870_v24   ;;  %3909 = vrcp.f32 %v979_v39  ;;  %v981_v43 = vadd.f32 1.0, %v3888_v40  ;;  %v89_v24 = vld [vmem:[%s6943_s0 + $0x260] sm:$0xff] }
  0x7d   :  { %v3892_v44 = vpop.eup %3891  ;;  %3911 = vrcp.f32 %v982_v41  ;;  %v984_v45 = vadd.f32 1.0, %v3890_v42 }
  0x7e   :  { %v3894_v46 = vpop.eup %3893  ;;  %2079 = vperm.xlu0 %3667, %v3872_v26   ;;  %3913 = vrcp.f32 %v981_v43  ;;  %v983_v47 = vadd.f32 1.0, %v3892_v44  ;;  %v3512_v26 = vmul.f32 -1.442695, %v87_v18 }
  0x7f   :  { %v3896_v48 = vpop.eup %3895  ;;  %3915 = vrcp.f32 %v984_v45  ;;  %v986_v49 = vadd.f32 1.0, %v3894_v46 }
  0x80   :  { %v3898_v51 = vpop.eup %3897  ;;  %2094 = vperm.xlu1 %3668, %v3874_v28   ;;  %3917 = vrcp.f32 %v983_v47  ;;  %v985_v52 = vadd.f32 1.0, %v3896_v48  ;;  %v3515_v28 = vmul.f32 -1.442695, %v90_v21  ;;  %v97_v21 = vld [vmem:[%s6943_s0 + $0x2a0] sm:$0xff] }
  0x81   :  { %v3900_v54 = vpop.eup %3899  ;;  %3919 = vrcp.f32 %v986_v49  ;;  %v988_v55 = vadd.f32 1.0, %v3898_v51 }
  0x82   :  { %v3902_v57 = vpop.eup %3901  ;;  %2089 = vperm.xlu0 %3667, %v3876_v30   ;;  %3921 = vrcp.f32 %v985_v52  ;;  %v987_v58 = vadd.f32 1.0, %v3900_v54  ;;  %v3514_v30 = vmul.f32 -1.442695, %v89_v24  ;;  %v92_v52 = vld [vmem:[%s6943_s0 + $0x278] sm:$0xff]  ;;  %v1609_v54 = vld [vmem:[%s6944_s1] sm:$0xff]  ;;  %v1614_v24 = vld [vmem:[%s6944_s1 + $0x28] sm:$0xff] }
  0x83   :  { %v3904_v61 = vpop.eup %3903  ;;  %3923 = vrcp.f32 %v988_v55  ;;  %v990_v62 = vadd.f32 1.0, %v3902_v57 }
  0x84   :  { %v3906_v1 = vpop.eup %3905  ;;  %2104 = vperm.xlu1 %3668, %v3904_v61   ;;  %3925 = vrcp.f32 %v987_v58 }
  0x85   :  { %v3908_v4 = vpop.eup %3907  ;;  %3927 = vrcp.f32 %v990_v62 }
  0x86   :  { %v3910_v7 = vpop.eup %3909  ;;  %2099 = vperm.xlu0 %3667, %v3906_v1   ;;  %3929 = vpow2.f32 %v3502_v59  ;;  %v3517_v1 = vmul.f32 -1.442695, %v92_v52 }
  0x87   :  { %v3912_v10 = vpop.eup %3911  ;;  %3931 = vpow2.f32 %v3505_v63 }
  0x88   :  { %v3914_v13 = vpop.eup %3913  ;;  %2114 = vperm.xlu1 %3668, %v3908_v4   ;;  %3933 = vpow2.f32 %v3504_v2  ;;  %v93_v2 = vld [vmem:[%s6943_s0 + $0x280] sm:$0xff] }
  0x89   :  { %v3916_v16 = vpop.eup %3915  ;;  %3935 = vpow2.f32 %v3507_v5  ;;  %v1612_v5 = vld [vmem:[%s6944_s1 + $0x18] sm:$0xff]  ;;  %v3518_v15 = vmul.f32 -1.442695, %v93_v2 }
  0x8a   :  { %v3918_v19 = vpop.eup %3917  ;;  %2109 = vperm.xlu0 %3667, %v3910_v7   ;;  %3937 = vpow2.f32 %v3506_v8  ;;  %v3516_v7 = vmul.f32 -1.442695, %v91_v56  ;;  %v96_v8 = vld [vmem:[%s6943_s0 + $0x298] sm:$0xff] }
  0x8b   :  { %v3920_v22 = vpop.eup %3919  ;;  %3939 = vpow2.f32 %v3509_v11  ;;  %v3519_v11 = vmul.f32 -1.442695, %v94_v60 }
  0x8c   :  { %v3922_v25 = vpop.eup %3921  ;;  %2124 = vperm.xlu1 %3668, %v3912_v10   ;;  %3941 = vpow2.f32 %v3508_v14  ;;  %v1610_v10 = vld [vmem:[%s6944_s1 + $0x8] sm:$0xff] }
  0x8d   :  { %v3924_v27 = vpop.eup %3923  ;;  %3943 = vpow2.f32 %v3511_v17 }
  0x8e   :  { %v3926_v29 = vpop.eup %3925  ;;  %2119 = vperm.xlu0 %3667, %v3914_v13   ;;  %3945 = vpow2.f32 %v3510_v20  ;;  %v3521_v20 = vmul.f32 -1.442695, %v96_v8  ;;  %v1619_v8 = vld [vmem:[%s6944_s1 + $0x50] sm:$0xff] }
  0x8f   :  { %v3928_v31 = vpop.eup %3927  ;;  %3947 = vpow2.f32 %v3513_v23 }
  0x90   :  { %v3930_v32 = vpop.eup %3929  ;;  %2134 = vperm.xlu1 %3668, %v3916_v16   ;;  %3949 = vpow2.f32 %v3512_v26  ;;  %v98_v16 = vld [vmem:[%s6943_s0 + $0x2a8] sm:$0xff]  ;;  %v100_v26 = vld [vmem:[%s6943_s0 + $0x2b8] sm:$0xff] }
  0x91   :  { %v3932_v33 = vpop.eup %3931  ;;  %v989_v34 = vadd.f32 1.0, %v3930_v32  ;;  %3951 = vpow2.f32 %v3515_v28  ;;  %v1613_v28 = vld [vmem:[%s6944_s1 + $0x20] sm:$0xff] }
  0x92   :  { %v3934_v35 = vpop.eup %3933  ;;  %2129 = vperm.xlu0 %3667, %v3918_v19   ;;  %v992_v36 = vadd.f32 1.0, %v3932_v33  ;;  %3953 = vpow2.f32 %v3514_v30  ;;  %v99_v30 = vld [vmem:[%s6943_s0 + $0x2b0] sm:$0xff]  ;;  %v3522_v33 = vmul.f32 -1.442695, %v97_v21 }
  0x93   :  { %v3936_v37 = vpop.eup %3935  ;;  %3955 = vrcp.f32 %v989_v34  ;;  %v991_v38 = vadd.f32 1.0, %v3934_v35  ;;  %v102_v34 = vld [vmem:[%s6943_s0 + $0x2c8] sm:$0xff] }
  0x94   :  { %v3938_v39 = vpop.eup %3937  ;;  %2144 = vperm.xlu1 %3668, %v3920_v22   ;;  %3957 = vrcp.f32 %v992_v36  ;;  %v994_v40 = vadd.f32 1.0, %v3936_v37 }
  0x95   :  { %v3940_v41 = vpop.eup %3939  ;;  %3959 = vrcp.f32 %v991_v38  ;;  %v993_v42 = vadd.f32 1.0, %v3938_v39  ;;  %v3525_v38 = vmul.f32 -1.442695, %v100_v26  ;;  %v101_v39 = vld [vmem:[%s6943_s0 + $0x2c0] sm:$0xff] }
  0x96   :  { %v3942_v43 = vpop.eup %3941  ;;  %2139 = vperm.xlu0 %3667, %v3922_v25   ;;  %3961 = vrcp.f32 %v994_v40  ;;  %v996_v44 = vadd.f32 1.0, %v3940_v41  ;;  %v3520_v25 = vmul.f32 -1.442695, %v95_v12 }
  0x97   :  { %v3944_v45 = vpop.eup %3943  ;;  %3963 = vrcp.f32 %v993_v42  ;;  %v995_v46 = vadd.f32 1.0, %v3942_v43  ;;  %v1616_v42 = vld [vmem:[%s6944_s1 + $0x38] sm:$0xff]  ;;  %v3524_v43 = vmul.f32 -1.442695, %v99_v30 }
  0x98   :  { %v3946_v47 = vpop.eup %3945  ;;  %2154 = vperm.xlu1 %3668, %v3924_v27   ;;  %3965 = vrcp.f32 %v996_v44  ;;  %v998_v48 = vadd.f32 1.0, %v3944_v45  ;;  %v104_v44 = vld [vmem:[%s6943_s0 + $0x2d8] sm:$0xff] }
  0x99   :  { %v3948_v49 = vpop.eup %3947  ;;  %3967 = vrcp.f32 %v995_v46  ;;  %v997_v51 = vadd.f32 1.0, %v3946_v47  ;;  %v1615_v46 = vld [vmem:[%s6944_s1 + $0x30] sm:$0xff]  ;;  %v3527_v47 = vmul.f32 -1.442695, %v102_v34  ;;  %v1624_v34 = vld [vmem:[%s6944_s1 + $0x78] sm:$0xff] }
  0x9a   :  { %v3950_v53 = vpop.eup %3949  ;;  %2149 = vperm.xlu0 %3667, %v3926_v29   ;;  %3969 = vrcp.f32 %v998_v48  ;;  %v1000_v55 = vadd.f32 1.0, %v3948_v49  ;;  %v3523_v29 = vmul.f32 -1.442695, %v98_v16 }
  0x9b   :  { %v3952_v57 = vpop.eup %3951  ;;  %v1850_v58 = vpop.permute.xlu1 %1849  ;;  %3971 = vrcp.f32 %v997_v51  ;;  %v999_v59 = vadd.f32 1.0, %v3950_v53 }
  0x9c   :  { %v3954_v61 = vpop.eup %3953  ;;  %v2979_v62 = vmul.f32 %v1850_v58, %v1611_v50  ;;  %v1840_v63 = vpop.permute.xlu0 %1839  ;;  %2164 = vperm.xlu1 %3668, %v3928_v31   ;;  %3973 = vrcp.f32 %v1000_v55  ;;  %v1002_v0 = vadd.f32 1.0, %v3952_v57  ;;  %v3526_v50 = vmul.f32 -1.442695, %v101_v39  ;;  %v1618_v57 = vld [vmem:[%s6944_s1 + $0x48] sm:$0xff] }
  0x9d   :  { %v3956_v3 = vpop.eup %3955  ;;  %v2977_v4 = vmul.f32 %v1840_v63, %v1609_v54  ;;  %3975 = vrcp.f32 %v999_v59  ;;  %v1001_v6 = vadd.f32 1.0, %v3954_v61  ;;  %v3529_v54 = vmul.f32 -1.442695, %v104_v44  ;;  %v1617_v59 = vld [vmem:[%s6944_s1 + $0x40] sm:$0xff]  ;;  %v1623_v44 = vld [vmem:[%s6944_s1 + $0x70] sm:$0xff] }
  0x9e   :  { %v3958_v9 = vpop.eup %3957  ;;  %3208 = vst.msk [vmem:[%s6945_s2 + $0x10] sm:$0xff] %vm3205_vm0, %v2979_v62  ;;  %2159 = vperm.xlu0 %3667, %v3956_v3   ;;  %3977 = vrcp.f32 %v1002_v0 }
  0x9f   :  { %v3960_v13 = vpop.eup %3959  ;;  %3206 = vst.msk [vmem:[%s6945_s2] sm:$0xff] %vm3205_vm0, %v2977_v4  ;;  %v1855_v14 = vpop.permute.xlu1 %1854  ;;  %3979 = vrcp.f32 %v1001_v6 }
  0xa0   :  { %v3962_v17 = vpop.eup %3961  ;;  %v2980_v18 = vmul.f32 %v1855_v14, %v1612_v5  ;;  %v1845_v19 = vpop.permute.xlu0 %1844  ;;  %2174 = vperm.xlu1 %3668, %v3958_v9   ;;  %3981 = vpow2.f32 %v3517_v1  ;;  %v1620_v5 = vld [vmem:[%s6944_s1 + $0x58] sm:$0xff] }
  0xa1   :  { %v3964_v22 = vpop.eup %3963  ;;  %v2978_v23 = vmul.f32 %v1845_v19, %v1610_v10  ;;  %3983 = vpow2.f32 %v3516_v7  ;;  %v1622_v19 = vld [vmem:[%s6944_s1 + $0x68] sm:$0xff] }
  0xa2   :  { %v3966_v27 = vpop.eup %3965  ;;  %3209 = vst.msk [vmem:[%s6945_s2 + $0x18] sm:$0xff] %vm3205_vm0, %v2980_v18  ;;  %2169 = vperm.xlu0 %3667, %v3960_v13   ;;  %3985 = vpow2.f32 %v3519_v11 }
  0xa3   :  { %v3968_v31 = vpop.eup %3967  ;;  %3207 = vst.msk [vmem:[%s6945_s2 + $0x8] sm:$0xff] %vm3205_vm0, %v2978_v23  ;;  %v1865_v32 = vpop.permute.xlu1 %1864  ;;  %3987 = vpow2.f32 %v3518_v15 }
  0xa4   :  { %v3970_v35 = vpop.eup %3969  ;;  %v2982_v36 = vmul.f32 %v1865_v32, %v1614_v24  ;;  %v1860_v37 = vpop.permute.xlu0 %1859  ;;  %2184 = vperm.xlu1 %3668, %v3962_v17   ;;  %3989 = vpow2.f32 %v3521_v20 }
  0xa5   :  { %v3972_v40 = vpop.eup %3971  ;;  %v2981_v41 = vmul.f32 %v1860_v37, %v1613_v28  ;;  %3991 = vpow2.f32 %v3520_v25  ;;  %v1621_v25 = vld [vmem:[%s6944_s1 + $0x60] sm:$0xff] }
  0xa6   :  { %v3974_v45 = vpop.eup %3973  ;;  %3211 = vst.msk [vmem:[%s6945_s2 + $0x28] sm:$0xff] %vm3205_vm0, %v2982_v36  ;;  %2179 = vperm.xlu0 %3667, %v3964_v22   ;;  %3993 = vpow2.f32 %v3523_v29  ;;  %v105_v36 = vld [vmem:[%s6943_s0 + $0x2e0] sm:$0xff] }
  0xa7   :  { %v3976_v48 = vpop.eup %3975  ;;  %3210 = vst.msk [vmem:[%s6945_s2 + $0x20] sm:$0xff] %vm3205_vm0, %v2981_v41  ;;  %v1875_v49 = vpop.permute.xlu1 %1874  ;;  %3995 = vpow2.f32 %v3522_v33  ;;  %v108_v41 = vld [vmem:[%s6943_s0 + $0x2f8] sm:$0xff] }
  0xa8   :  { %v4918_v51 = vpop.eup %3977  ;;  %v2984_v52 = vmul.f32 %v1875_v49, %v1616_v42  ;;  %v1870_v53 = vpop.permute.xlu0 %1869  ;;  %2194 = vperm.xlu1 %3668, %v3966_v27   ;;  %3997 = vpow2.f32 %v3525_v38  ;;  %v103_v27 = vld [vmem:[%s6943_s0 + $0x2d0] sm:$0xff] }
  0xa9   :  { %v4920_v55 = vpop.eup %3979  ;;  %v2983_v56 = vmul.f32 %v1870_v53, %v1615_v46  ;;  %3999 = vpow2.f32 %v3524_v43 }
  0xaa   :  { %v3982_v58 = vpop.eup %3981  ;;  %3213 = vst.msk [vmem:[%s6945_s2 + $0x38] sm:$0xff] %vm3205_vm0, %v2984_v52  ;;  %2189 = vperm.xlu0 %3667, %v3968_v31   ;;  %4001 = vpow2.f32 %v3527_v47  ;;  %v106_v31 = vld [vmem:[%s6943_s0 + $0x2e8] sm:$0xff]  ;;  %v107_v47 = vld [vmem:[%s6943_s0 + $0x2f0] sm:$0xff] }
  0xab   :  { %v3984_v60 = vpop.eup %3983  ;;  %3212 = vst.msk [vmem:[%s6945_s2 + $0x30] sm:$0xff] %vm3205_vm0, %v2983_v56  ;;  %v1885_v61 = vpop.permute.xlu1 %1884  ;;  %v1004_v62 = vadd.f32 1.0, %v3982_v58  ;;  %4003 = vpow2.f32 %v3526_v50  ;;  %v3531_v46 = vmul.f32 -1.442695, %v106_v31  ;;  %v3530_v50 = vmul.f32 -1.442695, %v105_v36 }
  0xac   :  { %v3986_v63 = vpop.eup %3985  ;;  %v2986_v0 = vmul.f32 %v1885_v61, %v1618_v57  ;;  %v1880_v1 = vpop.permute.xlu0 %1879  ;;  %2204 = vperm.xlu1 %3668, %v3970_v35   ;;  %v1003_v2 = vadd.f32 1.0, %v3984_v60  ;;  %4005 = vpow2.f32 %v3529_v54  ;;  %v1626_v54 = vld [vmem:[%s6944_s1 + $0x88] sm:$0xff]  ;;  %v109_v56 = vld [vmem:[%s6943_s0 + $0x300] sm:$0xff]  ;;  %v112_v60 = vld [vmem:[%s6943_s0 + $0x318] sm:$0xff] }
  0xad   :  { %v3988_v3 = vpop.eup %3987  ;;  %v2985_v4 = vmul.f32 %v1880_v1, %v1617_v59  ;;  %4007 = vrcp.f32 %v1004_v62  ;;  %v1006_v6 = vadd.f32 1.0, %v3986_v63  ;;  %v3532_v59 = vmul.f32 -1.442695, %v107_v47  ;;  %v1625_v63 = vld [vmem:[%s6944_s1 + $0x80] sm:$0xff]  ;;  %v111_v1 = vld [vmem:[%s6943_s0 + $0x310] sm:$0xff] }
  0xae   :  { %v3990_v7 = vpop.eup %3989  ;;  %3215 = vst.msk [vmem:[%s6945_s2 + $0x48] sm:$0xff] %vm3205_vm0, %v2986_v0  ;;  %2199 = vperm.xlu0 %3667, %v3972_v40   ;;  %4009 = vrcp.f32 %v1003_v2  ;;  %v1005_v9 = vadd.f32 1.0, %v3988_v3  ;;  %v3528_v40 = vmul.f32 -1.442695, %v103_v27 }
  0xaf   :  { %v3992_v10 = vpop.eup %3991  ;;  %3214 = vst.msk [vmem:[%s6945_s2 + $0x40] sm:$0xff] %vm3205_vm0, %v2985_v4  ;;  %v1895_v11 = vpop.permute.xlu1 %1894  ;;  %4011 = vrcp.f32 %v1006_v6  ;;  %v1008_v12 = vadd.f32 1.0, %v3990_v7  ;;  %v3534_v4 = vmul.f32 -1.442695, %v109_v56 }
  0xb0   :  { %v3994_v13 = vpop.eup %3993  ;;  %v2988_v14 = vmul.f32 %v1895_v11, %v1620_v5  ;;  %v1890_v15 = vpop.permute.xlu0 %1889  ;;  %2214 = vperm.xlu1 %3668, %v3974_v45   ;;  %4013 = vrcp.f32 %v1005_v9  ;;  %v1007_v16 = vadd.f32 1.0, %v3992_v10  ;;  %v114_v5 = vld [vmem:[%s6943_s0 + $0x328] sm:$0xff]  ;;  %v3537_v9 = vmul.f32 -1.442695, %v112_v60  ;;  %v113_v10 = vld [vmem:[%s6943_s0 + $0x320] sm:$0xff] }
  0xb1   :  { %v3996_v17 = vpop.eup %3995  ;;  %v2987_v18 = vmul.f32 %v1890_v15, %v1619_v8  ;;  %4015 = vrcp.f32 %v1008_v12  ;;  %v1010_v20 = vadd.f32 1.0, %v3994_v13  ;;  %v1628_v8 = vld [vmem:[%s6944_s1 + $0x98] sm:$0xff]  ;;  %v3536_v13 = vmul.f32 -1.442695, %v111_v1 }
  0xb2   :  { %v3998_v21 = vpop.eup %3997  ;;  %3217 = vst.msk [vmem:[%s6945_s2 + $0x58] sm:$0xff] %vm3205_vm0, %v2988_v14  ;;  %2209 = vperm.xlu0 %3667, %v3976_v48   ;;  %4017 = vrcp.f32 %v1007_v16  ;;  %v1009_v22 = vadd.f32 1.0, %v3996_v17  ;;  %v116_v14 = vld [vmem:[%s6943_s0 + $0x338] sm:$0xff]  ;;  %v1627_v17 = vld [vmem:[%s6944_s1 + $0x90] sm:$0xff] }
  0xb3   :  { %v4000_v23 = vpop.eup %3999  ;;  %3216 = vst.msk [vmem:[%s6945_s2 + $0x50] sm:$0xff] %vm3205_vm0, %v2987_v18  ;;  %v1905_v24 = vpop.permute.xlu1 %1904  ;;  %4019 = vrcp.f32 %v1010_v20  ;;  %v1012_v26 = vadd.f32 1.0, %v3998_v21  ;;  %v3539_v18 = vmul.f32 -1.442695, %v114_v5  ;;  %v1636_v1 = vld [vmem:[%s6944_s1 + $0xd8] sm:$0xff] }
  0xb4   :  { %v4002_v28 = vpop.eup %4001  ;;  %v2990_v29 = vmul.f32 %v1905_v24, %v1622_v19  ;;  %2224 = vperm.xlu1 %3668, %v4918_v51   ;;  %4021 = vrcp.f32 %v1009_v22  ;;  %v1011_v30 = vadd.f32 1.0, %v4000_v23  ;;  %v110_v51 = vld [vmem:[%s6943_s0 + $0x308] sm:$0xff]  ;;  %v115_v19 = vld [vmem:[%s6943_s0 + $0x330] sm:$0xff]  ;;  %v3538_v22 = vmul.f32 -1.442695, %v113_v10 }
  0xb5   :  { %v4004_v32 = vpop.eup %4003  ;;  %v1900_v33 = vpop.permute.xlu0 %1899  ;;  %4023 = vrcp.f32 %v1012_v26  ;;  %v1014_v35 = vadd.f32 1.0, %v4002_v28  ;;  %v3535_v0 = vmul.f32 -1.442695, %v110_v51  ;;  %v3541_v26 = vmul.f32 -1.442695, %v116_v14  ;;  %v1634_v51 = vld [vmem:[%s6944_s1 + $0xc8] sm:$0xff] }
  0xb6   :  { %v4006_v37 = vpop.eup %4005  ;;  %3219 = vst.msk [vmem:[%s6945_s2 + $0x68] sm:$0xff] %vm3205_vm0, %v2990_v29  ;;  %v2989_v38 = vmul.f32 %v1900_v33, %v1621_v25  ;;  %2219 = vperm.xlu0 %3667, %v4920_v55   ;;  %4025 = vrcp.f32 %v1011_v30  ;;  %v1013_v39 = vadd.f32 1.0, %v4004_v32  ;;  %v3533_v55 = vmul.f32 -1.442695, %v108_v41  ;;  %v1630_v25 = vld [vmem:[%s6944_s1 + $0xa8] sm:$0xff]  ;;  %v1629_v32 = vld [vmem:[%s6944_s1 + $0xa0] sm:$0xff] }
  0xb7   :  { %v4008_v42 = vpop.eup %4007  ;;  %v1915_v43 = vpop.permute.xlu1 %1914  ;;  %4027 = vrcp.f32 %v1014_v35  ;;  %v1016_v45 = vadd.f32 1.0, %v4006_v37  ;;  %v3540_v29 = vmul.f32 -1.442695, %v115_v19  ;;  %v1632_v37 = vld [vmem:[%s6944_s1 + $0xb8] sm:$0xff]  ;;  %v1635_v10 = vld [vmem:[%s6944_s1 + $0xd0] sm:$0xff] }
  0xb8   :  { %v4010_v48 = vpop.eup %4009  ;;  %3218 = vst.msk [vmem:[%s6945_s2 + $0x60] sm:$0xff] %vm3205_vm0, %v2989_v38  ;;  %v2992_v49 = vmul.f32 %v1915_v43, %v1624_v34  ;;  %2234 = vperm.xlu1 %3668, %v4008_v42   ;;  %4029 = vrcp.f32 %v1013_v39 }
  0xb9   :  { %v4012_v52 = vpop.eup %4011  ;;  %v1910_v53 = vpop.permute.xlu0 %1909  ;;  %4031 = vrcp.f32 %v1016_v45 }
  0xba   :  { %v4014_v57 = vpop.eup %4013  ;;  %3221 = vst.msk [vmem:[%s6945_s2 + $0x78] sm:$0xff] %vm3205_vm0, %v2992_v49  ;;  %v2991_v58 = vmul.f32 %v1910_v53, %v1623_v44  ;;  %2229 = vperm.xlu0 %3667, %v4010_v48   ;;  %4033 = vpow2.f32 %v3528_v40  ;;  %v1631_v44 = vld [vmem:[%s6944_s1 + $0xb0] sm:$0xff] }
  0xbb   :  { %v4016_v61 = vpop.eup %4015  ;;  %v1925_v62 = vpop.permute.xlu1 %1924  ;;  %4035 = vpow2.f32 %v3531_v46 }
  0xbc   :  { %v4018_v2 = vpop.eup %4017  ;;  %3220 = vst.msk [vmem:[%s6945_s2 + $0x70] sm:$0xff] %vm3205_vm0, %v2991_v58  ;;  %v2994_v3 = vmul.f32 %v1925_v62, %v1626_v54  ;;  %2244 = vperm.xlu1 %3668, %v4012_v52   ;;  %4037 = vpow2.f32 %v3530_v50  ;;  %v1633_v58 = vld [vmem:[%s6944_s1 + $0xc0] sm:$0xff] }
  0xbd   :  { %v4020_v6 = vpop.eup %4019  ;;  %v1920_v7 = vpop.permute.xlu0 %1919  ;;  %4039 = vpow2.f32 %v3533_v55 }
  0xbe   :  { %v4022_v11 = vpop.eup %4021  ;;  %3223 = vst.msk [vmem:[%s6945_s2 + $0x88] sm:$0xff] %vm3205_vm0, %v2994_v3  ;;  %v2993_v12 = vmul.f32 %v1920_v7, %v1625_v63  ;;  %2239 = vperm.xlu0 %3667, %v4014_v57   ;;  %4041 = vpow2.f32 %v3532_v59  ;;  %v118_v3 = vld [vmem:[%s6943_s0 + $0x348] sm:$0xff]  ;;  %v117_v7 = vld [vmem:[%s6943_s0 + $0x340] sm:$0xff] }
  0xbf   :  { %v4024_v15 = vpop.eup %4023  ;;  %v1935_v16 = vpop.permute.xlu1 %1934  ;;  %4043 = vpow2.f32 %v3535_v0 }
  0xc0   :  { %v4026_v20 = vpop.eup %4025  ;;  %3222 = vst.msk [vmem:[%s6945_s2 + $0x80] sm:$0xff] %vm3205_vm0, %v2993_v12  ;;  %v2996_v21 = vmul.f32 %v1935_v16, %v1628_v8  ;;  %2254 = vperm.xlu1 %3668, %v4016_v61   ;;  %4045 = vpow2.f32 %v3534_v4  ;;  %v120_v12 = vld [vmem:[%s6943_s0 + $0x358] sm:$0xff]  ;;  %v3543_v16 = vmul.f32 -1.442695, %v118_v3 }
  0xc1   :  { %v4028_v23 = vpop.eup %4027  ;;  %v1930_v24 = vpop.permute.xlu0 %1929  ;;  %4047 = vpow2.f32 %v3537_v9 }
  0xc2   :  { %v5050_v27 = vpop.eup %4029  ;;  %3225 = vst.msk [vmem:[%s6945_s2 + $0x98] sm:$0xff] %vm3205_vm0, %v2996_v21  ;;  %v2995_v28 = vmul.f32 %v1930_v24, %v1627_v17  ;;  %2249 = vperm.xlu0 %3667, %v4018_v2   ;;  %4049 = vpow2.f32 %v3536_v13  ;;  %v119_v17 = vld [vmem:[%s6943_s0 + $0x350] sm:$0xff] }
  0xc3   :  { %v5056_v30 = vpop.eup %4031  ;;  %v1945_v31 = vpop.permute.xlu1 %1944  ;;  %4051 = vpow2.f32 %v3539_v18 }
  0xc4   :  { %v4034_v33 = vpop.eup %4033  ;;  %3224 = vst.msk [vmem:[%s6945_s2 + $0x90] sm:$0xff] %vm3205_vm0, %v2995_v28  ;;  %v2998_v34 = vmul.f32 %v1945_v31, %v1630_v25  ;;  %2264 = vperm.xlu1 %3668, %v4020_v6   ;;  %4053 = vpow2.f32 %v3538_v22  ;;  %v3542_v22 = vmul.f32 -1.442695, %v117_v7  ;;  %v3544_v31 = vmul.f32 -1.442695, %v119_v17 }
  0xc5   :  { %v4036_v35 = vpop.eup %4035  ;;  %v1940_v36 = vpop.permute.xlu0 %1939  ;;  %v1015_v38 = vadd.f32 1.0, %v4034_v33  ;;  %4055 = vpow2.f32 %v3541_v26  ;;  %v3545_v26 = vmul.f32 -1.442695, %v120_v12 }
  0xc6   :  { %v4038_v39 = vpop.eup %4037  ;;  %3227 = vst.msk [vmem:[%s6945_s2 + $0xa8] sm:$0xff] %vm3205_vm0, %v2998_v34  ;;  %v2997_v40 = vmul.f32 %v1940_v36, %v1629_v32  ;;  %2259 = vperm.xlu0 %3667, %v4022_v11   ;;  %v1018_v41 = vadd.f32 1.0, %v4036_v35  ;;  %4057 = vpow2.f32 %v3540_v29  ;;  %v124_v32 = vld [vmem:[%s6943_s0 + $0x378] sm:$0xff]  ;;  %v123_v36 = vld [vmem:[%s6943_s0 + $0x370] sm:$0xff] }
  0xc7   :  { %v4040_v42 = vpop.eup %4039  ;;  %v1955_v43 = vpop.permute.xlu1 %1954  ;;  %4059 = vrcp.f32 %v1015_v38  ;;  %v1017_v45 = vadd.f32 1.0, %v4038_v39  ;;  %v1640_v39 = vld [vmem:[%s6944_s1 + $0xf8] sm:$0xff] }
  0xc8   :  { %v4042_v46 = vpop.eup %4041  ;;  %3226 = vst.msk [vmem:[%s6945_s2 + $0xa0] sm:$0xff] %vm3205_vm0, %v2997_v40  ;;  %v3000_v47 = vmul.f32 %v1955_v43, %v1632_v37  ;;  %2274 = vperm.xlu1 %3668, %v4024_v15   ;;  %4061 = vrcp.f32 %v1018_v41  ;;  %v1020_v48 = vadd.f32 1.0, %v4040_v42  ;;  %v126_v41 = vld [vmem:[%s6943_s0 + $0x388] sm:$0xff] }
  0xc9   :  { %v4044_v49 = vpop.eup %4043  ;;  %v1950_v50 = vpop.permute.xlu0 %1949  ;;  %4063 = vrcp.f32 %v1017_v45  ;;  %v1019_v52 = vadd.f32 1.0, %v4042_v46  ;;  %v125_v45 = vld [vmem:[%s6943_s0 + $0x380] sm:$0xff] }
  0xca   :  { %v4046_v53 = vpop.eup %4045  ;;  %3229 = vst.msk [vmem:[%s6945_s2 + $0xb8] sm:$0xff] %vm3205_vm0, %v3000_v47  ;;  %v2999_v54 = vmul.f32 %v1950_v50, %v1631_v44  ;;  %2269 = vperm.xlu0 %3667, %v4026_v20   ;;  %4065 = vrcp.f32 %v1020_v48  ;;  %v1022_v55 = vadd.f32 1.0, %v4044_v49  ;;  %v1638_v20 = vld [vmem:[%s6944_s1 + $0xe8] sm:$0xff]  ;;  %v3549_v44 = vmul.f32 -1.442695, %v124_v32  ;;  %v1639_v48 = vld [vmem:[%s6944_s1 + $0xf0] sm:$0xff] }
  0xcb   :  { %v4048_v56 = vpop.eup %4047  ;;  %v1965_v57 = vpop.permute.xlu1 %1964  ;;  %4067 = vrcp.f32 %v1019_v52  ;;  %v1021_v59 = vadd.f32 1.0, %v4046_v53  ;;  %v3548_v49 = vmul.f32 -1.442695, %v123_v36  ;;  %v128_v50 = vld [vmem:[%s6943_s0 + $0x398] sm:$0xff]  ;;  %v3551_v53 = vmul.f32 -1.442695, %v126_v41 }
  0xcc   :  { %v4050_v60 = vpop.eup %4049  ;;  %3228 = vst.msk [vmem:[%s6945_s2 + $0xb0] sm:$0xff] %vm3205_vm0, %v2999_v54  ;;  %v3002_v61 = vmul.f32 %v1965_v57, %v1634_v51  ;;  %2284 = vperm.xlu1 %3668, %v4028_v23   ;;  %4069 = vrcp.f32 %v1022_v55  ;;  %v1024_v62 = vadd.f32 1.0, %v4048_v56  ;;  %v122_v23 = vld [vmem:[%s6943_s0 + $0x368] sm:$0xff]  ;;  %v127_v54 = vld [vmem:[%s6943_s0 + $0x390] sm:$0xff] }
  0xcd   :  { %v4052_v63 = vpop.eup %4051  ;;  %v1960_v0 = vpop.permute.xlu0 %1959  ;;  %4071 = vrcp.f32 %v1021_v59  ;;  %v1023_v2 = vadd.f32 1.0, %v4050_v60  ;;  %v3547_v35 = vmul.f32 -1.442695, %v122_v23  ;;  %v1642_v57 = vld [vmem:[%s6944_s1 + $0x108] sm:$0xff]  ;;  %v1647_v41 = vld [vmem:[%s6944_s1 + $0x130] sm:$0xff] }
  0xce   :  { %v4054_v4 = vpop.eup %4053  ;;  %3231 = vst.msk [vmem:[%s6945_s2 + $0xc8] sm:$0xff] %vm3205_vm0, %v3002_v61  ;;  %v3001_v5 = vmul.f32 %v1960_v0, %v1633_v58  ;;  %2279 = vperm.xlu0 %3667, %v5050_v27   ;;  %4073 = vrcp.f32 %v1024_v62  ;;  %v1026_v6 = vadd.f32 1.0, %v4052_v63  ;;  %v121_v27 = vld [vmem:[%s6943_s0 + $0x360] sm:$0xff]  ;;  %v3550_v58 = vmul.f32 -1.442695, %v125_v45  ;;  %v130_v59 = vld [vmem:[%s6943_s0 + $0x3a8] sm:$0xff] }
  0xcf   :  { %v4056_v8 = vpop.eup %4055  ;;  %v1975_v9 = vpop.permute.xlu1 %1974  ;;  %4075 = vrcp.f32 %v1023_v2  ;;  %v1025_v11 = vadd.f32 1.0, %v4054_v4  ;;  %v3546_v40 = vmul.f32 -1.442695, %v121_v27  ;;  %v3553_v62 = vmul.f32 -1.442695, %v128_v50  ;;  %v1645_v27 = vld [vmem:[%s6944_s1 + $0x120] sm:$0xff] }
  0xd0   :  { %v4058_v13 = vpop.eup %4057  ;;  %3230 = vst.msk [vmem:[%s6945_s2 + $0xc0] sm:$0xff] %vm3205_vm0, %v3001_v5  ;;  %v3004_v14 = vmul.f32 %v1975_v9, %v1636_v1  ;;  %2294 = vperm.xlu1 %3668, %v5056_v30   ;;  %4077 = vrcp.f32 %v1026_v6  ;;  %v1028_v15 = vadd.f32 1.0, %v4056_v8  ;;  %v1637_v30 = vld [vmem:[%s6944_s1 + $0xe0] sm:$0xff]  ;;  %v3552_v2 = vmul.f32 -1.442695, %v127_v54  ;;  %v1644_v8 = vld [vmem:[%s6944_s1 + $0x118] sm:$0xff] }
  0xd1   :  { %v4060_v18 = vpop.eup %4059  ;;  %v1970_v19 = vpop.permute.xlu0 %1969  ;;  %4079 = vrcp.f32 %v1025_v11  ;;  %v1027_v21 = vadd.f32 1.0, %v4058_v13  ;;  %v1641_v1 = vld [vmem:[%s6944_s1 + $0x100] sm:$0xff]  ;;  %v3555_v5 = vmul.f32 -1.442695, %v130_v59  ;;  %v1643_v13 = vld [vmem:[%s6944_s1 + $0x110] sm:$0xff]  ;;  %v1650_v50 = vld [vmem:[%s6944_s1 + $0x148] sm:$0xff] }
  0xd2   :  { %v4062_v24 = vpop.eup %4061  ;;  %3233 = vst.msk [vmem:[%s6945_s2 + $0xd8] sm:$0xff] %vm3205_vm0, %v3004_v14  ;;  %v3003_v25 = vmul.f32 %v1970_v19, %v1635_v10  ;;  %2289 = vperm.xlu0 %3667, %v4060_v18   ;;  %4081 = vrcp.f32 %v1028_v15 }
  0xd3   :  { %v4064_v28 = vpop.eup %4063  ;;  %v1985_v29 = vpop.permute.xlu1 %1984  ;;  %4083 = vrcp.f32 %v1027_v21 }
  0xd4   :  { %v4066_v33 = vpop.eup %4065  ;;  %3232 = vst.msk [vmem:[%s6945_s2 + $0xd0] sm:$0xff] %vm3205_vm0, %v3003_v25  ;;  %v3006_v34 = vmul.f32 %v1985_v29, %v1638_v20  ;;  %2304 = vperm.xlu1 %3668, %v4062_v24   ;;  %4085 = vpow2.f32 %v3543_v16  ;;  %v1646_v20 = vld [vmem:[%s6944_s1 + $0x128] sm:$0xff] }
  0xd5   :  { %v4068_v37 = vpop.eup %4067  ;;  %v1980_v38 = vpop.permute.xlu0 %1979  ;;  %4087 = vpow2.f32 %v3542_v22 }
  0xd6   :  { %v4070_v42 = vpop.eup %4069  ;;  %3235 = vst.msk [vmem:[%s6945_s2 + $0xe8] sm:$0xff] %vm3205_vm0, %v3006_v34  ;;  %v3005_v43 = vmul.f32 %v1980_v38, %v1637_v30  ;;  %2299 = vperm.xlu0 %3667, %v4064_v28   ;;  %4089 = vpow2.f32 %v3545_v26  ;;  %v1648_v34 = vld [vmem:[%s6944_s1 + $0x138] sm:$0xff] }
  0xd7   :  { %v4072_v46 = vpop.eup %4071  ;;  %v1995_v47 = vpop.permute.xlu1 %1994  ;;  %4091 = vpow2.f32 %v3544_v31 }
  0xd8   :  { %v4074_v51 = vpop.eup %4073  ;;  %3234 = vst.msk [vmem:[%s6945_s2 + $0xe0] sm:$0xff] %vm3205_vm0, %v3005_v43  ;;  %v3008_v52 = vmul.f32 %v1995_v47, %v1640_v39  ;;  %2314 = vperm.xlu1 %3668, %v4066_v33   ;;  %4093 = vpow2.f32 %v3547_v35  ;;  %v129_v43 = vld [vmem:[%s6943_s0 + $0x3a0] sm:$0xff]  ;;  %v132_v47 = vld [vmem:[%s6943_s0 + $0x3b8] sm:$0xff] }
  0xd9   :  { %v4076_v55 = vpop.eup %4075  ;;  %v1990_v56 = vpop.permute.xlu0 %1989  ;;  %4095 = vpow2.f32 %v3546_v40 }
  0xda   :  { %v4078_v60 = vpop.eup %4077  ;;  %3237 = vst.msk [vmem:[%s6945_s2 + $0xf8] sm:$0xff] %vm3205_vm0, %v3008_v52  ;;  %v3007_v61 = vmul.f32 %v1990_v56, %v1639_v48  ;;  %2309 = vperm.xlu0 %3667, %v4068_v37   ;;  %4097 = vpow2.f32 %v3549_v44  ;;  %v131_v52 = vld [vmem:[%s6943_s0 + $0x3b0] sm:$0xff]  ;;  %v3554_v56 = vmul.f32 -1.442695, %v129_v43 }
  0xdb   :  { %v4080_v63 = vpop.eup %4079  ;;  %v2005_v0 = vpop.permute.xlu1 %2004  ;;  %4099 = vpow2.f32 %v3548_v49 }
  0xdc   :  { %v5186_v3 = vpop.eup %4081  ;;  %3236 = vst.msk [vmem:[%s6945_s2 + $0xf0] sm:$0xff] %vm3205_vm0, %v3007_v61  ;;  %v3010_v4 = vmul.f32 %v2005_v0, %v1642_v57  ;;  %2324 = vperm.xlu1 %3668, %v4070_v42   ;;  %4101 = vpow2.f32 %v3551_v53  ;;  %v134_v57 = vld [vmem:[%s6943_s0 + $0x3c8] sm:$0xff] }
  0xdd   :  { %v5192_v6 = vpop.eup %4083  ;;  %v2000_v7 = vpop.permute.xlu0 %1999  ;;  %4103 = vpow2.f32 %v3550_v58 }
  0xde   :  { %v4086_v9 = vpop.eup %4085  ;;  %3239 = vst.msk [vmem:[%s6945_s2 + $0x108] sm:$0xff] %vm3205_vm0, %v3010_v4  ;;  %v3009_v10 = vmul.f32 %v2000_v7, %v1641_v1  ;;  %2319 = vperm.xlu0 %3667, %v4072_v46   ;;  %4105 = vpow2.f32 %v3553_v62  ;;  %v3557_v62 = vmul.f32 -1.442695, %v132_v47  ;;  %v3559_v7 = vmul.f32 -1.442695, %v134_v57 }
  0xdf   :  { %v4088_v11 = vpop.eup %4087  ;;  %v2015_v12 = vpop.permute.xlu1 %2014  ;;  %v1030_v14 = vadd.f32 1.0, %v4086_v9  ;;  %4107 = vpow2.f32 %v3552_v2  ;;  %v3556_v2 = vmul.f32 -1.442695, %v131_v52 }
  0xe0   :  { %v4090_v15 = vpop.eup %4089  ;;  %3238 = vst.msk [vmem:[%s6945_s2 + $0x100] sm:$0xff] %vm3205_vm0, %v3009_v10  ;;  %v3012_v16 = vmul.f32 %v2015_v12, %v1644_v8  ;;  %2334 = vperm.xlu1 %3668, %v4074_v51   ;;  %v1029_v17 = vadd.f32 1.0, %v4088_v11  ;;  %4109 = vpow2.f32 %v3555_v5  ;;  %v135_v8 = vld [vmem:[%s6943_s0 + $0x3d0] sm:$0xff]  ;;  %v138_v12 = vld [vmem:[%s6943_s0 + $0x3e8] sm:$0xff] }
  0xe1   :  { %v4092_v18 = vpop.eup %4091  ;;  %v2010_v19 = vpop.permute.xlu0 %2009  ;;  %4111 = vrcp.f32 %v1030_v14  ;;  %v1032_v21 = vadd.f32 1.0, %v4090_v15  ;;  %v1651_v15 = vld [vmem:[%s6944_s1 + $0x150] sm:$0xff] }
  0xe2   :  { %v4094_v22 = vpop.eup %4093  ;;  %3241 = vst.msk [vmem:[%s6945_s2 + $0x118] sm:$0xff] %vm3205_vm0, %v3012_v16  ;;  %v3011_v23 = vmul.f32 %v2010_v19, %v1643_v13  ;;  %2329 = vperm.xlu0 %3667, %v4076_v55   ;;  %4113 = vrcp.f32 %v1029_v17  ;;  %v1031_v24 = vadd.f32 1.0, %v4092_v18  ;;  %v137_v17 = vld [vmem:[%s6943_s0 + $0x3e0] sm:$0xff] }
  0xe3   :  { %v4096_v25 = vpop.eup %4095  ;;  %v2025_v26 = vpop.permute.xlu1 %2024  ;;  %4115 = vrcp.f32 %v1032_v21  ;;  %v1034_v28 = vadd.f32 1.0, %v4094_v22  ;;  %v140_v21 = vld [vmem:[%s6943_s0 + $0x3f8] sm:$0xff] }
  0xe4   :  { %v4098_v29 = vpop.eup %4097  ;;  %3240 = vst.msk [vmem:[%s6945_s2 + $0x110] sm:$0xff] %vm3205_vm0, %v3011_v23  ;;  %v3014_v30 = vmul.f32 %v2025_v26, %v1646_v20  ;;  %2344 = vperm.xlu1 %3668, %v4078_v60   ;;  %4117 = vrcp.f32 %v1031_v24  ;;  %v1033_v31 = vadd.f32 1.0, %v4096_v25  ;;  %v1649_v60 = vld [vmem:[%s6944_s1 + $0x140] sm:$0xff]  ;;  %v3560_v20 = vmul.f32 -1.442695, %v135_v8  ;;  %v1654_v24 = vld [vmem:[%s6944_s1 + $0x168] sm:$0xff] }
  0xe5   :  { %v4100_v32 = vpop.eup %4099  ;;  %v2020_v33 = vpop.permute.xlu0 %2019  ;;  %4119 = vrcp.f32 %v1034_v28  ;;  %v1036_v35 = vadd.f32 1.0, %v4098_v29  ;;  %v3563_v25 = vmul.f32 -1.442695, %v138_v12  ;;  %v139_v26 = vld [vmem:[%s6943_s0 + $0x3f0] sm:$0xff]  ;;  %v3562_v29 = vmul.f32 -1.442695, %v137_v17 }
  0xe6   :  { %v4102_v36 = vpop.eup %4101  ;;  %3243 = vst.msk [vmem:[%s6945_s2 + $0x128] sm:$0xff] %vm3205_vm0, %v3014_v30  ;;  %v3013_v37 = vmul.f32 %v2020_v33, %v1645_v27  ;;  %2339 = vperm.xlu0 %3667, %v4080_v63   ;;  %4121 = vrcp.f32 %v1033_v31  ;;  %v1035_v38 = vadd.f32 1.0, %v4100_v32  ;;  %v133_v63 = vld [vmem:[%s6943_s0 + $0x3c0] sm:$0xff]  ;;  %v142_v30 = vld [vmem:[%s6943_s0 + $0x408] sm:$0xff] }
  0xe7   :  { %v4104_v39 = vpop.eup %4103  ;;  %v2035_v40 = vpop.permute.xlu1 %2034  ;;  %4123 = vrcp.f32 %v1036_v35  ;;  %v1038_v42 = vadd.f32 1.0, %v4102_v36  ;;  %v3558_v11 = vmul.f32 -1.442695, %v133_v63  ;;  %v1653_v33 = vld [vmem:[%s6944_s1 + $0x160] sm:$0xff]  ;;  %v1662_v17 = vld [vmem:[%s6944_s1 + $0x1a8] sm:$0xff] }
  0xe8   :  { %v4106_v44 = vpop.eup %4105  ;;  %3242 = vst.msk [vmem:[%s6945_s2 + $0x120] sm:$0xff] %vm3205_vm0, %v3013_v37  ;;  %v3016_v45 = vmul.f32 %v2035_v40, %v1648_v34  ;;  %2354 = vperm.xlu1 %3668, %v5186_v3   ;;  %4125 = vrcp.f32 %v1035_v38  ;;  %v1037_v46 = vadd.f32 1.0, %v4104_v39  ;;  %v136_v3 = vld [vmem:[%s6943_s0 + $0x3d8] sm:$0xff]  ;;  %v3565_v34 = vmul.f32 -1.442695, %v140_v21  ;;  %v141_v35 = vld [vmem:[%s6943_s0 + $0x400] sm:$0xff] }
  0xe9   :  { %v4108_v48 = vpop.eup %4107  ;;  %v2030_v49 = vpop.permute.xlu0 %2029  ;;  %4127 = vrcp.f32 %v1038_v42  ;;  %v1040_v51 = vadd.f32 1.0, %v4106_v44  ;;  %v3561_v16 = vmul.f32 -1.442695, %v136_v3  ;;  %v3564_v38 = vmul.f32 -1.442695, %v139_v26  ;;  %v1660_v3 = vld [vmem:[%s6944_s1 + $0x198] sm:$0xff] }
  0xea   :  { %v4110_v53 = vpop.eup %4109  ;;  %3245 = vst.msk [vmem:[%s6945_s2 + $0x138] sm:$0xff] %vm3205_vm0, %v3016_v45  ;;  %v3015_v54 = vmul.f32 %v2030_v49, %v1647_v41  ;;  %2349 = vperm.xlu0 %3667, %v5192_v6   ;;  %4129 = vrcp.f32 %v1037_v46  ;;  %v1039_v55 = vadd.f32 1.0, %v4108_v48  ;;  %v1652_v6 = vld [vmem:[%s6944_s1 + $0x158] sm:$0xff]  ;;  %v3567_v42 = vmul.f32 -1.442695, %v142_v30  ;;  %v1655_v48 = vld [vmem:[%s6944_s1 + $0x170] sm:$0xff] }
  0xeb   :  { %v4112_v58 = vpop.eup %4111  ;;  %v2045_v59 = vpop.permute.xlu1 %2044  ;;  %4131 = vrcp.f32 %v1040_v51  ;;  %v1042_v61 = vadd.f32 1.0, %v4110_v53  ;;  %v1656_v41 = vld [vmem:[%s6944_s1 + $0x178] sm:$0xff]  ;;  %v3566_v45 = vmul.f32 -1.442695, %v141_v35  ;;  %v1658_v53 = vld [vmem:[%s6944_s1 + $0x188] sm:$0xff]  ;;  %v1661_v26 = vld [vmem:[%s6944_s1 + $0x1a0] sm:$0xff] }
  0xec   :  { %v4114_v0 = vpop.eup %4113  ;;  %3244 = vst.msk [vmem:[%s6945_s2 + $0x130] sm:$0xff] %vm3205_vm0, %v3015_v54  ;;  %v3018_v1 = vmul.f32 %v2045_v59, %v1650_v50  ;;  %2364 = vperm.xlu1 %3668, %v4112_v58   ;;  %4133 = vrcp.f32 %v1039_v55 }
  0xed   :  { %v4116_v4 = vpop.eup %4115  ;;  %v2040_v5 = vpop.permute.xlu0 %2039  ;;  %4135 = vrcp.f32 %v1042_v61 }
  0xee   :  { %v4118_v9 = vpop.eup %4117  ;;  %3247 = vst.msk [vmem:[%s6945_s2 + $0x148] sm:$0xff] %vm3205_vm0, %v3018_v1  ;;  %v3017_v10 = vmul.f32 %v2040_v5, %v1649_v60  ;;  %2359 = vperm.xlu0 %3667, %v4114_v0   ;;  %4137 = vpow2.f32 %v3554_v56  ;;  %v1657_v60 = vld [vmem:[%s6944_s1 + $0x180] sm:$0xff] }
  0xef   :  { %v4120_v13 = vpop.eup %4119  ;;  %v2055_v14 = vpop.permute.xlu1 %2054  ;;  %4139 = vpow2.f32 %v3557_v62 }
  0xf0   :  { %v4122_v18 = vpop.eup %4121  ;;  %3246 = vst.msk [vmem:[%s6945_s2 + $0x140] sm:$0xff] %vm3205_vm0, %v3017_v10  ;;  %v3020_v19 = vmul.f32 %v2055_v14, %v1652_v6  ;;  %2374 = vperm.xlu1 %3668, %v4116_v4   ;;  %4141 = vpow2.f32 %v3556_v2  ;;  %v1659_v10 = vld [vmem:[%s6944_s1 + $0x190] sm:$0xff] }
  0xf1   :  { %v4124_v22 = vpop.eup %4123  ;;  %v2050_v23 = vpop.permute.xlu0 %2049  ;;  %4143 = vpow2.f32 %v3559_v7 }
  0xf2   :  { %v4126_v27 = vpop.eup %4125  ;;  %3249 = vst.msk [vmem:[%s6945_s2 + $0x158] sm:$0xff] %vm3205_vm0, %v3020_v19  ;;  %v3019_v28 = vmul.f32 %v2050_v23, %v1651_v15  ;;  %2369 = vperm.xlu0 %3667, %v4118_v9   ;;  %4145 = vpow2.f32 %v3558_v11  ;;  %v144_v19 = vld [vmem:[%s6943_s0 + $0x418] sm:$0xff]  ;;  %v143_v23 = vld [vmem:[%s6943_s0 + $0x410] sm:$0xff] }
  0xf3   :  { %v4128_v31 = vpop.eup %4127  ;;  %v2065_v32 = vpop.permute.xlu1 %2064  ;;  %4147 = vpow2.f32 %v3561_v16 }
  0xf4   :  { %v4130_v36 = vpop.eup %4129  ;;  %3248 = vst.msk [vmem:[%s6945_s2 + $0x150] sm:$0xff] %vm3205_vm0, %v3019_v28  ;;  %v3022_v37 = vmul.f32 %v2065_v32, %v1654_v24  ;;  %2384 = vperm.xlu1 %3668, %v4120_v13   ;;  %4149 = vpow2.f32 %v3560_v20  ;;  %v146_v28 = vld [vmem:[%s6943_s0 + $0x428] sm:$0xff]  ;;  %v3569_v32 = vmul.f32 -1.442695, %v144_v19 }
  0xf5   :  { %v4132_v39 = vpop.eup %4131  ;;  %v2060_v40 = vpop.permute.xlu0 %2059  ;;  %4151 = vpow2.f32 %v3563_v25 }
  0xf6   :  { %v5322_v43 = vpop.eup %4133  ;;  %3251 = vst.msk [vmem:[%s6945_s2 + $0x168] sm:$0xff] %vm3205_vm0, %v3022_v37  ;;  %v3021_v44 = vmul.f32 %v2060_v40, %v1653_v33  ;;  %2379 = vperm.xlu0 %3667, %v4122_v18   ;;  %4153 = vpow2.f32 %v3562_v29  ;;  %v145_v33 = vld [vmem:[%s6943_s0 + $0x420] sm:$0xff] }
  0xf7   :  { %v5328_v46 = vpop.eup %4135  ;;  %v2075_v47 = vpop.permute.xlu1 %2074  ;;  %4155 = vpow2.f32 %v3565_v34 }
  0xf8   :  { %v4138_v49 = vpop.eup %4137  ;;  %3250 = vst.msk [vmem:[%s6945_s2 + $0x160] sm:$0xff] %vm3205_vm0, %v3021_v44  ;;  %v3024_v50 = vmul.f32 %v2075_v47, %v1656_v41  ;;  %2394 = vperm.xlu1 %3668, %v4124_v22   ;;  %4157 = vpow2.f32 %v3564_v38  ;;  %v3568_v38 = vmul.f32 -1.442695, %v143_v23  ;;  %v3570_v47 = vmul.f32 -1.442695, %v145_v33 }
  0xf9   :  { %v4140_v51 = vpop.eup %4139  ;;  %v2070_v52 = vpop.permute.xlu0 %2069  ;;  %v1041_v54 = vadd.f32 1.0, %v4138_v49  ;;  %4159 = vpow2.f32 %v3567_v42  ;;  %v3571_v42 = vmul.f32 -1.442695, %v146_v28 }
  0xfa   :  { %v4142_v55 = vpop.eup %4141  ;;  %3253 = vst.msk [vmem:[%s6945_s2 + $0x178] sm:$0xff] %vm3205_vm0, %v3024_v50  ;;  %v3023_v56 = vmul.f32 %v2070_v52, %v1655_v48  ;;  %2389 = vperm.xlu0 %3667, %v4126_v27   ;;  %v1044_v57 = vadd.f32 1.0, %v4140_v51  ;;  %4161 = vpow2.f32 %v3566_v45  ;;  %v150_v48 = vld [vmem:[%s6943_s0 + $0x448] sm:$0xff]  ;;  %v149_v52 = vld [vmem:[%s6943_s0 + $0x440] sm:$0xff] }
  0xfb   :  { %v4144_v58 = vpop.eup %4143  ;;  %v2085_v59 = vpop.permute.xlu1 %2084  ;;  %4163 = vrcp.f32 %v1041_v54  ;;  %v1043_v61 = vadd.f32 1.0, %v4142_v55  ;;  %v1666_v55 = vld [vmem:[%s6944_s1 + $0x1c8] sm:$0xff] }
  0xfc   :  { %v4146_v62 = vpop.eup %4145  ;;  %3252 = vst.msk [vmem:[%s6945_s2 + $0x170] sm:$0xff] %vm3205_vm0, %v3023_v56  ;;  %v3026_v63 = vmul.f32 %v2085_v59, %v1658_v53  ;;  %2404 = vperm.xlu1 %3668, %v4128_v31   ;;  %4165 = vrcp.f32 %v1044_v57  ;;  %v1046_v0 = vadd.f32 1.0, %v4144_v58  ;;  %v152_v57 = vld [vmem:[%s6943_s0 + $0x458] sm:$0xff] }
  0xfd   :  { %v4148_v1 = vpop.eup %4147  ;;  %v2080_v2 = vpop.permute.xlu0 %2079  ;;  %4167 = vrcp.f32 %v1043_v61  ;;  %v1045_v4 = vadd.f32 1.0, %v4146_v62  ;;  %v151_v61 = vld [vmem:[%s6943_s0 + $0x450] sm:$0xff] }
  0xfe   :  { %v4150_v5 = vpop.eup %4149  ;;  %3255 = vst.msk [vmem:[%s6945_s2 + $0x188] sm:$0xff] %vm3205_vm0, %v3026_v63  ;;  %v3025_v6 = vmul.f32 %v2080_v2, %v1657_v60  ;;  %2399 = vperm.xlu0 %3667, %v4130_v36   ;;  %4169 = vrcp.f32 %v1046_v0  ;;  %v1048_v7 = vadd.f32 1.0, %v4148_v1  ;;  %v1664_v36 = vld [vmem:[%s6944_s1 + $0x1b8] sm:$0xff]  ;;  %v3575_v60 = vmul.f32 -1.442695, %v150_v48  ;;  %v1665_v0 = vld [vmem:[%s6944_s1 + $0x1c0] sm:$0xff] }
  0xff   :  { %v4152_v8 = vpop.eup %4151  ;;  %v2095_v9 = vpop.permute.xlu1 %2094  ;;  %4171 = vrcp.f32 %v1045_v4  ;;  %v1047_v11 = vadd.f32 1.0, %v4150_v5  ;;  %v3574_v1 = vmul.f32 -1.442695, %v149_v52  ;;  %v154_v2 = vld [vmem:[%s6943_s0 + $0x468] sm:$0xff]  ;;  %v3577_v5 = vmul.f32 -1.442695, %v152_v57 }
 0x100   :  { %v4154_v12 = vpop.eup %4153  ;;  %3254 = vst.msk [vmem:[%s6945_s2 + $0x180] sm:$0xff] %vm3205_vm0, %v3025_v6  ;;  %v3028_v13 = vmul.f32 %v2095_v9, %v1660_v3  ;;  %2414 = vperm.xlu1 %3668, %v4132_v39   ;;  %4173 = vrcp.f32 %v1048_v7  ;;  %v1050_v14 = vadd.f32 1.0, %v4152_v8  ;;  %v148_v39 = vld [vmem:[%s6943_s0 + $0x438] sm:$0xff]  ;;  %v153_v6 = vld [vmem:[%s6943_s0 + $0x460] sm:$0xff] }
 0x101   :  { %v4156_v15 = vpop.eup %4155  ;;  %v2090_v16 = vpop.permute.xlu0 %2089  ;;  %4175 = vrcp.f32 %v1047_v11  ;;  %v1049_v18 = vadd.f32 1.0, %v4154_v12  ;;  %v3573_v51 = vmul.f32 -1.442695, %v148_v39  ;;  %v1668_v9 = vld [vmem:[%s6944_s1 + $0x1d8] sm:$0xff]  ;;  %v1673_v57 = vld [vmem:[%s6944_s1 + $0x200] sm:$0xff] }
 0x102   :  { %v4158_v20 = vpop.eup %4157  ;;  %3257 = vst.msk [vmem:[%s6945_s2 + $0x198] sm:$0xff] %vm3205_vm0, %v3028_v13  ;;  %v3027_v21 = vmul.f32 %v2090_v16, %v1659_v10  ;;  %2409 = vperm.xlu0 %3667, %v5322_v43   ;;  %4177 = vrcp.f32 %v1050_v14  ;;  %v1052_v22 = vadd.f32 1.0, %v4156_v15  ;;  %v147_v43 = vld [vmem:[%s6943_s0 + $0x430] sm:$0xff]  ;;  %v3576_v10 = vmul.f32 -1.442695, %v151_v61  ;;  %v156_v11 = vld [vmem:[%s6943_s0 + $0x478] sm:$0xff] }
 0x103   :  { %v4160_v24 = vpop.eup %4159  ;;  %v2105_v25 = vpop.permute.xlu1 %2104  ;;  %4179 = vrcp.f32 %v1049_v18  ;;  %v1051_v27 = vadd.f32 1.0, %v4158_v20  ;;  %v3572_v56 = vmul.f32 -1.442695, %v147_v43  ;;  %v3579_v14 = vmul.f32 -1.442695, %v154_v2  ;;  %v1671_v43 = vld [vmem:[%s6944_s1 + $0x1f0] sm:$0xff] }
 0x104   :  { %v4162_v29 = vpop.eup %4161  ;;  %3256 = vst.msk [vmem:[%s6945_s2 + $0x190] sm:$0xff] %vm3205_vm0, %v3027_v21  ;;  %v3030_v30 = vmul.f32 %v2105_v25, %v1662_v17  ;;  %2424 = vperm.xlu1 %3668, %v5328_v46   ;;  %4181 = vrcp.f32 %v1052_v22  ;;  %v1054_v31 = vadd.f32 1.0, %v4160_v24  ;;  %v1663_v46 = vld [vmem:[%s6944_s1 + $0x1b0] sm:$0xff]  ;;  %v3578_v18 = vmul.f32 -1.442695, %v153_v6  ;;  %v1670_v24 = vld [vmem:[%s6944_s1 + $0x1e8] sm:$0xff] }
 0x105   :  { %v4164_v34 = vpop.eup %4163  ;;  %v2100_v35 = vpop.permute.xlu0 %2099  ;;  %4183 = vrcp.f32 %v1051_v27  ;;  %v1053_v37 = vadd.f32 1.0, %v4162_v29  ;;  %v1667_v17 = vld [vmem:[%s6944_s1 + $0x1d0] sm:$0xff]  ;;  %v3581_v21 = vmul.f32 -1.442695, %v156_v11  ;;  %v1669_v29 = vld [vmem:[%s6944_s1 + $0x1e0] sm:$0xff]  ;;  %v1676_v2 = vld [vmem:[%s6944_s1 + $0x218] sm:$0xff] }
 0x106   :  { %v4166_v40 = vpop.eup %4165  ;;  %3259 = vst.msk [vmem:[%s6945_s2 + $0x1a8] sm:$0xff] %vm3205_vm0, %v3030_v30  ;;  %v3029_v41 = vmul.f32 %v2100_v35, %v1661_v26  ;;  %2419 = vperm.xlu0 %3667, %v4164_v34   ;;  %4185 = vrcp.f32 %v1054_v31 }
 0x107   :  { %v4168_v44 = vpop.eup %4167  ;;  %v2115_v45 = vpop.permute.xlu1 %2114  ;;  %4187 = vrcp.f32 %v1053_v37 }
 0x108   :  { %v4170_v49 = vpop.eup %4169  ;;  %3258 = vst.msk [vmem:[%s6945_s2 + $0x1a0] sm:$0xff] %vm3205_vm0, %v3029_v41  ;;  %v3032_v50 = vmul.f32 %v2115_v45, %v1664_v36  ;;  %2434 = vperm.xlu1 %3668, %v4166_v40   ;;  %4189 = vpow2.f32 %v3569_v32  ;;  %v1672_v36 = vld [vmem:[%s6944_s1 + $0x1f8] sm:$0xff] }
 0x109   :  { %v4172_v53 = vpop.eup %4171  ;;  %v2110_v54 = vpop.permute.xlu0 %2109  ;;  %4191 = vpow2.f32 %v3568_v38 }
 0x10a   :  { %v4174_v58 = vpop.eup %4173  ;;  %3261 = vst.msk [vmem:[%s6945_s2 + $0x1b8] sm:$0xff] %vm3205_vm0, %v3032_v50  ;;  %v3031_v59 = vmul.f32 %v2110_v54, %v1663_v46  ;;  %2429 = vperm.xlu0 %3667, %v4168_v44   ;;  %4193 = vpow2.f32 %v3571_v42  ;;  %v1674_v50 = vld [vmem:[%s6944_s1 + $0x208] sm:$0xff] }
 0x10b   :  { %v4176_v62 = vpop.eup %4175  ;;  %v2125_v63 = vpop.permute.xlu1 %2124  ;;  %4195 = vpow2.f32 %v3570_v47 }
 0x10c   :  { %v4178_v3 = vpop.eup %4177  ;;  %3260 = vst.msk [vmem:[%s6945_s2 + $0x1b0] sm:$0xff] %vm3205_vm0, %v3031_v59  ;;  %v3034_v4 = vmul.f32 %v2125_v63, %v1666_v55  ;;  %2444 = vperm.xlu1 %3668, %v4170_v49   ;;  %4197 = vpow2.f32 %v3573_v51  ;;  %v155_v59 = vld [vmem:[%s6943_s0 + $0x470] sm:$0xff]  ;;  %v158_v63 = vld [vmem:[%s6943_s0 + $0x488] sm:$0xff] }
 0x10d   :  { %v4180_v7 = vpop.eup %4179  ;;  %v2120_v8 = vpop.permute.xlu0 %2119  ;;  %4199 = vpow2.f32 %v3572_v56 }
 0x10e   :  { %v4182_v12 = vpop.eup %4181  ;;  %3263 = vst.msk [vmem:[%s6945_s2 + $0x1c8] sm:$0xff] %vm3205_vm0, %v3034_v4  ;;  %v3033_v13 = vmul.f32 %v2120_v8, %v1665_v0  ;;  %2439 = vperm.xlu0 %3667, %v4172_v53   ;;  %4201 = vpow2.f32 %v3575_v60  ;;  %v157_v4 = vld [vmem:[%s6943_s0 + $0x480] sm:$0xff]  ;;  %v3580_v8 = vmul.f32 -1.442695, %v155_v59 }
 0x10f   :  { %v4184_v15 = vpop.eup %4183  ;;  %v2135_v16 = vpop.permute.xlu1 %2134  ;;  %4203 = vpow2.f32 %v3574_v1 }
 0x110   :  { %v5458_v19 = vpop.eup %4185  ;;  %3262 = vst.msk [vmem:[%s6945_s2 + $0x1c0] sm:$0xff] %vm3205_vm0, %v3033_v13  ;;  %v3036_v20 = vmul.f32 %v2135_v16, %v1668_v9  ;;  %2454 = vperm.xlu1 %3668, %v4174_v58   ;;  %4205 = vpow2.f32 %v3577_v5  ;;  %v160_v9 = vld [vmem:[%s6943_s0 + $0x498] sm:$0xff] }
 0x111   :  { %v5464_v22 = vpop.eup %4187  ;;  %v2130_v23 = vpop.permute.xlu0 %2129  ;;  %4207 = vpow2.f32 %v3576_v10 }
 0x112   :  { %v4190_v25 = vpop.eup %4189  ;;  %3265 = vst.msk [vmem:[%s6945_s2 + $0x1d8] sm:$0xff] %vm3205_vm0, %v3036_v20  ;;  %v3035_v26 = vmul.f32 %v2130_v23, %v1667_v17  ;;  %2449 = vperm.xlu0 %3667, %v4176_v62   ;;  %4209 = vpow2.f32 %v3579_v14  ;;  %v3583_v14 = vmul.f32 -1.442695, %v158_v63  ;;  %v3585_v23 = vmul.f32 -1.442695, %v160_v9 }
 0x113   :  { %v4192_v27 = vpop.eup %4191  ;;  %v2145_v28 = vpop.permute.xlu1 %2144  ;;  %v1056_v30 = vadd.f32 1.0, %v4190_v25  ;;  %4211 = vpow2.f32 %v3578_v18  ;;  %v3582_v18 = vmul.f32 -1.442695, %v157_v4 }
 0x114   :  { %v4194_v31 = vpop.eup %4193  ;;  %3264 = vst.msk [vmem:[%s6945_s2 + $0x1d0] sm:$0xff] %vm3205_vm0, %v3035_v26  ;;  %v3038_v32 = vmul.f32 %v2145_v28, %v1670_v24  ;;  %2464 = vperm.xlu1 %3668, %v4178_v3   ;;  %v1055_v33 = vadd.f32 1.0, %v4192_v27  ;;  %4213 = vpow2.f32 %v3581_v21  ;;  %v161_v24 = vld [vmem:[%s6943_s0 + $0x4a0] sm:$0xff]  ;;  %v164_v28 = vld [vmem:[%s6943_s0 + $0x4b8] sm:$0xff] }
 0x115   :  { %v4196_v34 = vpop.eup %4195  ;;  %v2140_v35 = vpop.permute.xlu0 %2139  ;;  %4215 = vrcp.f32 %v1056_v30  ;;  %v1058_v37 = vadd.f32 1.0, %v4194_v31  ;;  %v1677_v31 = vld [vmem:[%s6944_s1 + $0x220] sm:$0xff] }
 0x116   :  { %v4198_v38 = vpop.eup %4197  ;;  %3267 = vst.msk [vmem:[%s6945_s2 + $0x1e8] sm:$0xff] %vm3205_vm0, %v3038_v32  ;;  %v3037_v39 = vmul.f32 %v2140_v35, %v1669_v29  ;;  %2459 = vperm.xlu0 %3667, %v4180_v7   ;;  %4217 = vrcp.f32 %v1055_v33  ;;  %v1057_v40 = vadd.f32 1.0, %v4196_v34  ;;  %v163_v33 = vld [vmem:[%s6943_s0 + $0x4b0] sm:$0xff] }
 0x117   :  { %v4200_v41 = vpop.eup %4199  ;;  %v2155_v42 = vpop.permute.xlu1 %2154  ;;  %4219 = vrcp.f32 %v1058_v37  ;;  %v1060_v44 = vadd.f32 1.0, %v4198_v38  ;;  %v166_v37 = vld [vmem:[%s6943_s0 + $0x4c8] sm:$0xff] }
 0x118   :  { %v4202_v45 = vpop.eup %4201  ;;  %3266 = vst.msk [vmem:[%s6945_s2 + $0x1e0] sm:$0xff] %vm3205_vm0, %v3037_v39  ;;  %v3040_v46 = vmul.f32 %v2155_v42, %v1672_v36  ;;  %2474 = vperm.xlu1 %3668, %v4182_v12   ;;  %4221 = vrcp.f32 %v1057_v40  ;;  %v1059_v47 = vadd.f32 1.0, %v4200_v41  ;;  %v1675_v12 = vld [vmem:[%s6944_s1 + $0x210] sm:$0xff]  ;;  %v3586_v36 = vmul.f32 -1.442695, %v161_v24  ;;  %v1680_v40 = vld [vmem:[%s6944_s1 + $0x238] sm:$0xff] }
 0x119   :  { %v4204_v48 = vpop.eup %4203  ;;  %v2150_v49 = vpop.permute.xlu0 %2149  ;;  %4223 = vrcp.f32 %v1060_v44  ;;  %v1062_v51 = vadd.f32 1.0, %v4202_v45  ;;  %v3589_v41 = vmul.f32 -1.442695, %v164_v28  ;;  %v165_v42 = vld [vmem:[%s6943_s0 + $0x4c0] sm:$0xff]  ;;  %v3588_v45 = vmul.f32 -1.442695, %v163_v33 }
 0x11a   :  { %v4206_v52 = vpop.eup %4205  ;;  %3269 = vst.msk [vmem:[%s6945_s2 + $0x1f8] sm:$0xff] %vm3205_vm0, %v3040_v46  ;;  %v3039_v53 = vmul.f32 %v2150_v49, %v1671_v43  ;;  %2469 = vperm.xlu0 %3667, %v4184_v15   ;;  %4225 = vrcp.f32 %v1059_v47  ;;  %v1061_v54 = vadd.f32 1.0, %v4204_v48  ;;  %v159_v15 = vld [vmem:[%s6943_s0 + $0x490] sm:$0xff]  ;;  %v168_v46 = vld [vmem:[%s6943_s0 + $0x4d8] sm:$0xff] }
 0x11b   :  { %v4208_v55 = vpop.eup %4207  ;;  %v2165_v56 = vpop.permute.xlu1 %2164  ;;  %4227 = vrcp.f32 %v1062_v51  ;;  %v1064_v58 = vadd.f32 1.0, %v4206_v52  ;;  %v3584_v27 = vmul.f32 -1.442695, %v159_v15  ;;  %v1679_v49 = vld [vmem:[%s6944_s1 + $0x230] sm:$0xff]  ;;  %v1688_v33 = vld [vmem:[%s6944_s1 + $0x278] sm:$0xff] }
 0x11c   :  { %v4210_v60 = vpop.eup %4209  ;;  %3268 = vst.msk [vmem:[%s6945_s2 + $0x1f0] sm:$0xff] %vm3205_vm0, %v3039_v53  ;;  %v3042_v61 = vmul.f32 %v2165_v56, %v1674_v50  ;;  %2484 = vperm.xlu1 %3668, %v5458_v19   ;;  %4229 = vrcp.f32 %v1061_v54  ;;  %v1063_v62 = vadd.f32 1.0, %v4208_v55  ;;  %v162_v19 = vld [vmem:[%s6943_s0 + $0x4a8] sm:$0xff]  ;;  %v3591_v50 = vmul.f32 -1.442695, %v166_v37  ;;  %v167_v51 = vld [vmem:[%s6943_s0 + $0x4d0] sm:$0xff] }
 0x11d   :  { %v4212_v0 = vpop.eup %4211  ;;  %v2160_v1 = vpop.permute.xlu0 %2159  ;;  %4231 = vrcp.f32 %v1064_v58  ;;  %v1066_v3 = vadd.f32 1.0, %v4210_v60  ;;  %v3587_v32 = vmul.f32 -1.442695, %v162_v19  ;;  %v3590_v54 = vmul.f32 -1.442695, %v165_v42  ;;  %v1686_v19 = vld [vmem:[%s6944_s1 + $0x268] sm:$0xff] }
 0x11e   :  { %v4214_v5 = vpop.eup %4213  ;;  %3271 = vst.msk [vmem:[%s6945_s2 + $0x208] sm:$0xff] %vm3205_vm0, %v3042_v61  ;;  %v3041_v6 = vmul.f32 %v2160_v1, %v1673_v57  ;;  %2479 = vperm.xlu0 %3667, %v5464_v22   ;;  %4233 = vrcp.f32 %v1063_v62  ;;  %v1065_v7 = vadd.f32 1.0, %v4212_v0  ;;  %v1678_v22 = vld [vmem:[%s6944_s1 + $0x228] sm:$0xff]  ;;  %v3593_v58 = vmul.f32 -1.442695, %v168_v46  ;;  %v1681_v0 = vld [vmem:[%s6944_s1 + $0x240] sm:$0xff] }
 0x11f   :  { %v4216_v10 = vpop.eup %4215  ;;  %v2175_v11 = vpop.permute.xlu1 %2174  ;;  %4235 = vrcp.f32 %v1066_v3  ;;  %v1068_v13 = vadd.f32 1.0, %v4214_v5  ;;  %v1682_v57 = vld [vmem:[%s6944_s1 + $0x248] sm:$0xff]  ;;  %v3592_v61 = vmul.f32 -1.442695, %v167_v51  ;;  %v1684_v5 = vld [vmem:[%s6944_s1 + $0x258] sm:$0xff]  ;;  %v1687_v42 = vld [vmem:[%s6944_s1 + $0x270] sm:$0xff] }
 0x120   :  { %v4218_v16 = vpop.eup %4217  ;;  %3270 = vst.msk [vmem:[%s6945_s2 + $0x200] sm:$0xff] %vm3205_vm0, %v3041_v6  ;;  %v3044_v17 = vmul.f32 %v2175_v11, %v1676_v2  ;;  %2494 = vperm.xlu1 %3668, %v4216_v10   ;;  %4237 = vrcp.f32 %v1065_v7 }
 0x121   :  { %v4220_v20 = vpop.eup %4219  ;;  %v2170_v21 = vpop.permute.xlu0 %2169  ;;  %4239 = vrcp.f32 %v1068_v13 }
 0x122   :  { %v4222_v25 = vpop.eup %4221  ;;  %3273 = vst.msk [vmem:[%s6945_s2 + $0x218] sm:$0xff] %vm3205_vm0, %v3044_v17  ;;  %v3043_v26 = vmul.f32 %v2170_v21, %v1675_v12  ;;  %2489 = vperm.xlu0 %3667, %v4218_v16   ;;  %4241 = vpow2.f32 %v3580_v8  ;;  %v1683_v12 = vld [vmem:[%s6944_s1 + $0x250] sm:$0xff] }
 0x123   :  { %v4224_v29 = vpop.eup %4223  ;;  %v2185_v30 = vpop.permute.xlu1 %2184  ;;  %4243 = vpow2.f32 %v3583_v14 }
 0x124   :  { %v4226_v34 = vpop.eup %4225  ;;  %3272 = vst.msk [vmem:[%s6945_s2 + $0x210] sm:$0xff] %vm3205_vm0, %v3043_v26  ;;  %v3046_v35 = vmul.f32 %v2185_v30, %v1678_v22  ;;  %2504 = vperm.xlu1 %3668, %v4220_v20   ;;  %4245 = vpow2.f32 %v3582_v18  ;;  %v1685_v26 = vld [vmem:[%s6944_s1 + $0x260] sm:$0xff] }
 0x125   :  { %v4228_v38 = vpop.eup %4227  ;;  %v2180_v39 = vpop.permute.xlu0 %2179  ;;  %4247 = vpow2.f32 %v3585_v23 }
 0x126   :  { %v4230_v43 = vpop.eup %4229  ;;  %3275 = vst.msk [vmem:[%s6945_s2 + $0x228] sm:$0xff] %vm3205_vm0, %v3046_v35  ;;  %v3045_v44 = vmul.f32 %v2180_v39, %v1677_v31  ;;  %2499 = vperm.xlu0 %3667, %v4222_v25   ;;  %4249 = vpow2.f32 %v3584_v27  ;;  %v170_v35 = vld [vmem:[%s6943_s0 + $0x4e8] sm:$0xff]  ;;  %v169_v39 = vld [vmem:[%s6943_s0 + $0x4e0] sm:$0xff] }
 0x127   :  { %v4232_v47 = vpop.eup %4231  ;;  %v2195_v48 = vpop.permute.xlu1 %2194  ;;  %4251 = vpow2.f32 %v3587_v32 }
 0x128   :  { %v4234_v52 = vpop.eup %4233  ;;  %3274 = vst.msk [vmem:[%s6945_s2 + $0x220] sm:$0xff] %vm3205_vm0, %v3045_v44  ;;  %v3048_v53 = vmul.f32 %v2195_v48, %v1680_v40  ;;  %2514 = vperm.xlu1 %3668, %v4224_v29   ;;  %4253 = vpow2.f32 %v3586_v36  ;;  %v172_v44 = vld [vmem:[%s6943_s0 + $0x4f8] sm:$0xff]  ;;  %v3595_v48 = vmul.f32 -1.442695, %v170_v35 }
 0x129   :  { %v4236_v55 = vpop.eup %4235  ;;  %v2190_v56 = vpop.permute.xlu0 %2189  ;;  %4255 = vpow2.f32 %v3589_v41 }
 0x12a   :  { %v5594_v59 = vpop.eup %4237  ;;  %3277 = vst.msk [vmem:[%s6945_s2 + $0x238] sm:$0xff] %vm3205_vm0, %v3048_v53  ;;  %v3047_v60 = vmul.f32 %v2190_v56, %v1679_v49  ;;  %2509 = vperm.xlu0 %3667, %v4226_v34   ;;  %4257 = vpow2.f32 %v3588_v45  ;;  %v171_v49 = vld [vmem:[%s6943_s0 + $0x4f0] sm:$0xff] }
 0x12b   :  { %v5600_v62 = vpop.eup %4239  ;;  %v2205_v63 = vpop.permute.xlu1 %2204  ;;  %4259 = vpow2.f32 %v3591_v50 }
 0x12c   :  { %v4242_v1 = vpop.eup %4241  ;;  %3276 = vst.msk [vmem:[%s6945_s2 + $0x230] sm:$0xff] %vm3205_vm0, %v3047_v60  ;;  %v3050_v2 = vmul.f32 %v2205_v63, %v1682_v57  ;;  %2524 = vperm.xlu1 %3668, %v4228_v38   ;;  %4261 = vpow2.f32 %v3590_v54  ;;  %v3594_v54 = vmul.f32 -1.442695, %v169_v39  ;;  %v3596_v63 = vmul.f32 -1.442695, %v171_v49 }
 0x12d   :  { %v4244_v3 = vpop.eup %4243  ;;  %v2200_v4 = vpop.permute.xlu0 %2199  ;;  %v1067_v6 = vadd.f32 1.0, %v4242_v1  ;;  %4263 = vpow2.f32 %v3593_v58  ;;  %v3597_v58 = vmul.f32 -1.442695, %v172_v44 }
 0x12e   :  { %v4246_v7 = vpop.eup %4245  ;;  %3279 = vst.msk [vmem:[%s6945_s2 + $0x248] sm:$0xff] %vm3205_vm0, %v3050_v2  ;;  %v3049_v8 = vmul.f32 %v2200_v4, %v1681_v0  ;;  %2519 = vperm.xlu0 %3667, %v4230_v43   ;;  %v1070_v9 = vadd.f32 1.0, %v4244_v3  ;;  %4265 = vpow2.f32 %v3592_v61  ;;  %v176_v0 = vld [vmem:[%s6943_s0 + $0x518] sm:$0xff]  ;;  %v175_v4 = vld [vmem:[%s6943_s0 + $0x510] sm:$0xff] }
 0x12f   :  { %v4248_v10 = vpop.eup %4247  ;;  %v2215_v11 = vpop.permute.xlu1 %2214  ;;  %4267 = vrcp.f32 %v1067_v6  ;;  %v1069_v13 = vadd.f32 1.0, %v4246_v7  ;;  %v1692_v7 = vld [vmem:[%s6944_s1 + $0x298] sm:$0xff] }
 0x130   :  { %v4250_v14 = vpop.eup %4249  ;;  %3278 = vst.msk [vmem:[%s6945_s2 + $0x240] sm:$0xff] %vm3205_vm0, %v3049_v8  ;;  %v3052_v15 = vmul.f32 %v2215_v11, %v1684_v5  ;;  %2534 = vperm.xlu1 %3668, %v4232_v47   ;;  %4269 = vrcp.f32 %v1070_v9  ;;  %v1072_v16 = vadd.f32 1.0, %v4248_v10  ;;  %v178_v9 = vld [vmem:[%s6943_s0 + $0x528] sm:$0xff] }
 0x131   :  { %v4252_v17 = vpop.eup %4251  ;;  %v2210_v18 = vpop.permute.xlu0 %2209  ;;  %4271 = vrcp.f32 %v1069_v13  ;;  %v1071_v20 = vadd.f32 1.0, %v4250_v14  ;;  %v177_v13 = vld [vmem:[%s6943_s0 + $0x520] sm:$0xff] }
 0x132   :  { %v4254_v21 = vpop.eup %4253  ;;  %3281 = vst.msk [vmem:[%s6945_s2 + $0x258] sm:$0xff] %vm3205_vm0, %v3052_v15  ;;  %v3051_v22 = vmul.f32 %v2210_v18, %v1683_v12  ;;  %2529 = vperm.xlu0 %3667, %v4234_v52   ;;  %4273 = vrcp.f32 %v1072_v16  ;;  %v1074_v23 = vadd.f32 1.0, %v4252_v17  ;;  %v1690_v52 = vld [vmem:[%s6944_s1 + $0x288] sm:$0xff]  ;;  %v3601_v12 = vmul.f32 -1.442695, %v176_v0  ;;  %v1691_v16 = vld [vmem:[%s6944_s1 + $0x290] sm:$0xff] }
 0x133   :  { %v4256_v24 = vpop.eup %4255  ;;  %v2225_v25 = vpop.permute.xlu1 %2224  ;;  %4275 = vrcp.f32 %v1071_v20  ;;  %v1073_v27 = vadd.f32 1.0, %v4254_v21  ;;  %v3600_v17 = vmul.f32 -1.442695, %v175_v4  ;;  %v180_v18 = vld [vmem:[%s6943_s0 + $0x538] sm:$0xff]  ;;  %v3603_v21 = vmul.f32 -1.442695, %v178_v9 }
 0x134   :  { %v4258_v28 = vpop.eup %4257  ;;  %3280 = vst.msk [vmem:[%s6945_s2 + $0x250] sm:$0xff] %vm3205_vm0, %v3051_v22  ;;  %v3054_v29 = vmul.f32 %v2225_v25, %v1686_v19  ;;  %2544 = vperm.xlu1 %3668, %v4236_v55   ;;  %4277 = vrcp.f32 %v1074_v23  ;;  %v1076_v30 = vadd.f32 1.0, %v4256_v24  ;;  %v174_v55 = vld [vmem:[%s6943_s0 + $0x508] sm:$0xff]  ;;  %v179_v22 = vld [vmem:[%s6943_s0 + $0x530] sm:$0xff] }
 0x135   :  { %v4260_v31 = vpop.eup %4259  ;;  %v2220_v32 = vpop.permute.xlu0 %2219  ;;  %4279 = vrcp.f32 %v1073_v27  ;;  %v1075_v34 = vadd.f32 1.0, %v4258_v28  ;;  %v3599_v3 = vmul.f32 -1.442695, %v174_v55  ;;  %v1694_v25 = vld [vmem:[%s6944_s1 + $0x2a8] sm:$0xff]  ;;  %v1699_v9 = vld [vmem:[%s6944_s1 + $0x2d0] sm:$0xff] }
 0x136   :  { %v4262_v36 = vpop.eup %4261  ;;  %3283 = vst.msk [vmem:[%s6945_s2 + $0x268] sm:$0xff] %vm3205_vm0, %v3054_v29  ;;  %v3053_v37 = vmul.f32 %v2220_v32, %v1685_v26  ;;  %2539 = vperm.xlu0 %3667, %v5594_v59   ;;  %4281 = vrcp.f32 %v1076_v30  ;;  %v1078_v38 = vadd.f32 1.0, %v4260_v31  ;;  %v173_v59 = vld [vmem:[%s6943_s0 + $0x500] sm:$0xff]  ;;  %v3602_v26 = vmul.f32 -1.442695, %v177_v13  ;;  %v182_v27 = vld [vmem:[%s6943_s0 + $0x548] sm:$0xff] }
 0x137   :  { %v4264_v40 = vpop.eup %4263  ;;  %v2235_v41 = vpop.permute.xlu1 %2234  ;;  %4283 = vrcp.f32 %v1075_v34  ;;  %v1077_v43 = vadd.f32 1.0, %v4262_v36  ;;  %v3598_v8 = vmul.f32 -1.442695, %v173_v59  ;;  %v3605_v30 = vmul.f32 -1.442695, %v180_v18  ;;  %v1697_v59 = vld [vmem:[%s6944_s1 + $0x2c0] sm:$0xff] }
 0x138   :  { %v4266_v45 = vpop.eup %4265  ;;  %3282 = vst.msk [vmem:[%s6945_s2 + $0x260] sm:$0xff] %vm3205_vm0, %v3053_v37  ;;  %v3056_v46 = vmul.f32 %v2235_v41, %v1688_v33  ;;  %2554 = vperm.xlu1 %3668, %v5600_v62   ;;  %4285 = vrcp.f32 %v1078_v38  ;;  %v1080_v47 = vadd.f32 1.0, %v4264_v40  ;;  %v1689_v62 = vld [vmem:[%s6944_s1 + $0x280] sm:$0xff]  ;;  %v3604_v34 = vmul.f32 -1.442695, %v179_v22  ;;  %v1696_v40 = vld [vmem:[%s6944_s1 + $0x2b8] sm:$0xff] }
 0x139   :  { %v4268_v50 = vpop.eup %4267  ;;  %v2230_v51 = vpop.permute.xlu0 %2229  ;;  %4287 = vrcp.f32 %v1077_v43  ;;  %v1079_v53 = vadd.f32 1.0, %v4266_v45  ;;  %v1693_v33 = vld [vmem:[%s6944_s1 + $0x2a0] sm:$0xff]  ;;  %v3607_v37 = vmul.f32 -1.442695, %v182_v27  ;;  %v1695_v45 = vld [vmem:[%s6944_s1 + $0x2b0] sm:$0xff]  ;;  %v1702_v18 = vld [vmem:[%s6944_s1 + $0x2e8] sm:$0xff] }
 0x13a   :  { %v4270_v56 = vpop.eup %4269  ;;  %3285 = vst.msk [vmem:[%s6945_s2 + $0x278] sm:$0xff] %vm3205_vm0, %v3056_v46  ;;  %v3055_v57 = vmul.f32 %v2230_v51, %v1687_v42  ;;  %2549 = vperm.xlu0 %3667, %v4268_v50   ;;  %4289 = vrcp.f32 %v1080_v47 }
 0x13b   :  { %v4272_v60 = vpop.eup %4271  ;;  %v2245_v61 = vpop.permute.xlu1 %2244  ;;  %4291 = vrcp.f32 %v1079_v53 }
 0x13c   :  { %v4274_v1 = vpop.eup %4273  ;;  %3284 = vst.msk [vmem:[%s6945_s2 + $0x270] sm:$0xff] %vm3205_vm0, %v3055_v57  ;;  %v3058_v2 = vmul.f32 %v2245_v61, %v1690_v52  ;;  %2564 = vperm.xlu1 %3668, %v4270_v56   ;;  %4293 = vpow2.f32 %v3595_v48  ;;  %v1698_v52 = vld [vmem:[%s6944_s1 + $0x2c8] sm:$0xff] }
 0x13d   :  { %v4276_v5 = vpop.eup %4275  ;;  %v2240_v6 = vpop.permute.xlu0 %2239  ;;  %4295 = vpow2.f32 %v3594_v54 }
 0x13e   :  { %v4278_v10 = vpop.eup %4277  ;;  %3287 = vst.msk [vmem:[%s6945_s2 + $0x288] sm:$0xff] %vm3205_vm0, %v3058_v2  ;;  %v3057_v11 = vmul.f32 %v2240_v6, %v1689_v62  ;;  %2559 = vperm.xlu0 %3667, %v4272_v60   ;;  %4297 = vpow2.f32 %v3597_v58  ;;  %v1700_v2 = vld [vmem:[%s6944_s1 + $0x2d8] sm:$0xff] }
 0x13f   :  { %v4280_v14 = vpop.eup %4279  ;;  %v2255_v15 = vpop.permute.xlu1 %2254  ;;  %4299 = vpow2.f32 %v3596_v63 }
 0x140   :  { %v4282_v19 = vpop.eup %4281  ;;  %3286 = vst.msk [vmem:[%s6945_s2 + $0x280] sm:$0xff] %vm3205_vm0, %v3057_v11  ;;  %v3060_v20 = vmul.f32 %v2255_v15, %v1692_v7  ;;  %2574 = vperm.xlu1 %3668, %v4274_v1   ;;  %4301 = vpow2.f32 %v3599_v3  ;;  %v181_v11 = vld [vmem:[%s6943_s0 + $0x540] sm:$0xff]  ;;  %v184_v15 = vld [vmem:[%s6943_s0 + $0x558] sm:$0xff] }
 0x141   :  { %v4284_v23 = vpop.eup %4283  ;;  %v2250_v24 = vpop.permute.xlu0 %2249  ;;  %4303 = vpow2.f32 %v3598_v8 }
 0x142   :  { %v4286_v28 = vpop.eup %4285  ;;  %3289 = vst.msk [vmem:[%s6945_s2 + $0x298] sm:$0xff] %vm3205_vm0, %v3060_v20  ;;  %v3059_v29 = vmul.f32 %v2250_v24, %v1691_v16  ;;  %2569 = vperm.xlu0 %3667, %v4276_v5   ;;  %4305 = vpow2.f32 %v3601_v12  ;;  %v183_v20 = vld [vmem:[%s6943_s0 + $0x550] sm:$0xff]  ;;  %v3606_v24 = vmul.f32 -1.442695, %v181_v11 }
 0x143   :  { %v4288_v31 = vpop.eup %4287  ;;  %v2265_v32 = vpop.permute.xlu1 %2264  ;;  %4307 = vpow2.f32 %v3600_v17 }
 0x144   :  { %v5730_v35 = vpop.eup %4289  ;;  %3288 = vst.msk [vmem:[%s6945_s2 + $0x290] sm:$0xff] %vm3205_vm0, %v3059_v29  ;;  %v3062_v36 = vmul.f32 %v2265_v32, %v1694_v25  ;;  %2584 = vperm.xlu1 %3668, %v4278_v10   ;;  %4309 = vpow2.f32 %v3603_v21  ;;  %v186_v25 = vld [vmem:[%s6943_s0 + $0x568] sm:$0xff] }
 0x145   :  { %v5736_v38 = vpop.eup %4291  ;;  %v2260_v39 = vpop.permute.xlu0 %2259  ;;  %4311 = vpow2.f32 %v3602_v26 }
 0x146   :  { %v4294_v41 = vpop.eup %4293  ;;  %3291 = vst.msk [vmem:[%s6945_s2 + $0x2a8] sm:$0xff] %vm3205_vm0, %v3062_v36  ;;  %v3061_v42 = vmul.f32 %v2260_v39, %v1693_v33  ;;  %2579 = vperm.xlu0 %3667, %v4280_v14   ;;  %4313 = vpow2.f32 %v3605_v30  ;;  %v3609_v30 = vmul.f32 -1.442695, %v184_v15  ;;  %v3611_v39 = vmul.f32 -1.442695, %v186_v25 }
 0x147   :  { %v4296_v43 = vpop.eup %4295  ;;  %v2275_v44 = vpop.permute.xlu1 %2274  ;;  %v1082_v46 = vadd.f32 1.0, %v4294_v41  ;;  %4315 = vpow2.f32 %v3604_v34  ;;  %v3608_v34 = vmul.f32 -1.442695, %v183_v20 }
 0x148   :  { %v4298_v47 = vpop.eup %4297  ;;  %3290 = vst.msk [vmem:[%s6945_s2 + $0x2a0] sm:$0xff] %vm3205_vm0, %v3061_v42  ;;  %v3064_v48 = vmul.f32 %v2275_v44, %v1696_v40  ;;  %2594 = vperm.xlu1 %3668, %v4282_v19   ;;  %v1081_v49 = vadd.f32 1.0, %v4296_v43  ;;  %4317 = vpow2.f32 %v3607_v37  ;;  %v187_v40 = vld [vmem:[%s6943_s0 + $0x570] sm:$0xff]  ;;  %v190_v44 = vld [vmem:[%s6943_s0 + $0x588] sm:$0xff] }
 0x149   :  { %v4300_v50 = vpop.eup %4299  ;;  %v2270_v51 = vpop.permute.xlu0 %2269  ;;  %4319 = vrcp.f32 %v1082_v46  ;;  %v1084_v53 = vadd.f32 1.0, %v4298_v47  ;;  %v1703_v47 = vld [vmem:[%s6944_s1 + $0x2f0] sm:$0xff] }
 0x14a   :  { %v4302_v54 = vpop.eup %4301  ;;  %3293 = vst.msk [vmem:[%s6945_s2 + $0x2b8] sm:$0xff] %vm3205_vm0, %v3064_v48  ;;  %v3063_v55 = vmul.f32 %v2270_v51, %v1695_v45  ;;  %2589 = vperm.xlu0 %3667, %v4284_v23   ;;  %4321 = vrcp.f32 %v1081_v49  ;;  %v1083_v56 = vadd.f32 1.0, %v4300_v50  ;;  %v189_v49 = vld [vmem:[%s6943_s0 + $0x580] sm:$0xff] }
 0x14b   :  { %v4304_v57 = vpop.eup %4303  ;;  %v2285_v58 = vpop.permute.xlu1 %2284  ;;  %4323 = vrcp.f32 %v1084_v53  ;;  %v1086_v60 = vadd.f32 1.0, %v4302_v54  ;;  %v192_v53 = vld [vmem:[%s6943_s0 + $0x598] sm:$0xff] }
 0x14c   :  { %v4306_v61 = vpop.eup %4305  ;;  %3292 = vst.msk [vmem:[%s6945_s2 + $0x2b0] sm:$0xff] %vm3205_vm0, %v3063_v55  ;;  %v3066_v62 = vmul.f32 %v2285_v58, %v1698_v52  ;;  %2604 = vperm.xlu1 %3668, %v4286_v28   ;;  %4325 = vrcp.f32 %v1083_v56  ;;  %v1085_v63 = vadd.f32 1.0, %v4304_v57  ;;  %v1701_v28 = vld [vmem:[%s6944_s1 + $0x2e0] sm:$0xff]  ;;  %v3612_v52 = vmul.f32 -1.442695, %v187_v40  ;;  %v1706_v56 = vld [vmem:[%s6944_s1 + $0x308] sm:$0xff] }
 0x14d   :  { %v4308_v0 = vpop.eup %4307  ;;  %v2280_v1 = vpop.permute.xlu0 %2279  ;;  %4327 = vrcp.f32 %v1086_v60  ;;  %v1088_v3 = vadd.f32 1.0, %v4306_v61  ;;  %v3615_v57 = vmul.f32 -1.442695, %v190_v44  ;;  %v191_v58 = vld [vmem:[%s6943_s0 + $0x590] sm:$0xff]  ;;  %v3614_v61 = vmul.f32 -1.442695, %v189_v49 }
 0x14e   :  { %v4310_v4 = vpop.eup %4309  ;;  %3295 = vst.msk [vmem:[%s6945_s2 + $0x2c8] sm:$0xff] %vm3205_vm0, %v3066_v62  ;;  %v3065_v5 = vmul.f32 %v2280_v1, %v1697_v59  ;;  %2599 = vperm.xlu0 %3667, %v4288_v31   ;;  %4329 = vrcp.f32 %v1085_v63  ;;  %v1087_v6 = vadd.f32 1.0, %v4308_v0  ;;  %v185_v31 = vld [vmem:[%s6943_s0 + $0x560] sm:$0xff]  ;;  %v194_v62 = vld [vmem:[%s6943_s0 + $0x5a8] sm:$0xff] }
 0x14f   :  { %v4312_v7 = vpop.eup %4311  ;;  %v2295_v8 = vpop.permute.xlu1 %2294  ;;  %4331 = vrcp.f32 %v1088_v3  ;;  %v1090_v10 = vadd.f32 1.0, %v4310_v4  ;;  %v3610_v43 = vmul.f32 -1.442695, %v185_v31  ;;  %v1705_v1 = vld [vmem:[%s6944_s1 + $0x300] sm:$0xff]  ;;  %v1714_v49 = vld [vmem:[%s6944_s1 + $0x348] sm:$0xff] }
 0x150   :  { %v4314_v12 = vpop.eup %4313  ;;  %3294 = vst.msk [vmem:[%s6945_s2 + $0x2c0] sm:$0xff] %vm3205_vm0, %v3065_v5  ;;  %v3068_v13 = vmul.f32 %v2295_v8, %v1700_v2  ;;  %2614 = vperm.xlu1 %3668, %v5730_v35   ;;  %4333 = vrcp.f32 %v1087_v6  ;;  %v1089_v14 = vadd.f32 1.0, %v4312_v7  ;;  %v188_v35 = vld [vmem:[%s6943_s0 + $0x578] sm:$0xff]  ;;  %v3617_v2 = vmul.f32 -1.442695, %v192_v53  ;;  %v193_v3 = vld [vmem:[%s6943_s0 + $0x5a0] sm:$0xff] }
 0x151   :  { %v4316_v16 = vpop.eup %4315  ;;  %v2290_v17 = vpop.permute.xlu0 %2289  ;;  %4335 = vrcp.f32 %v1090_v10  ;;  %v1092_v19 = vadd.f32 1.0, %v4314_v12  ;;  %v3613_v48 = vmul.f32 -1.442695, %v188_v35  ;;  %v3616_v6 = vmul.f32 -1.442695, %v191_v58  ;;  %v1712_v35 = vld [vmem:[%s6944_s1 + $0x338] sm:$0xff] }
 0x152   :  { %v4318_v21 = vpop.eup %4317  ;;  %3297 = vst.msk [vmem:[%s6945_s2 + $0x2d8] sm:$0xff] %vm3205_vm0, %v3068_v13  ;;  %v3067_v22 = vmul.f32 %v2290_v17, %v1699_v9  ;;  %2609 = vperm.xlu0 %3667, %v5736_v38   ;;  %4337 = vrcp.f32 %v1089_v14  ;;  %v1091_v23 = vadd.f32 1.0, %v4316_v16  ;;  %v1704_v38 = vld [vmem:[%s6944_s1 + $0x2f8] sm:$0xff]  ;;  %v3619_v10 = vmul.f32 -1.442695, %v194_v62  ;;  %v1707_v16 = vld [vmem:[%s6944_s1 + $0x310] sm:$0xff] }
 0x153   :  { %v4320_v26 = vpop.eup %4319  ;;  %v2305_v27 = vpop.permute.xlu1 %2304  ;;  %4339 = vrcp.f32 %v1092_v19  ;;  %v1094_v29 = vadd.f32 1.0, %v4318_v21  ;;  %v1708_v9 = vld [vmem:[%s6944_s1 + $0x318] sm:$0xff]  ;;  %v3618_v13 = vmul.f32 -1.442695, %v193_v3  ;;  %v1710_v21 = vld [vmem:[%s6944_s1 + $0x328] sm:$0xff]  ;;  %v1713_v58 = vld [vmem:[%s6944_s1 + $0x340] sm:$0xff] }
 0x154   :  { %v4322_v32 = vpop.eup %4321  ;;  %3296 = vst.msk [vmem:[%s6945_s2 + $0x2d0] sm:$0xff] %vm3205_vm0, %v3067_v22  ;;  %v3070_v33 = vmul.f32 %v2305_v27, %v1702_v18  ;;  %2624 = vperm.xlu1 %3668, %v4320_v26   ;;  %4341 = vrcp.f32 %v1091_v23 }
 0x155   :  { %v4324_v36 = vpop.eup %4323  ;;  %v2300_v37 = vpop.permute.xlu0 %2299  ;;  %4343 = vrcp.f32 %v1094_v29 }
 0x156   :  { %v4326_v41 = vpop.eup %4325  ;;  %3299 = vst.msk [vmem:[%s6945_s2 + $0x2e8] sm:$0xff] %vm3205_vm0, %v3070_v33  ;;  %v3069_v42 = vmul.f32 %v2300_v37, %v1701_v28  ;;  %2619 = vperm.xlu0 %3667, %v4322_v32   ;;  %4345 = vpow2.f32 %v3606_v24  ;;  %v1709_v28 = vld [vmem:[%s6944_s1 + $0x320] sm:$0xff] }
 0x157   :  { %v4328_v45 = vpop.eup %4327  ;;  %v2315_v46 = vpop.permute.xlu1 %2314  ;;  %4347 = vpow2.f32 %v3609_v30 }
 0x158   :  { %v4330_v50 = vpop.eup %4329  ;;  %3298 = vst.msk [vmem:[%s6945_s2 + $0x2e0] sm:$0xff] %vm3205_vm0, %v3069_v42  ;;  %v3072_v51 = vmul.f32 %v2315_v46, %v1704_v38  ;;  %2634 = vperm.xlu1 %3668, %v4324_v36   ;;  %4349 = vpow2.f32 %v3608_v34  ;;  %v1711_v42 = vld [vmem:[%s6944_s1 + $0x330] sm:$0xff] }
 0x159   :  { %v4332_v54 = vpop.eup %4331  ;;  %v2310_v55 = vpop.permute.xlu0 %2309  ;;  %4351 = vpow2.f32 %v3611_v39 }
 0x15a   :  { %v4334_v59 = vpop.eup %4333  ;;  %3301 = vst.msk [vmem:[%s6945_s2 + $0x2f8] sm:$0xff] %vm3205_vm0, %v3072_v51  ;;  %v3071_v60 = vmul.f32 %v2310_v55, %v1703_v47  ;;  %2629 = vperm.xlu0 %3667, %v4326_v41   ;;  %4353 = vpow2.f32 %v3610_v43  ;;  %v196_v51 = vld [vmem:[%s6943_s0 + $0x5b8] sm:$0xff]  ;;  %v195_v55 = vld [vmem:[%s6943_s0 + $0x5b0] sm:$0xff] }
 0x15b   :  { %v4336_v63 = vpop.eup %4335  ;;  %v2325_v0 = vpop.permute.xlu1 %2324  ;;  %4355 = vpow2.f32 %v3613_v48 }
 0x15c   :  { %v4338_v4 = vpop.eup %4337  ;;  %3300 = vst.msk [vmem:[%s6945_s2 + $0x2f0] sm:$0xff] %vm3205_vm0, %v3071_v60  ;;  %v3074_v5 = vmul.f32 %v2325_v0, %v1706_v56  ;;  %2644 = vperm.xlu1 %3668, %v4328_v45   ;;  %4357 = vpow2.f32 %v3612_v52  ;;  %v198_v60 = vld [vmem:[%s6943_s0 + $0x5c8] sm:$0xff]  ;;  %v3621_v0 = vmul.f32 -1.442695, %v196_v51 }
 0x15d   :  { %v4340_v7 = vpop.eup %4339  ;;  %v2320_v8 = vpop.permute.xlu0 %2319  ;;  %4359 = vpow2.f32 %v3615_v57 }
 0x15e   :  { %v5866_v11 = vpop.eup %4341  ;;  %3303 = vst.msk [vmem:[%s6945_s2 + $0x308] sm:$0xff] %vm3205_vm0, %v3074_v5  ;;  %v3073_v12 = vmul.f32 %v2320_v8, %v1705_v1  ;;  %2639 = vperm.xlu0 %3667, %v4330_v50   ;;  %4361 = vpow2.f32 %v3614_v61  ;;  %v197_v1 = vld [vmem:[%s6943_s0 + $0x5c0] sm:$0xff] }
 0x15f   :  { %v5872_v14 = vpop.eup %4343  ;;  %v2335_v15 = vpop.permute.xlu1 %2334  ;;  %4363 = vpow2.f32 %v3617_v2 }
 0x160   :  { %v4346_v17 = vpop.eup %4345  ;;  %3302 = vst.msk [vmem:[%s6945_s2 + $0x300] sm:$0xff] %vm3205_vm0, %v3073_v12  ;;  %v3076_v18 = vmul.f32 %v2335_v15, %v1708_v9  ;;  %2654 = vperm.xlu1 %3668, %v4332_v54   ;;  %4365 = vpow2.f32 %v3616_v6  ;;  %v3620_v6 = vmul.f32 -1.442695, %v195_v55  ;;  %v3622_v15 = vmul.f32 -1.442695, %v197_v1 }
 0x161   :  { %v4348_v19 = vpop.eup %4347  ;;  %v2330_v20 = vpop.permute.xlu0 %2329  ;;  %v1093_v22 = vadd.f32 1.0, %v4346_v17  ;;  %4367 = vpow2.f32 %v3619_v10  ;;  %v3623_v10 = vmul.f32 -1.442695, %v198_v60 }
 0x162   :  { %v4350_v23 = vpop.eup %4349  ;;  %3305 = vst.msk [vmem:[%s6945_s2 + $0x318] sm:$0xff] %vm3205_vm0, %v3076_v18  ;;  %v3075_v24 = vmul.f32 %v2330_v20, %v1707_v16  ;;  %2649 = vperm.xlu0 %3667, %v4334_v59   ;;  %v1096_v25 = vadd.f32 1.0, %v4348_v19  ;;  %4369 = vpow2.f32 %v3618_v13  ;;  %v202_v16 = vld [vmem:[%s6943_s0 + $0x5e8] sm:$0xff]  ;;  %v201_v20 = vld [vmem:[%s6943_s0 + $0x5e0] sm:$0xff] }
 0x163   :  { %v4352_v26 = vpop.eup %4351  ;;  %v2345_v27 = vpop.permute.xlu1 %2344  ;;  %4371 = vrcp.f32 %v1093_v22  ;;  %v1095_v29 = vadd.f32 1.0, %v4350_v23  ;;  %v1718_v23 = vld [vmem:[%s6944_s1 + $0x368] sm:$0xff] }
 0x164   :  { %v4354_v30 = vpop.eup %4353  ;;  %3304 = vst.msk [vmem:[%s6945_s2 + $0x310] sm:$0xff] %vm3205_vm0, %v3075_v24  ;;  %v3078_v31 = vmul.f32 %v2345_v27, %v1710_v21  ;;  %2664 = vperm.xlu1 %3668, %v4336_v63   ;;  %4373 = vrcp.f32 %v1096_v25  ;;  %v1098_v32 = vadd.f32 1.0, %v4352_v26  ;;  %v204_v25 = vld [vmem:[%s6943_s0 + $0x5f8] sm:$0xff] }
 0x165   :  { %v4356_v33 = vpop.eup %4355  ;;  %v2340_v34 = vpop.permute.xlu0 %2339  ;;  %4375 = vrcp.f32 %v1095_v29  ;;  %v1097_v36 = vadd.f32 1.0, %v4354_v30  ;;  %v203_v29 = vld [vmem:[%s6943_s0 + $0x5f0] sm:$0xff] }
 0x166   :  { %v4358_v37 = vpop.eup %4357  ;;  %3307 = vst.msk [vmem:[%s6945_s2 + $0x328] sm:$0xff] %vm3205_vm0, %v3078_v31  ;;  %v3077_v38 = vmul.f32 %v2340_v34, %v1709_v28  ;;  %2659 = vperm.xlu0 %3667, %v4338_v4   ;;  %4377 = vrcp.f32 %v1098_v32  ;;  %v1100_v39 = vadd.f32 1.0, %v4356_v33  ;;  %v1716_v4 = vld [vmem:[%s6944_s1 + $0x358] sm:$0xff]  ;;  %v3627_v28 = vmul.f32 -1.442695, %v202_v16  ;;  %v1717_v32 = vld [vmem:[%s6944_s1 + $0x360] sm:$0xff] }
 0x167   :  { %v4360_v40 = vpop.eup %4359  ;;  %v2355_v41 = vpop.permute.xlu1 %2354  ;;  %4379 = vrcp.f32 %v1097_v36  ;;  %v1099_v43 = vadd.f32 1.0, %v4358_v37  ;;  %v3626_v33 = vmul.f32 -1.442695, %v201_v20  ;;  %v206_v34 = vld [vmem:[%s6943_s0 + $0x608] sm:$0xff]  ;;  %v3629_v37 = vmul.f32 -1.442695, %v204_v25 }
 0x168   :  { %v4362_v44 = vpop.eup %4361  ;;  %3306 = vst.msk [vmem:[%s6945_s2 + $0x320] sm:$0xff] %vm3205_vm0, %v3077_v38  ;;  %v3080_v45 = vmul.f32 %v2355_v41, %v1712_v35  ;;  %2674 = vperm.xlu1 %3668, %v4340_v7   ;;  %4381 = vrcp.f32 %v1100_v39  ;;  %v1102_v46 = vadd.f32 1.0, %v4360_v40  ;;  %v200_v7 = vld [vmem:[%s6943_s0 + $0x5d8] sm:$0xff]  ;;  %v205_v38 = vld [vmem:[%s6943_s0 + $0x600] sm:$0xff] }
 0x169   :  { %v4364_v47 = vpop.eup %4363  ;;  %v2350_v48 = vpop.permute.xlu0 %2349  ;;  %4383 = vrcp.f32 %v1099_v43  ;;  %v1101_v50 = vadd.f32 1.0, %v4362_v44  ;;  %v3625_v19 = vmul.f32 -1.442695, %v200_v7  ;;  %v1720_v41 = vld [vmem:[%s6944_s1 + $0x378] sm:$0xff]  ;;  %v1725_v25 = vld [vmem:[%s6944_s1 + $0x3a0] sm:$0xff] }
 0x16a   :  { %v4366_v52 = vpop.eup %4365  ;;  %3309 = vst.msk [vmem:[%s6945_s2 + $0x338] sm:$0xff] %vm3205_vm0, %v3080_v45  ;;  %v3079_v53 = vmul.f32 %v2350_v48, %v1711_v42  ;;  %2669 = vperm.xlu0 %3667, %v5866_v11   ;;  %4385 = vrcp.f32 %v1102_v46  ;;  %v1104_v54 = vadd.f32 1.0, %v4364_v47  ;;  %v199_v11 = vld [vmem:[%s6943_s0 + $0x5d0] sm:$0xff]  ;;  %v3628_v42 = vmul.f32 -1.442695, %v203_v29  ;;  %v208_v43 = vld [vmem:[%s6943_s0 + $0x618] sm:$0xff] }
 0x16b   :  { %v4368_v56 = vpop.eup %4367  ;;  %v2365_v57 = vpop.permute.xlu1 %2364  ;;  %4387 = vrcp.f32 %v1101_v50  ;;  %v1103_v59 = vadd.f32 1.0, %v4366_v52  ;;  %v3624_v24 = vmul.f32 -1.442695, %v199_v11  ;;  %v3631_v46 = vmul.f32 -1.442695, %v206_v34  ;;  %v1723_v11 = vld [vmem:[%s6944_s1 + $0x390] sm:$0xff] }
 0x16c   :  { %v4370_v61 = vpop.eup %4369  ;;  %3308 = vst.msk [vmem:[%s6945_s2 + $0x330] sm:$0xff] %vm3205_vm0, %v3079_v53  ;;  %v3082_v62 = vmul.f32 %v2365_v57, %v1714_v49  ;;  %2684 = vperm.xlu1 %3668, %v5872_v14   ;;  %4389 = vrcp.f32 %v1104_v54  ;;  %v1106_v63 = vadd.f32 1.0, %v4368_v56  ;;  %v1715_v14 = vld [vmem:[%s6944_s1 + $0x350] sm:$0xff]  ;;  %v3630_v50 = vmul.f32 -1.442695, %v205_v38  ;;  %v1722_v56 = vld [vmem:[%s6944_s1 + $0x388] sm:$0xff] }
 0x16d   :  { %v4372_v2 = vpop.eup %4371  ;;  %v2360_v3 = vpop.permute.xlu0 %2359  ;;  %4391 = vrcp.f32 %v1103_v59  ;;  %v1105_v5 = vadd.f32 1.0, %v4370_v61  ;;  %v1719_v49 = vld [vmem:[%s6944_s1 + $0x370] sm:$0xff]  ;;  %v3633_v53 = vmul.f32 -1.442695, %v208_v43  ;;  %v1721_v61 = vld [vmem:[%s6944_s1 + $0x380] sm:$0xff]  ;;  %v1728_v34 = vld [vmem:[%s6944_s1 + $0x3b8] sm:$0xff] }
 0x16e   :  { %v4374_v8 = vpop.eup %4373  ;;  %3311 = vst.msk [vmem:[%s6945_s2 + $0x348] sm:$0xff] %vm3205_vm0, %v3082_v62  ;;  %v3081_v9 = vmul.f32 %v2360_v3, %v1713_v58  ;;  %2679 = vperm.xlu0 %3667, %v4372_v2   ;;  %4393 = vrcp.f32 %v1106_v63 }
 0x16f   :  { %v4376_v12 = vpop.eup %4375  ;;  %v2375_v13 = vpop.permute.xlu1 %2374  ;;  %4395 = vrcp.f32 %v1105_v5 }
 0x170   :  { %v4378_v17 = vpop.eup %4377  ;;  %3310 = vst.msk [vmem:[%s6945_s2 + $0x340] sm:$0xff] %vm3205_vm0, %v3081_v9  ;;  %v3084_v18 = vmul.f32 %v2375_v13, %v1716_v4  ;;  %2694 = vperm.xlu1 %3668, %v4374_v8   ;;  %4397 = vpow2.f32 %v3621_v0  ;;  %v1724_v4 = vld [vmem:[%s6944_s1 + $0x398] sm:$0xff] }
 0x171   :  { %v4380_v21 = vpop.eup %4379  ;;  %v2370_v22 = vpop.permute.xlu0 %2369  ;;  %4399 = vpow2.f32 %v3620_v6 }
 0x172   :  { %v4382_v26 = vpop.eup %4381  ;;  %3313 = vst.msk [vmem:[%s6945_s2 + $0x358] sm:$0xff] %vm3205_vm0, %v3084_v18  ;;  %v3083_v27 = vmul.f32 %v2370_v22, %v1715_v14  ;;  %2689 = vperm.xlu0 %3667, %v4376_v12   ;;  %4401 = vpow2.f32 %v3623_v10  ;;  %v1726_v18 = vld [vmem:[%s6944_s1 + $0x3a8] sm:$0xff] }
 0x173   :  { %v4384_v30 = vpop.eup %4383  ;;  %v2385_v31 = vpop.permute.xlu1 %2384  ;;  %4403 = vpow2.f32 %v3622_v15 }
 0x174   :  { %v4386_v35 = vpop.eup %4385  ;;  %3312 = vst.msk [vmem:[%s6945_s2 + $0x350] sm:$0xff] %vm3205_vm0, %v3083_v27  ;;  %v3086_v36 = vmul.f32 %v2385_v31, %v1718_v23  ;;  %2704 = vperm.xlu1 %3668, %v4378_v17   ;;  %4405 = vpow2.f32 %v3625_v19  ;;  %v207_v27 = vld [vmem:[%s6943_s0 + $0x610] sm:$0xff]  ;;  %v210_v31 = vld [vmem:[%s6943_s0 + $0x628] sm:$0xff] }
 0x175   :  { %v4388_v39 = vpop.eup %4387  ;;  %v2380_v40 = vpop.permute.xlu0 %2379  ;;  %4407 = vpow2.f32 %v3624_v24 }
 0x176   :  { %v4390_v44 = vpop.eup %4389  ;;  %3315 = vst.msk [vmem:[%s6945_s2 + $0x368] sm:$0xff] %vm3205_vm0, %v3086_v36  ;;  %v3085_v45 = vmul.f32 %v2380_v40, %v1717_v32  ;;  %2699 = vperm.xlu0 %3667, %v4380_v21   ;;  %4409 = vpow2.f32 %v3627_v28  ;;  %v209_v36 = vld [vmem:[%s6943_s0 + $0x620] sm:$0xff]  ;;  %v3632_v40 = vmul.f32 -1.442695, %v207_v27 }
 0x177   :  { %v4392_v47 = vpop.eup %4391  ;;  %v2395_v48 = vpop.permute.xlu1 %2394  ;;  %4411 = vpow2.f32 %v3626_v33 }
 0x178   :  { %v6002_v51 = vpop.eup %4393  ;;  %3314 = vst.msk [vmem:[%s6945_s2 + $0x360] sm:$0xff] %vm3205_vm0, %v3085_v45  ;;  %v3088_v52 = vmul.f32 %v2395_v48, %v1720_v41  ;;  %2714 = vperm.xlu1 %3668, %v4382_v26   ;;  %4413 = vpow2.f32 %v3629_v37  ;;  %v212_v41 = vld [vmem:[%s6943_s0 + $0x638] sm:$0xff] }
 0x179   :  { %v6008_v54 = vpop.eup %4395  ;;  %v2390_v55 = vpop.permute.xlu0 %2389  ;;  %4415 = vpow2.f32 %v3628_v42 }
 0x17a   :  { %v4398_v57 = vpop.eup %4397  ;;  %3317 = vst.msk [vmem:[%s6945_s2 + $0x378] sm:$0xff] %vm3205_vm0, %v3088_v52  ;;  %v3087_v58 = vmul.f32 %v2390_v55, %v1719_v49  ;;  %2709 = vperm.xlu0 %3667, %v4384_v30   ;;  %4417 = vpow2.f32 %v3631_v46  ;;  %v3635_v46 = vmul.f32 -1.442695, %v210_v31  ;;  %v3637_v55 = vmul.f32 -1.442695, %v212_v41 }
 0x17b   :  { %v4400_v59 = vpop.eup %4399  ;;  %v2405_v60 = vpop.permute.xlu1 %2404  ;;  %v1108_v62 = vadd.f32 1.0, %v4398_v57  ;;  %4419 = vpow2.f32 %v3630_v50  ;;  %v3634_v50 = vmul.f32 -1.442695, %v209_v36 }
 0x17c   :  { %v4402_v63 = vpop.eup %4401  ;;  %3316 = vst.msk [vmem:[%s6945_s2 + $0x370] sm:$0xff] %vm3205_vm0, %v3087_v58  ;;  %v3090_v0 = vmul.f32 %v2405_v60, %v1722_v56  ;;  %2724 = vperm.xlu1 %3668, %v4386_v35   ;;  %v1107_v1 = vadd.f32 1.0, %v4400_v59  ;;  %4421 = vpow2.f32 %v3633_v53  ;;  %v213_v56 = vld [vmem:[%s6943_s0 + $0x640] sm:$0xff]  ;;  %v216_v60 = vld [vmem:[%s6943_s0 + $0x658] sm:$0xff] }
 0x17d   :  { %v4404_v2 = vpop.eup %4403  ;;  %v2400_v3 = vpop.permute.xlu0 %2399  ;;  %4423 = vrcp.f32 %v1108_v62  ;;  %v1110_v5 = vadd.f32 1.0, %v4402_v63  ;;  %v1729_v63 = vld [vmem:[%s6944_s1 + $0x3c0] sm:$0xff] }
 0x17e   :  { %v4406_v6 = vpop.eup %4405  ;;  %3319 = vst.msk [vmem:[%s6945_s2 + $0x388] sm:$0xff] %vm3205_vm0, %v3090_v0  ;;  %v3089_v7 = vmul.f32 %v2400_v3, %v1721_v61  ;;  %2719 = vperm.xlu0 %3667, %v4388_v39   ;;  %4425 = vrcp.f32 %v1107_v1  ;;  %v1109_v8 = vadd.f32 1.0, %v4404_v2  ;;  %v215_v1 = vld [vmem:[%s6943_s0 + $0x650] sm:$0xff] }
 0x17f   :  { %v4408_v9 = vpop.eup %4407  ;;  %v2415_v10 = vpop.permute.xlu1 %2414  ;;  %4427 = vrcp.f32 %v1110_v5  ;;  %v1112_v12 = vadd.f32 1.0, %v4406_v6  ;;  %v218_v5 = vld [vmem:[%s6943_s0 + $0x668] sm:$0xff] }
 0x180   :  { %v4410_v13 = vpop.eup %4409  ;;  %3318 = vst.msk [vmem:[%s6945_s2 + $0x380] sm:$0xff] %vm3205_vm0, %v3089_v7  ;;  %v3092_v14 = vmul.f32 %v2415_v10, %v1724_v4  ;;  %2734 = vperm.xlu1 %3668, %v4390_v44   ;;  %4429 = vrcp.f32 %v1109_v8  ;;  %v1111_v15 = vadd.f32 1.0, %v4408_v9  ;;  %v1727_v44 = vld [vmem:[%s6944_s1 + $0x3b0] sm:$0xff]  ;;  %v3638_v4 = vmul.f32 -1.442695, %v213_v56  ;;  %v1732_v8 = vld [vmem:[%s6944_s1 + $0x3d8] sm:$0xff] }
 0x181   :  { %v4412_v16 = vpop.eup %4411  ;;  %v2410_v17 = vpop.permute.xlu0 %2409  ;;  %4431 = vrcp.f32 %v1112_v12  ;;  %v1114_v19 = vadd.f32 1.0, %v4410_v13  ;;  %v3641_v9 = vmul.f32 -1.442695, %v216_v60  ;;  %v217_v10 = vld [vmem:[%s6943_s0 + $0x660] sm:$0xff]  ;;  %v3640_v13 = vmul.f32 -1.442695, %v215_v1 }
 0x182   :  { %v4414_v20 = vpop.eup %4413  ;;  %3321 = vst.msk [vmem:[%s6945_s2 + $0x398] sm:$0xff] %vm3205_vm0, %v3092_v14  ;;  %v3091_v21 = vmul.f32 %v2410_v17, %v1723_v11  ;;  %2729 = vperm.xlu0 %3667, %v4392_v47   ;;  %4433 = vrcp.f32 %v1111_v15  ;;  %v1113_v22 = vadd.f32 1.0, %v4412_v16  ;;  %v211_v47 = vld [vmem:[%s6943_s0 + $0x630] sm:$0xff]  ;;  %v220_v14 = vld [vmem:[%s6943_s0 + $0x678] sm:$0xff] }
 0x183   :  { %v4416_v23 = vpop.eup %4415  ;;  %v2425_v24 = vpop.permute.xlu1 %2424  ;;  %4435 = vrcp.f32 %v1114_v19  ;;  %v1116_v26 = vadd.f32 1.0, %v4414_v20  ;;  %v3636_v59 = vmul.f32 -1.442695, %v211_v47  ;;  %v1731_v17 = vld [vmem:[%s6944_s1 + $0x3d0] sm:$0xff]  ;;  %v1740_v1 = vld [vmem:[%s6944_s1 + $0x418] sm:$0xff] }
 0x184   :  { %v4418_v28 = vpop.eup %4417  ;;  %3320 = vst.msk [vmem:[%s6945_s2 + $0x390] sm:$0xff] %vm3205_vm0, %v3091_v21  ;;  %v3094_v29 = vmul.f32 %v2425_v24, %v1726_v18  ;;  %2744 = vperm.xlu1 %3668, %v6002_v51   ;;  %4437 = vrcp.f32 %v1113_v22  ;;  %v1115_v30 = vadd.f32 1.0, %v4416_v23  ;;  %v214_v51 = vld [vmem:[%s6943_s0 + $0x648] sm:$0xff]  ;;  %v3643_v18 = vmul.f32 -1.442695, %v218_v5  ;;  %v219_v19 = vld [vmem:[%s6943_s0 + $0x670] sm:$0xff] }
 0x185   :  { %v4420_v32 = vpop.eup %4419  ;;  %v2420_v33 = vpop.permute.xlu0 %2419  ;;  %4439 = vrcp.f32 %v1116_v26  ;;  %v1118_v35 = vadd.f32 1.0, %v4418_v28  ;;  %v3639_v0 = vmul.f32 -1.442695, %v214_v51  ;;  %v3642_v22 = vmul.f32 -1.442695, %v217_v10  ;;  %v1738_v51 = vld [vmem:[%s6944_s1 + $0x408] sm:$0xff] }
 0x186   :  { %v4422_v37 = vpop.eup %4421  ;;  %3323 = vst.msk [vmem:[%s6945_s2 + $0x3a8] sm:$0xff] %vm3205_vm0, %v3094_v29  ;;  %v3093_v38 = vmul.f32 %v2420_v33, %v1725_v25  ;;  %2739 = vperm.xlu0 %3667, %v6008_v54   ;;  %4441 = vrcp.f32 %v1115_v30  ;;  %v1117_v39 = vadd.f32 1.0, %v4420_v32  ;;  %v1730_v54 = vld [vmem:[%s6944_s1 + $0x3c8] sm:$0xff]  ;;  %v3645_v26 = vmul.f32 -1.442695, %v220_v14  ;;  %v1733_v32 = vld [vmem:[%s6944_s1 + $0x3e0] sm:$0xff] }
 0x187   :  { %v4424_v42 = vpop.eup %4423  ;;  %v2435_v43 = vpop.permute.xlu1 %2434  ;;  %4443 = vrcp.f32 %v1118_v35  ;;  %v1120_v45 = vadd.f32 1.0, %v4422_v37  ;;  %v1734_v25 = vld [vmem:[%s6944_s1 + $0x3e8] sm:$0xff]  ;;  %v3644_v29 = vmul.f32 -1.442695, %v219_v19  ;;  %v1736_v37 = vld [vmem:[%s6944_s1 + $0x3f8] sm:$0xff]  ;;  %v1739_v10 = vld [vmem:[%s6944_s1 + $0x410] sm:$0xff] }
 0x188   :  { %v4426_v48 = vpop.eup %4425  ;;  %3322 = vst.msk [vmem:[%s6945_s2 + $0x3a0] sm:$0xff] %vm3205_vm0, %v3093_v38  ;;  %v3096_v49 = vmul.f32 %v2435_v43, %v1728_v34  ;;  %2754 = vperm.xlu1 %3668, %v4424_v42   ;;  %4445 = vrcp.f32 %v1117_v39 }
 0x189   :  { %v4428_v52 = vpop.eup %4427  ;;  %v2430_v53 = vpop.permute.xlu0 %2429  ;;  %4447 = vrcp.f32 %v1120_v45 }
 0x18a   :  { %v4430_v57 = vpop.eup %4429  ;;  %3325 = vst.msk [vmem:[%s6945_s2 + $0x3b8] sm:$0xff] %vm3205_vm0, %v3096_v49  ;;  %v3095_v58 = vmul.f32 %v2430_v53, %v1727_v44  ;;  %2749 = vperm.xlu0 %3667, %v4426_v48   ;;  %4449 = vpow2.f32 %v3632_v40  ;;  %v1735_v44 = vld [vmem:[%s6944_s1 + $0x3f0] sm:$0xff] }
 0x18b   :  { %v4432_v61 = vpop.eup %4431  ;;  %v2445_v62 = vpop.permute.xlu1 %2444  ;;  %4451 = vpow2.f32 %v3635_v46 }
 0x18c   :  { %v4434_v2 = vpop.eup %4433  ;;  %3324 = vst.msk [vmem:[%s6945_s2 + $0x3b0] sm:$0xff] %vm3205_vm0, %v3095_v58  ;;  %v3098_v3 = vmul.f32 %v2445_v62, %v1730_v54  ;;  %2764 = vperm.xlu1 %3668, %v4428_v52   ;;  %4453 = vpow2.f32 %v3634_v50  ;;  %v1737_v58 = vld [vmem:[%s6944_s1 + $0x400] sm:$0xff] }
 0x18d   :  { %v4436_v6 = vpop.eup %4435  ;;  %v2440_v7 = vpop.permute.xlu0 %2439  ;;  %4455 = vpow2.f32 %v3637_v55 }
 0x18e   :  { %v4438_v11 = vpop.eup %4437  ;;  %3327 = vst.msk [vmem:[%s6945_s2 + $0x3c8] sm:$0xff] %vm3205_vm0, %v3098_v3  ;;  %v3097_v12 = vmul.f32 %v2440_v7, %v1729_v63  ;;  %2759 = vperm.xlu0 %3667, %v4430_v57   ;;  %4457 = vpow2.f32 %v3636_v59  ;;  %v222_v3 = vld [vmem:[%s6943_s0 + $0x688] sm:$0xff]  ;;  %v221_v7 = vld [vmem:[%s6943_s0 + $0x680] sm:$0xff] }
 0x18f   :  { %v4440_v15 = vpop.eup %4439  ;;  %v2455_v16 = vpop.permute.xlu1 %2454  ;;  %4459 = vpow2.f32 %v3639_v0 }
 0x190   :  { %v4442_v20 = vpop.eup %4441  ;;  %3326 = vst.msk [vmem:[%s6945_s2 + $0x3c0] sm:$0xff] %vm3205_vm0, %v3097_v12  ;;  %v3100_v21 = vmul.f32 %v2455_v16, %v1732_v8  ;;  %2774 = vperm.xlu1 %3668, %v4432_v61   ;;  %4461 = vpow2.f32 %v3638_v4  ;;  %v224_v12 = vld [vmem:[%s6943_s0 + $0x698] sm:$0xff]  ;;  %v3647_v16 = vmul.f32 -1.442695, %v222_v3 }
 0x191   :  { %v4444_v23 = vpop.eup %4443  ;;  %v2450_v24 = vpop.permute.xlu0 %2449  ;;  %4463 = vpow2.f32 %v3641_v9 }
 0x192   :  { %v6138_v27 = vpop.eup %4445  ;;  %3329 = vst.msk [vmem:[%s6945_s2 + $0x3d8] sm:$0xff] %vm3205_vm0, %v3100_v21  ;;  %v3099_v28 = vmul.f32 %v2450_v24, %v1731_v17  ;;  %2769 = vperm.xlu0 %3667, %v4434_v2   ;;  %4465 = vpow2.f32 %v3640_v13  ;;  %v223_v17 = vld [vmem:[%s6943_s0 + $0x690] sm:$0xff] }
 0x193   :  { %v6144_v30 = vpop.eup %4447  ;;  %v2465_v31 = vpop.permute.xlu1 %2464  ;;  %4467 = vpow2.f32 %v3643_v18 }
 0x194   :  { %v4450_v33 = vpop.eup %4449  ;;  %3328 = vst.msk [vmem:[%s6945_s2 + $0x3d0] sm:$0xff] %vm3205_vm0, %v3099_v28  ;;  %v3102_v34 = vmul.f32 %v2465_v31, %v1734_v25  ;;  %2784 = vperm.xlu1 %3668, %v4436_v6   ;;  %4469 = vpow2.f32 %v3642_v22  ;;  %v3646_v22 = vmul.f32 -1.442695, %v221_v7  ;;  %v3648_v31 = vmul.f32 -1.442695, %v223_v17 }
 0x195   :  { %v4452_v35 = vpop.eup %4451  ;;  %v2460_v36 = vpop.permute.xlu0 %2459  ;;  %v1119_v38 = vadd.f32 1.0, %v4450_v33  ;;  %4471 = vpow2.f32 %v3645_v26  ;;  %v3649_v26 = vmul.f32 -1.442695, %v224_v12  ;;  %v234_v12 = vld [vmem:[%s6943_s0 + $0x6e8] sm:$0xff] }
 0x196   :  { %v4454_v39 = vpop.eup %4453  ;;  %3331 = vst.msk [vmem:[%s6945_s2 + $0x3e8] sm:$0xff] %vm3205_vm0, %v3102_v34  ;;  %v3101_v40 = vmul.f32 %v2460_v36, %v1733_v32  ;;  %2779 = vperm.xlu0 %3667, %v4438_v11   ;;  %v1122_v41 = vadd.f32 1.0, %v4452_v35  ;;  %4473 = vpow2.f32 %v3644_v29  ;;  %v228_v32 = vld [vmem:[%s6943_s0 + $0x6b8] sm:$0xff]  ;;  %v227_v36 = vld [vmem:[%s6943_s0 + $0x6b0] sm:$0xff] }
 0x197   :  { %v4456_v42 = vpop.eup %4455  ;;  %v2475_v43 = vpop.permute.xlu1 %2474  ;;  %4475 = vrcp.f32 %v1119_v38  ;;  %v1121_v45 = vadd.f32 1.0, %v4454_v39  ;;  %v1744_v39 = vld [vmem:[%s6944_s1 + $0x438] sm:$0xff] }
 0x198   :  { %v4458_v46 = vpop.eup %4457  ;;  %3330 = vst.msk [vmem:[%s6945_s2 + $0x3e0] sm:$0xff] %vm3205_vm0, %v3101_v40  ;;  %v3104_v47 = vmul.f32 %v2475_v43, %v1736_v37  ;;  %2794 = vperm.xlu1 %3668, %v4440_v15   ;;  %4477 = vrcp.f32 %v1122_v41  ;;  %v1124_v48 = vadd.f32 1.0, %v4456_v42  ;;  %v230_v41 = vld [vmem:[%s6943_s0 + $0x6c8] sm:$0xff] }
 0x199   :  { %v4460_v49 = vpop.eup %4459  ;;  %v2470_v50 = vpop.permute.xlu0 %2469  ;;  %4479 = vrcp.f32 %v1121_v45  ;;  %v1123_v52 = vadd.f32 1.0, %v4458_v46  ;;  %v229_v45 = vld [vmem:[%s6943_s0 + $0x6c0] sm:$0xff] }
 0x19a   :  { %v4462_v53 = vpop.eup %4461  ;;  %3333 = vst.msk [vmem:[%s6945_s2 + $0x3f8] sm:$0xff] %vm3205_vm0, %v3104_v47  ;;  %v3103_v54 = vmul.f32 %v2470_v50, %v1735_v44  ;;  %2789 = vperm.xlu0 %3667, %v4442_v20   ;;  %4481 = vrcp.f32 %v1124_v48  ;;  %v1126_v55 = vadd.f32 1.0, %v4460_v49  ;;  %v1742_v20 = vld [vmem:[%s6944_s1 + $0x428] sm:$0xff]  ;;  %v3653_v44 = vmul.f32 -1.442695, %v228_v32  ;;  %v1743_v48 = vld [vmem:[%s6944_s1 + $0x430] sm:$0xff] }
 0x19b   :  { %v4464_v56 = vpop.eup %4463  ;;  %v2485_v57 = vpop.permute.xlu1 %2484  ;;  %4483 = vrcp.f32 %v1123_v52  ;;  %v1125_v59 = vadd.f32 1.0, %v4462_v53  ;;  %v3652_v49 = vmul.f32 -1.442695, %v227_v36  ;;  %v232_v50 = vld [vmem:[%s6943_s0 + $0x6d8] sm:$0xff]  ;;  %v3655_v53 = vmul.f32 -1.442695, %v230_v41 }
 0x19c   :  { %v4466_v60 = vpop.eup %4465  ;;  %3332 = vst.msk [vmem:[%s6945_s2 + $0x3f0] sm:$0xff] %vm3205_vm0, %v3103_v54  ;;  %v3106_v61 = vmul.f32 %v2485_v57, %v1738_v51  ;;  %2804 = vperm.xlu1 %3668, %v4444_v23   ;;  %4485 = vrcp.f32 %v1126_v55  ;;  %v1128_v62 = vadd.f32 1.0, %v4464_v56  ;;  %v226_v23 = vld [vmem:[%s6943_s0 + $0x6a8] sm:$0xff]  ;;  %v3654_v57 = vmul.f32 -1.442695, %v229_v45  ;;  %v1751_v41 = vld [vmem:[%s6944_s1 + $0x470] sm:$0xff] }
 0x19d   :  { %v4468_v63 = vpop.eup %4467  ;;  %v2480_v0 = vpop.permute.xlu0 %2479  ;;  %4487 = vrcp.f32 %v1125_v59  ;;  %v1127_v2 = vadd.f32 1.0, %v4466_v60  ;;  %v3651_v35 = vmul.f32 -1.442695, %v226_v23  ;;  %v1746_v56 = vld [vmem:[%s6944_s1 + $0x448] sm:$0xff]  ;;  %v3657_v60 = vmul.f32 -1.442695, %v232_v50 }
 0x19e   :  { %v4470_v4 = vpop.eup %4469  ;;  %3335 = vst.msk [vmem:[%s6945_s2 + $0x408] sm:$0xff] %vm3205_vm0, %v3106_v61  ;;  %v3105_v5 = vmul.f32 %v2480_v0, %v1737_v58  ;;  %2799 = vperm.xlu0 %3667, %v6138_v27   ;;  %4489 = vrcp.f32 %v1128_v62  ;;  %v1130_v6 = vadd.f32 1.0, %v4468_v63  ;;  %v225_v27 = vld [vmem:[%s6943_s0 + $0x6a0] sm:$0xff] }
 0x19f   :  { %v4472_v8 = vpop.eup %4471  ;;  %v2495_v9 = vpop.permute.xlu1 %2494  ;;  %4491 = vrcp.f32 %v1127_v2  ;;  %v1129_v11 = vadd.f32 1.0, %v4470_v4  ;;  %v3650_v40 = vmul.f32 -1.442695, %v225_v27  ;;  %v1745_v63 = vld [vmem:[%s6944_s1 + $0x440] sm:$0xff]  ;;  %v1748_v4 = vld [vmem:[%s6944_s1 + $0x458] sm:$0xff] }
 0x1a0   :  { %v4474_v13 = vpop.eup %4473  ;;  %3334 = vst.msk [vmem:[%s6945_s2 + $0x400] sm:$0xff] %vm3205_vm0, %v3105_v5  ;;  %v3108_v14 = vmul.f32 %v2495_v9, %v1740_v1  ;;  %2814 = vperm.xlu1 %3668, %v6144_v30   ;;  %4493 = vrcp.f32 %v1130_v6  ;;  %v1132_v15 = vadd.f32 1.0, %v4472_v8  ;;  %v1741_v30 = vld [vmem:[%s6944_s1 + $0x420] sm:$0xff]  ;;  %v231_v5 = vld [vmem:[%s6943_s0 + $0x6d0] sm:$0xff] }
 0x1a1   :  { %v4476_v18 = vpop.eup %4475  ;;  %v2490_v19 = vpop.permute.xlu0 %2489  ;;  %4495 = vrcp.f32 %v1129_v11  ;;  %v1131_v21 = vadd.f32 1.0, %v4474_v13  ;;  %v1749_v27 = vld [vmem:[%s6944_s1 + $0x460] sm:$0xff] }
 0x1a2   :  { %v4478_v24 = vpop.eup %4477  ;;  %3337 = vst.msk [vmem:[%s6945_s2 + $0x418] sm:$0xff] %vm3205_vm0, %v3108_v14  ;;  %v3107_v25 = vmul.f32 %v2490_v19, %v1739_v10  ;;  %2809 = vperm.xlu0 %3667, %v4476_v18   ;;  %4497 = vrcp.f32 %v1132_v15  ;;  %v1747_v10 = vld [vmem:[%s6944_s1 + $0x450] sm:$0xff]  ;;  %v1750_v19 = vld [vmem:[%s6944_s1 + $0x468] sm:$0xff] }
 0x1a3   :  { %v4480_v28 = vpop.eup %4479  ;;  %v2505_v29 = vpop.permute.xlu1 %2504  ;;  %4499 = vrcp.f32 %v1131_v21 }
 0x1a4   :  { %v4482_v33 = vpop.eup %4481  ;;  %3336 = vst.msk [vmem:[%s6945_s2 + $0x410] sm:$0xff] %vm3205_vm0, %v3107_v25  ;;  %v3110_v34 = vmul.f32 %v2505_v29, %v1742_v20  ;;  %2824 = vperm.xlu1 %3668, %v4478_v24   ;;  %4501 = vpow2.f32 %v3647_v16  ;;  %v3656_v16 = vmul.f32 -1.442695, %v231_v5  ;;  %v3659_v24 = vmul.f32 -1.442695, %v234_v12 }
 0x1a5   :  { %v4484_v37 = vpop.eup %4483  ;;  %v2500_v38 = vpop.permute.xlu0 %2499  ;;  %4503 = vpow2.f32 %v3646_v22 }
 0x1a6   :  { %v4486_v42 = vpop.eup %4485  ;;  %3339 = vst.msk [vmem:[%s6945_s2 + $0x428] sm:$0xff] %vm3205_vm0, %v3110_v34  ;;  %v3109_v43 = vmul.f32 %v2500_v38, %v1741_v30  ;;  %2819 = vperm.xlu0 %3667, %v4480_v28   ;;  %4505 = vpow2.f32 %v3649_v26  ;;  %v1752_v34 = vld [vmem:[%s6944_s1 + $0x478] sm:$0xff] }
 0x1a7   :  { %v4488_v46 = vpop.eup %4487  ;;  %v2515_v47 = vpop.permute.xlu1 %2514  ;;  %4507 = vpow2.f32 %v3648_v31 }
 0x1a8   :  { %v4490_v51 = vpop.eup %4489  ;;  %3338 = vst.msk [vmem:[%s6945_s2 + $0x420] sm:$0xff] %vm3205_vm0, %v3109_v43  ;;  %v3112_v52 = vmul.f32 %v2515_v47, %v1744_v39  ;;  %2834 = vperm.xlu1 %3668, %v4482_v33   ;;  %4509 = vpow2.f32 %v3651_v35  ;;  %v233_v43 = vld [vmem:[%s6943_s0 + $0x6e0] sm:$0xff]  ;;  %v236_v47 = vld [vmem:[%s6943_s0 + $0x6f8] sm:$0xff] }
 0x1a9   :  { %v4492_v54 = vpop.eup %4491  ;;  %v2510_v55 = vpop.permute.xlu0 %2509  ;;  %4511 = vpow2.f32 %v3650_v40 }
 0x1aa   :  { %v4494_v58 = vpop.eup %4493  ;;  %3341 = vst.msk [vmem:[%s6945_s2 + $0x438] sm:$0xff] %vm3205_vm0, %v3112_v52  ;;  %v3111_v59 = vmul.f32 %v2510_v55, %v1743_v48  ;;  %2829 = vperm.xlu0 %3667, %v4484_v37   ;;  %4513 = vpow2.f32 %v3653_v44 }
 0x1ab   :  { %v4496_v61 = vpop.eup %4495  ;;  %v2525_v62 = vpop.permute.xlu1 %2524  ;;  %4515 = vpow2.f32 %v3652_v49  ;;  %v1754_v49 = vld [vmem:[%s6944_s1 + $0x488] sm:$0xff] }
 0x1ac   :  { %v6268_v0 = vpop.eup %4497  ;;  %3340 = vst.msk [vmem:[%s6945_s2 + $0x430] sm:$0xff] %vm3205_vm0, %v3111_v59  ;;  %v3114_v1 = vmul.f32 %v2525_v62, %v1746_v56  ;;  %2844 = vperm.xlu1 %3668, %v4486_v42   ;;  %4517 = vpow2.f32 %v3655_v53  ;;  %v3658_v53 = vmul.f32 -1.442695, %v233_v43  ;;  %v237_v59 = vld [vmem:[%s6943_s0 + $0x700] sm:$0xff] }
 0x1ad   :  { %v6274_v2 = vpop.eup %4499  ;;  %v2520_v3 = vpop.permute.xlu0 %2519  ;;  %4519 = vpow2.f32 %v3654_v57  ;;  %v1753_v57 = vld [vmem:[%s6944_s1 + $0x480] sm:$0xff] }
 0x1ae   :  { %v4502_v6 = vpop.eup %4501  ;;  %3343 = vst.msk [vmem:[%s6945_s2 + $0x448] sm:$0xff] %vm3205_vm0, %v3114_v1  ;;  %v3113_v7 = vmul.f32 %v2520_v3, %v1745_v63  ;;  %2839 = vperm.xlu0 %3667, %v4488_v46   ;;  %4521 = vpow2.f32 %v3657_v60  ;;  %v240_v63 = vld [vmem:[%s6943_s0 + $0x718] sm:$0xff] }
 0x1af   :  { %v4504_v8 = vpop.eup %4503  ;;  %v2535_v9 = vpop.permute.xlu1 %2534  ;;  %v1134_v11 = vadd.f32 1.0, %v4502_v6 }
 0x1b0   :  { %v4506_v13 = vpop.eup %4505  ;;  %3342 = vst.msk [vmem:[%s6945_s2 + $0x440] sm:$0xff] %vm3205_vm0, %v3113_v7  ;;  %v3116_v14 = vmul.f32 %v2535_v9, %v1748_v4  ;;  %2854 = vperm.xlu1 %3668, %v4490_v51   ;;  %v1133_v15 = vadd.f32 1.0, %v4504_v8  ;;  %v235_v51 = vld [vmem:[%s6943_s0 + $0x6f0] sm:$0xff]  ;;  %v3662_v7 = vmul.f32 -1.442695, %v237_v59 }
 0x1b1   :  { %v4508_v17 = vpop.eup %4507  ;;  %v2530_v18 = vpop.permute.xlu0 %2529  ;;  %4523 = vrcp.f32 %v1134_v11  ;;  %v1136_v20 = vadd.f32 1.0, %v4506_v13  ;;  %v3660_v62 = vmul.f32 -1.442695, %v235_v51  ;;  %v239_v4 = vld [vmem:[%s6943_s0 + $0x710] sm:$0xff]  ;;  %v3665_v11 = vmul.f32 -1.442695, %v240_v63 }
 0x1b2   :  { %v4510_v21 = vpop.eup %4509  ;;  %3345 = vst.msk [vmem:[%s6945_s2 + $0x458] sm:$0xff] %vm3205_vm0, %v3116_v14  ;;  %v3115_v22 = vmul.f32 %v2530_v18, %v1747_v10  ;;  %2849 = vperm.xlu0 %3667, %v4492_v54   ;;  %4525 = vrcp.f32 %v1133_v15  ;;  %v1135_v23 = vadd.f32 1.0, %v4508_v17  ;;  %v238_v54 = vld [vmem:[%s6943_s0 + $0x708] sm:$0xff]  ;;  %v1755_v10 = vld [vmem:[%s6944_s1 + $0x490] sm:$0xff]  ;;  %v3664_v14 = vmul.f32 -1.442695, %v239_v4 }
 0x1b3   :  { %v4512_v25 = vpop.eup %4511  ;;  %v2545_v26 = vpop.permute.xlu1 %2544  ;;  %4527 = vrcp.f32 %v1136_v20  ;;  %v1138_v28 = vadd.f32 1.0, %v4510_v21  ;;  %v3663_v3 = vmul.f32 -1.442695, %v238_v54  ;;  %v1758_v17 = vld [vmem:[%s6944_s1 + $0x4a8] sm:$0xff]  ;;  %v1763_v59 = vld [vmem:[%s6944_s1 + $0x4d0] sm:$0xff]  ;;  %v1765_v4 = vld [vmem:[%s6944_s1 + $0x4e0] sm:$0xff] }
 0x1b4   :  { %v4514_v29 = vpop.eup %4513  ;;  %3344 = vst.msk [vmem:[%s6945_s2 + $0x450] sm:$0xff] %vm3205_vm0, %v3115_v22  ;;  %v3118_v30 = vmul.f32 %v2545_v26, %v1750_v19  ;;  %2864 = vperm.xlu1 %3668, %v4494_v58   ;;  %v1137_v31 = vadd.f32 1.0, %v4512_v25  ;;  %4529 = vpow2.f32 %v3656_v16  ;;  %v3661_v58 = vmul.f32 -1.442695, %v236_v47 }
 0x1b5   :  { %v4516_v32 = vpop.eup %4515  ;;  %v2540_v33 = vpop.permute.xlu0 %2539  ;;  %4531 = vrcp.f32 %v1135_v23  ;;  %v1140_v35 = vadd.f32 1.0, %v4514_v29  ;;  %v1757_v23 = vld [vmem:[%s6944_s1 + $0x4a0] sm:$0xff]  ;;  %v1760_v29 = vld [vmem:[%s6944_s1 + $0x4b8] sm:$0xff] }
 0x1b6   :  { %v4518_v36 = vpop.eup %4517  ;;  %3347 = vst.msk [vmem:[%s6945_s2 + $0x468] sm:$0xff] %vm3205_vm0, %v3118_v30  ;;  %v3117_v37 = vmul.f32 %v2540_v33, %v1749_v27  ;;  %2859 = vperm.xlu0 %3667, %v4496_v61   ;;  %v1139_v38 = vadd.f32 1.0, %v4516_v32  ;;  %4533 = vpow2.f32 %v3659_v24 }
 0x1b7   :  { %v4520_v39 = vpop.eup %4519  ;;  %v2555_v40 = vpop.permute.xlu1 %2554  ;;  %4535 = vrcp.f32 %v1138_v28  ;;  %v1142_v42 = vadd.f32 1.0, %v4518_v36 }
 0x1b8   :  { %v4522_v44 = vpop.eup %4521  ;;  %3346 = vst.msk [vmem:[%s6945_s2 + $0x460] sm:$0xff] %vm3205_vm0, %v3117_v37  ;;  %v3120_v45 = vmul.f32 %v2555_v40, %v1752_v34  ;;  %2874 = vperm.xlu1 %3668, %v6268_v0   ;;  %4537 = vrcp.f32 %v1137_v31  ;;  %v1141_v46 = vadd.f32 1.0, %v4520_v39  ;;  %v1759_v34 = vld [vmem:[%s6944_s1 + $0x4b0] sm:$0xff]  ;;  %v1762_v39 = vld [vmem:[%s6944_s1 + $0x4c8] sm:$0xff] }
 0x1b9   :  { %v2550_v48 = vpop.permute.xlu0 %2549  ;;  %4539 = vrcp.f32 %v1140_v35  ;;  %v1144_v50 = vadd.f32 1.0, %v4522_v44 }
 0x1ba   :  { %3349 = vst.msk [vmem:[%s6945_s2 + $0x478] sm:$0xff] %vm3205_vm0, %v3120_v45  ;;  %v3119_v52 = vmul.f32 %v2550_v48, %v1751_v41  ;;  %2869 = vperm.xlu0 %3667, %v6274_v2   ;;  %4541 = vrcp.f32 %v1139_v38  ;;  %v1756_v2 = vld [vmem:[%s6944_s1 + $0x498] sm:$0xff] }
 0x1bb   :  { %v4524_v55 = vpop.eup %4523  ;;  %v2565_v56 = vpop.permute.xlu1 %2564  ;;  %4543 = vrcp.f32 %v1142_v42 }
 0x1bc   :  { %v4526_v60 = vpop.eup %4525  ;;  %3348 = vst.msk [vmem:[%s6945_s2 + $0x470] sm:$0xff] %vm3205_vm0, %v3119_v52  ;;  %v3122_v61 = vmul.f32 %v2565_v56, %v1754_v49  ;;  %2884 = vperm.xlu1 %3668, %v4524_v55   ;;  %4545 = vrcp.f32 %v1141_v46  ;;  %v1761_v46 = vld [vmem:[%s6944_s1 + $0x4c0] sm:$0xff] }
 0x1bd   :  { %v4528_v0 = vpop.eup %4527  ;;  %v2560_v1 = vpop.permute.xlu0 %2559  ;;  %4547 = vrcp.f32 %v1144_v50 }
 0x1be   :  { %v4530_v5 = vpop.eup %4529  ;;  %3351 = vst.msk [vmem:[%s6945_s2 + $0x488] sm:$0xff] %vm3205_vm0, %v3122_v61  ;;  %v3121_v6 = vmul.f32 %v2560_v1, %v1753_v57  ;;  %2879 = vperm.xlu0 %3667, %v4526_v60   ;;  %4549 = vpow2.f32 %v3658_v53  ;;  %v1764_v53 = vld [vmem:[%s6944_s1 + $0x4d8] sm:$0xff] }
 0x1bf   :  { %v4532_v8 = vpop.eup %4531  ;;  %v2575_v9 = vpop.permute.xlu1 %2574  ;;  %4551 = vpow2.f32 %v3661_v58  ;;  %v1143_v18 = vadd.f32 1.0, %v4530_v5 }
 0x1c0   :  { %v4534_v12 = vpop.eup %4533  ;;  %3350 = vst.msk [vmem:[%s6945_s2 + $0x480] sm:$0xff] %vm3205_vm0, %v3121_v6  ;;  %v3124_v13 = vmul.f32 %v2575_v9, %v1756_v2  ;;  %2894 = vperm.xlu1 %3668, %v4528_v0   ;;  %4553 = vpow2.f32 %v3660_v62  ;;  %v1766_v0 = vld [vmem:[%s6944_s1 + $0x4e8] sm:$0xff] }
 0x1c1   :  { %v4536_v15 = vpop.eup %4535  ;;  %v2570_v16 = vpop.permute.xlu0 %2569  ;;  %4555 = vpow2.f32 %v3663_v3  ;;  %v1146_v24 = vadd.f32 1.0, %v4534_v12 }
 0x1c2   :  { %v4538_v19 = vpop.eup %4537  ;;  %3353 = vst.msk [vmem:[%s6945_s2 + $0x498] sm:$0xff] %vm3205_vm0, %v3124_v13  ;;  %v3123_v20 = vmul.f32 %v2570_v16, %v1755_v10  ;;  %2889 = vperm.xlu0 %3667, %v4532_v8   ;;  %4557 = vpow2.f32 %v3662_v7  ;;  %v1768_v8 = vld [vmem:[%s6944_s1 + $0x4f8] sm:$0xff]  ;;  %v1767_v13 = vld [vmem:[%s6944_s1 + $0x4f0] sm:$0xff] }
 0x1c3   :  { %v4540_v21 = vpop.eup %4539  ;;  %v2585_v22 = vpop.permute.xlu1 %2584  ;;  %4559 = vpow2.f32 %v3665_v11 }
 0x1c4   :  { %v4542_v25 = vpop.eup %4541  ;;  %3352 = vst.msk [vmem:[%s6945_s2 + $0x490] sm:$0xff] %vm3205_vm0, %v3123_v20  ;;  %v3126_v26 = vmul.f32 %v2585_v22, %v1758_v17  ;;  %2904 = vperm.xlu1 %3668, %v4536_v15   ;;  %4561 = vpow2.f32 %v3664_v14  ;;  %v1770_v17 = vld [vmem:[%s6944_s1 + $0x508] sm:$0xff] }
 0x1c5   :  { %v4544_v27 = vpop.eup %4543  ;;  %v2580_v28 = vpop.permute.xlu0 %2579  ;;  %4563 = vrcp.f32 %v1143_v18 }
 0x1c6   :  { %v4546_v30 = vpop.eup %4545  ;;  %3355 = vst.msk [vmem:[%s6945_s2 + $0x4a8] sm:$0xff] %vm3205_vm0, %v3126_v26  ;;  %v3125_v31 = vmul.f32 %v2580_v28, %v1757_v23  ;;  %2899 = vperm.xlu0 %3667, %v4538_v19   ;;  %4565 = vrcp.f32 %v1146_v24 }
 0x1c7   :  { %v4548_v32 = vpop.eup %4547  ;;  %v2595_v33 = vpop.permute.xlu1 %2594 }
 0x1c8   :  { %v4550_v35 = vpop.eup %4549  ;;  %3354 = vst.msk [vmem:[%s6945_s2 + $0x4a0] sm:$0xff] %vm3205_vm0, %v3125_v31  ;;  %v3128_v36 = vmul.f32 %v2595_v33, %v1760_v29  ;;  %2914 = vperm.xlu1 %3668, %v4540_v21   ;;  %v1769_v21 = vld [vmem:[%s6944_s1 + $0x500] sm:$0xff]  ;;  %v1771_v29 = vld [vmem:[%s6944_s1 + $0x510] sm:$0xff] }
 0x1c9   :  { %v4552_v37 = vpop.eup %4551  ;;  %v2590_v38 = vpop.permute.xlu0 %2589  ;;  %v1145_v40 = vadd.f32 1.0, %v4550_v35  ;;  %v1773_v35 = vld [vmem:[%s6944_s1 + $0x520] sm:$0xff] }
 0x1ca   :  { %v4554_v41 = vpop.eup %4553  ;;  %3357 = vst.msk [vmem:[%s6945_s2 + $0x4b8] sm:$0xff] %vm3205_vm0, %v3128_v36  ;;  %v3127_v42 = vmul.f32 %v2590_v38, %v1759_v34  ;;  %2909 = vperm.xlu0 %3667, %v4542_v25   ;;  %v1148_v43 = vadd.f32 1.0, %v4552_v37  ;;  %v1772_v25 = vld [vmem:[%s6944_s1 + $0x518] sm:$0xff] }
 0x1cb   :  { %v4556_v44 = vpop.eup %4555  ;;  %v2605_v45 = vpop.permute.xlu1 %2604  ;;  %4567 = vrcp.f32 %v1145_v40  ;;  %v1147_v47 = vadd.f32 1.0, %v4554_v41  ;;  %v1776_v38 = vld [vmem:[%s6944_s1 + $0x538] sm:$0xff]  ;;  %v1775_v41 = vld [vmem:[%s6944_s1 + $0x530] sm:$0xff] }
 0x1cc   :  { %v4558_v48 = vpop.eup %4557  ;;  %3356 = vst.msk [vmem:[%s6945_s2 + $0x4b0] sm:$0xff] %vm3205_vm0, %v3127_v42  ;;  %v3130_v49 = vmul.f32 %v2605_v45, %v1762_v39  ;;  %2924 = vperm.xlu1 %3668, %v4544_v27   ;;  %4569 = vrcp.f32 %v1148_v43  ;;  %v1150_v50 = vadd.f32 1.0, %v4556_v44  ;;  %v1778_v44 = vld [vmem:[%s6944_s1 + $0x548] sm:$0xff] }
 0x1cd   :  { %v4560_v51 = vpop.eup %4559  ;;  %v2600_v52 = vpop.permute.xlu0 %2599  ;;  %4571 = vrcp.f32 %v1147_v47  ;;  %v1149_v54 = vadd.f32 1.0, %v4558_v48  ;;  %v1777_v47 = vld [vmem:[%s6944_s1 + $0x540] sm:$0xff] }
 0x1ce   :  { %v4562_v55 = vpop.eup %4561  ;;  %3359 = vst.msk [vmem:[%s6945_s2 + $0x4c8] sm:$0xff] %vm3205_vm0, %v3130_v49  ;;  %v3129_v56 = vmul.f32 %v2600_v52, %v1761_v46  ;;  %2919 = vperm.xlu0 %3667, %v4546_v30   ;;  %4573 = vrcp.f32 %v1150_v50  ;;  %v1152_v60 = vadd.f32 1.0, %v4560_v51  ;;  %v1780_v50 = vld [vmem:[%s6944_s1 + $0x558] sm:$0xff] }
 0x1cf   :  { %v4564_v57 = vpop.eup %4563  ;;  %v2615_v58 = vpop.permute.xlu1 %2614  ;;  %4575 = vrcp.f32 %v1149_v54  ;;  %v1151_v1 = vadd.f32 1.0, %v4562_v55 }
 0x1d0   :  { %3358 = vst.msk [vmem:[%s6945_s2 + $0x4c0] sm:$0xff] %vm3205_vm0, %v3129_v56  ;;  %v3132_v61 = vmul.f32 %v2615_v58, %v1764_v53  ;;  %2934 = vperm.xlu1 %3668, %v4548_v32   ;;  %v4566_v62 = vpop.eup %4565  ;;  %4577 = vrcp.f32 %v1152_v60  ;;  %v1774_v32 = vld [vmem:[%s6944_s1 + $0x528] sm:$0xff]  ;;  %v1779_v53 = vld [vmem:[%s6944_s1 + $0x550] sm:$0xff] }
 0x1d1   :  { %v2610_v63 = vpop.permute.xlu0 %2609  ;;  %4579 = vrcp.f32 %v1151_v1  ;;  %v1782_v56 = vld [vmem:[%s6944_s1 + $0x568] sm:$0xff]  ;;  %v1783_v1 = vld [vmem:[%s6944_s1 + $0x570] sm:$0xff] }
 0x1d2   :  { %3361 = vst.msk [vmem:[%s6945_s2 + $0x4d8] sm:$0xff] %vm3205_vm0, %v3132_v61  ;;  %v3131_v2 = vmul.f32 %v2610_v63, %v1763_v59  ;;  %2929 = vperm.xlu0 %3667, %v4564_v57   ;;  %v1781_v59 = vld [vmem:[%s6944_s1 + $0x560] sm:$0xff] }
 0x1d3   :  { %v2625_v3 = vpop.permute.xlu1 %2624 }
 0x1d4   :  { %3360 = vst.msk [vmem:[%s6945_s2 + $0x4d0] sm:$0xff] %vm3205_vm0, %v3131_v2  ;;  %v3134_v5 = vmul.f32 %v2625_v3, %v1766_v0  ;;  %2944 = vperm.xlu1 %3668, %v4566_v62   ;;  %v1784_v62 = vld [vmem:[%s6944_s1 + $0x578] sm:$0xff] }
 0x1d5   :  { %v4568_v6 = vpop.eup %4567  ;;  %v2620_v7 = vpop.permute.xlu0 %2619 }
 0x1d6   :  { %v4570_v9 = vpop.eup %4569  ;;  %3363 = vst.msk [vmem:[%s6945_s2 + $0x4e8] sm:$0xff] %vm3205_vm0, %v3134_v5  ;;  %v3133_v10 = vmul.f32 %v2620_v7, %v1765_v4  ;;  %2939 = vperm.xlu0 %3667, %v4568_v6   ;;  %v1786_v4 = vld [vmem:[%s6944_s1 + $0x588] sm:$0xff]  ;;  %v1785_v7 = vld [vmem:[%s6944_s1 + $0x580] sm:$0xff] }
 0x1d7   :  { %v4572_v11 = vpop.eup %4571  ;;  %v2635_v12 = vpop.permute.xlu1 %2634 }
 0x1d8   :  { %3362 = vst.msk [vmem:[%s6945_s2 + $0x4e0] sm:$0xff] %vm3205_vm0, %v3133_v10  ;;  %v3136_v14 = vmul.f32 %v2635_v12, %v1768_v8  ;;  %2954 = vperm.xlu1 %3668, %v4570_v9   ;;  %v4574_v15 = vpop.eup %4573  ;;  %v1788_v10 = vld [vmem:[%s6944_s1 + $0x598] sm:$0xff] }
 0x1d9   :  { %v2630_v16 = vpop.permute.xlu0 %2629  ;;  %v4576_v19 = vpop.eup %4575 }
 0x1da   :  { %3365 = vst.msk [vmem:[%s6945_s2 + $0x4f8] sm:$0xff] %vm3205_vm0, %v3136_v14  ;;  %v3135_v18 = vmul.f32 %v2630_v16, %v1767_v13  ;;  %2949 = vperm.xlu0 %3667, %v4572_v11   ;;  %v4578_v23 = vpop.eup %4577  ;;  %v1787_v13 = vld [vmem:[%s6944_s1 + $0x590] sm:$0xff]  ;;  %v1790_v16 = vld [vmem:[%s6944_s1 + $0x5a8] sm:$0xff] }
 0x1db   :  { %v2645_v20 = vpop.permute.xlu1 %2644  ;;  %v4580_v27 = vpop.eup %4579 }
 0x1dc   :  { %3364 = vst.msk [vmem:[%s6945_s2 + $0x4f0] sm:$0xff] %vm3205_vm0, %v3135_v18  ;;  %v3138_v22 = vmul.f32 %v2645_v20, %v1770_v17  ;;  %2964 = vperm.xlu1 %3668, %v4574_v15  }
 0x1dd   :  { %v2640_v24 = vpop.permute.xlu0 %2639 }
 0x1de   :  { %3367 = vst.msk [vmem:[%s6945_s2 + $0x508] sm:$0xff] %vm3205_vm0, %v3138_v22  ;;  %v3137_v26 = vmul.f32 %v2640_v24, %v1769_v21  ;;  %2959 = vperm.xlu0 %3667, %v4576_v19   ;;  %v1789_v19 = vld [vmem:[%s6944_s1 + $0x5a0] sm:$0xff]  ;;  %v1792_v22 = vld [vmem:[%s6944_s1 + $0x5b8] sm:$0xff] }
 0x1df   :  { %v2655_v28 = vpop.permute.xlu1 %2654 }
 0x1e0   :  { %3366 = vst.msk [vmem:[%s6945_s2 + $0x500] sm:$0xff] %vm3205_vm0, %v3137_v26  ;;  %v3140_v30 = vmul.f32 %v2655_v28, %v1772_v25  ;;  %2974 = vperm.xlu1 %3668, %v4578_v23   ;;  %v1791_v25 = vld [vmem:[%s6944_s1 + $0x5b0] sm:$0xff]  ;;  %v1794_v28 = vld [vmem:[%s6944_s1 + $0x5c8] sm:$0xff] }
 0x1e1   :  { %v2650_v31 = vpop.permute.xlu0 %2649 }
 0x1e2   :  { %3369 = vst.msk [vmem:[%s6945_s2 + $0x518] sm:$0xff] %vm3205_vm0, %v3140_v30  ;;  %v3139_v33 = vmul.f32 %v2650_v31, %v1771_v29  ;;  %2969 = vperm.xlu0 %3667, %v4580_v27   ;;  %v1793_v31 = vld [vmem:[%s6944_s1 + $0x5c0] sm:$0xff] }
 0x1e3   :  { %v2665_v34 = vpop.permute.xlu1 %2664 }
 0x1e4   :  { %3368 = vst.msk [vmem:[%s6945_s2 + $0x510] sm:$0xff] %vm3205_vm0, %v3139_v33  ;;  %v3142_v36 = vmul.f32 %v2665_v34, %v1774_v32  ;;  %v1796_v34 = vld [vmem:[%s6944_s1 + $0x5d8] sm:$0xff] }
 0x1e5   :  { %v2660_v37 = vpop.permute.xlu0 %2659 }
 0x1e6   :  { %3371 = vst.msk [vmem:[%s6945_s2 + $0x528] sm:$0xff] %vm3205_vm0, %v3142_v36  ;;  %v3141_v39 = vmul.f32 %v2660_v37, %v1773_v35  ;;  %v1795_v37 = vld [vmem:[%s6944_s1 + $0x5d0] sm:$0xff] }
 0x1e7   :  { %v2675_v40 = vpop.permute.xlu1 %2674 }
 0x1e8   :  { %3370 = vst.msk [vmem:[%s6945_s2 + $0x520] sm:$0xff] %vm3205_vm0, %v3141_v39  ;;  %v3144_v42 = vmul.f32 %v2675_v40, %v1776_v38  ;;  %v1798_v40 = vld [vmem:[%s6944_s1 + $0x5e8] sm:$0xff] }
 0x1e9   :  { %v2670_v43 = vpop.permute.xlu0 %2669 }
 0x1ea   :  { %3373 = vst.msk [vmem:[%s6945_s2 + $0x538] sm:$0xff] %vm3205_vm0, %v3144_v42  ;;  %v3143_v45 = vmul.f32 %v2670_v43, %v1775_v41  ;;  %v1797_v43 = vld [vmem:[%s6944_s1 + $0x5e0] sm:$0xff] }
 0x1eb   :  { %v2685_v46 = vpop.permute.xlu1 %2684 }
 0x1ec   :  { %3372 = vst.msk [vmem:[%s6945_s2 + $0x530] sm:$0xff] %vm3205_vm0, %v3143_v45  ;;  %v3146_v48 = vmul.f32 %v2685_v46, %v1778_v44  ;;  %v1800_v46 = vld [vmem:[%s6944_s1 + $0x5f8] sm:$0xff] }
 0x1ed   :  { %v2680_v49 = vpop.permute.xlu0 %2679 }
 0x1ee   :  { %3375 = vst.msk [vmem:[%s6945_s2 + $0x548] sm:$0xff] %vm3205_vm0, %v3146_v48  ;;  %v3145_v51 = vmul.f32 %v2680_v49, %v1777_v47  ;;  %v1799_v49 = vld [vmem:[%s6944_s1 + $0x5f0] sm:$0xff] }
 0x1ef   :  { %v2695_v52 = vpop.permute.xlu1 %2694 }
 0x1f0   :  { %3374 = vst.msk [vmem:[%s6945_s2 + $0x540] sm:$0xff] %vm3205_vm0, %v3145_v51  ;;  %v3148_v54 = vmul.f32 %v2695_v52, %v1780_v50  ;;  %v1802_v52 = vld [vmem:[%s6944_s1 + $0x608] sm:$0xff] }
 0x1f1   :  { %v2690_v55 = vpop.permute.xlu0 %2689 }
 0x1f2   :  { %3377 = vst.msk [vmem:[%s6945_s2 + $0x558] sm:$0xff] %vm3205_vm0, %v3148_v54  ;;  %v3147_v57 = vmul.f32 %v2690_v55, %v1779_v53  ;;  %v1801_v55 = vld [vmem:[%s6944_s1 + $0x600] sm:$0xff] }
 0x1f3   :  { %v2705_v58 = vpop.permute.xlu1 %2704 }
 0x1f4   :  { %3376 = vst.msk [vmem:[%s6945_s2 + $0x550] sm:$0xff] %vm3205_vm0, %v3147_v57  ;;  %v3150_v60 = vmul.f32 %v2705_v58, %v1782_v56  ;;  %v1804_v58 = vld [vmem:[%s6944_s1 + $0x618] sm:$0xff] }
 0x1f5   :  { %v2700_v61 = vpop.permute.xlu0 %2699 }
 0x1f6   :  { %3379 = vst.msk [vmem:[%s6945_s2 + $0x568] sm:$0xff] %vm3205_vm0, %v3150_v60  ;;  %v3149_v63 = vmul.f32 %v2700_v61, %v1781_v59  ;;  %v1803_v61 = vld [vmem:[%s6944_s1 + $0x610] sm:$0xff] }
 0x1f7   :  { %v2715_v0 = vpop.permute.xlu1 %2714 }
 0x1f8   :  { %3378 = vst.msk [vmem:[%s6945_s2 + $0x560] sm:$0xff] %vm3205_vm0, %v3149_v63  ;;  %v3152_v2 = vmul.f32 %v2715_v0, %v1784_v62  ;;  %v1806_v0 = vld [vmem:[%s6944_s1 + $0x628] sm:$0xff] }
 0x1f9   :  { %v2710_v3 = vpop.permute.xlu0 %2709 }
 0x1fa   :  { %3381 = vst.msk [vmem:[%s6945_s2 + $0x578] sm:$0xff] %vm3205_vm0, %v3152_v2  ;;  %v3151_v5 = vmul.f32 %v2710_v3, %v1783_v1  ;;  %v1805_v3 = vld [vmem:[%s6944_s1 + $0x620] sm:$0xff] }
 0x1fb   :  { %v2725_v6 = vpop.permute.xlu1 %2724 }
 0x1fc   :  { %3380 = vst.msk [vmem:[%s6945_s2 + $0x570] sm:$0xff] %vm3205_vm0, %v3151_v5  ;;  %v3154_v8 = vmul.f32 %v2725_v6, %v1786_v4  ;;  %v1808_v6 = vld [vmem:[%s6944_s1 + $0x638] sm:$0xff] }
 0x1fd   :  { %v2720_v9 = vpop.permute.xlu0 %2719 }
 0x1fe   :  { %3383 = vst.msk [vmem:[%s6945_s2 + $0x588] sm:$0xff] %vm3205_vm0, %v3154_v8  ;;  %v3153_v11 = vmul.f32 %v2720_v9, %v1785_v7  ;;  %v1807_v9 = vld [vmem:[%s6944_s1 + $0x630] sm:$0xff] }
 0x1ff   :  { %v2735_v12 = vpop.permute.xlu1 %2734 }
 0x200   :  { %3382 = vst.msk [vmem:[%s6945_s2 + $0x580] sm:$0xff] %vm3205_vm0, %v3153_v11  ;;  %v3156_v14 = vmul.f32 %v2735_v12, %v1788_v10  ;;  %v1810_v12 = vld [vmem:[%s6944_s1 + $0x648] sm:$0xff] }
 0x201   :  { %v2730_v15 = vpop.permute.xlu0 %2729 }
 0x202   :  { %3385 = vst.msk [vmem:[%s6945_s2 + $0x598] sm:$0xff] %vm3205_vm0, %v3156_v14  ;;  %v3155_v17 = vmul.f32 %v2730_v15, %v1787_v13  ;;  %v1809_v15 = vld [vmem:[%s6944_s1 + $0x640] sm:$0xff] }
 0x203   :  { %v2745_v18 = vpop.permute.xlu1 %2744 }
 0x204   :  { %3384 = vst.msk [vmem:[%s6945_s2 + $0x590] sm:$0xff] %vm3205_vm0, %v3155_v17  ;;  %v3158_v20 = vmul.f32 %v2745_v18, %v1790_v16  ;;  %v1812_v18 = vld [vmem:[%s6944_s1 + $0x658] sm:$0xff] }
 0x205   :  { %v2740_v21 = vpop.permute.xlu0 %2739 }
 0x206   :  { %3387 = vst.msk [vmem:[%s6945_s2 + $0x5a8] sm:$0xff] %vm3205_vm0, %v3158_v20  ;;  %v3157_v23 = vmul.f32 %v2740_v21, %v1789_v19  ;;  %v1811_v21 = vld [vmem:[%s6944_s1 + $0x650] sm:$0xff] }
 0x207   :  { %v2755_v24 = vpop.permute.xlu1 %2754 }
 0x208   :  { %3386 = vst.msk [vmem:[%s6945_s2 + $0x5a0] sm:$0xff] %vm3205_vm0, %v3157_v23  ;;  %v3160_v26 = vmul.f32 %v2755_v24, %v1792_v22  ;;  %v1814_v24 = vld [vmem:[%s6944_s1 + $0x668] sm:$0xff] }
 0x209   :  { %v2750_v27 = vpop.permute.xlu0 %2749 }
 0x20a   :  { %3389 = vst.msk [vmem:[%s6945_s2 + $0x5b8] sm:$0xff] %vm3205_vm0, %v3160_v26  ;;  %v3159_v29 = vmul.f32 %v2750_v27, %v1791_v25  ;;  %v1813_v27 = vld [vmem:[%s6944_s1 + $0x660] sm:$0xff] }
 0x20b   :  { %v2765_v30 = vpop.permute.xlu1 %2764 }
 0x20c   :  { %3388 = vst.msk [vmem:[%s6945_s2 + $0x5b0] sm:$0xff] %vm3205_vm0, %v3159_v29  ;;  %v3162_v32 = vmul.f32 %v2765_v30, %v1794_v28  ;;  %v1816_v30 = vld [vmem:[%s6944_s1 + $0x678] sm:$0xff] }
 0x20d   :  { %v2760_v33 = vpop.permute.xlu0 %2759 }
 0x20e   :  { %3391 = vst.msk [vmem:[%s6945_s2 + $0x5c8] sm:$0xff] %vm3205_vm0, %v3162_v32  ;;  %v3161_v35 = vmul.f32 %v2760_v33, %v1793_v31  ;;  %v1815_v33 = vld [vmem:[%s6944_s1 + $0x670] sm:$0xff] }
 0x20f   :  { %v2775_v36 = vpop.permute.xlu1 %2774 }
 0x210   :  { %3390 = vst.msk [vmem:[%s6945_s2 + $0x5c0] sm:$0xff] %vm3205_vm0, %v3161_v35  ;;  %v3164_v38 = vmul.f32 %v2775_v36, %v1796_v34  ;;  %v1818_v36 = vld [vmem:[%s6944_s1 + $0x688] sm:$0xff] }
 0x211   :  { %v2770_v39 = vpop.permute.xlu0 %2769 }
 0x212   :  { %3393 = vst.msk [vmem:[%s6945_s2 + $0x5d8] sm:$0xff] %vm3205_vm0, %v3164_v38  ;;  %v3163_v41 = vmul.f32 %v2770_v39, %v1795_v37  ;;  %v1817_v39 = vld [vmem:[%s6944_s1 + $0x680] sm:$0xff] }
 0x213   :  { %v2785_v42 = vpop.permute.xlu1 %2784 }
 0x214   :  { %3392 = vst.msk [vmem:[%s6945_s2 + $0x5d0] sm:$0xff] %vm3205_vm0, %v3163_v41  ;;  %v3166_v44 = vmul.f32 %v2785_v42, %v1798_v40  ;;  %v1820_v42 = vld [vmem:[%s6944_s1 + $0x698] sm:$0xff] }
 0x215   :  { %v2780_v45 = vpop.permute.xlu0 %2779 }
 0x216   :  { %3395 = vst.msk [vmem:[%s6945_s2 + $0x5e8] sm:$0xff] %vm3205_vm0, %v3166_v44  ;;  %v3165_v47 = vmul.f32 %v2780_v45, %v1797_v43  ;;  %v1819_v45 = vld [vmem:[%s6944_s1 + $0x690] sm:$0xff] }
 0x217   :  { %v2795_v48 = vpop.permute.xlu1 %2794 }
 0x218   :  { %3394 = vst.msk [vmem:[%s6945_s2 + $0x5e0] sm:$0xff] %vm3205_vm0, %v3165_v47  ;;  %v3168_v50 = vmul.f32 %v2795_v48, %v1800_v46  ;;  %v1822_v48 = vld [vmem:[%s6944_s1 + $0x6a8] sm:$0xff] }
 0x219   :  { %v2790_v51 = vpop.permute.xlu0 %2789 }
 0x21a   :  { %3397 = vst.msk [vmem:[%s6945_s2 + $0x5f8] sm:$0xff] %vm3205_vm0, %v3168_v50  ;;  %v3167_v53 = vmul.f32 %v2790_v51, %v1799_v49  ;;  %v1821_v51 = vld [vmem:[%s6944_s1 + $0x6a0] sm:$0xff] }
 0x21b   :  { %v2805_v54 = vpop.permute.xlu1 %2804 }
 0x21c   :  { %3396 = vst.msk [vmem:[%s6945_s2 + $0x5f0] sm:$0xff] %vm3205_vm0, %v3167_v53  ;;  %v3170_v56 = vmul.f32 %v2805_v54, %v1802_v52  ;;  %v1824_v54 = vld [vmem:[%s6944_s1 + $0x6b8] sm:$0xff] }
 0x21d   :  { %v2800_v57 = vpop.permute.xlu0 %2799 }
 0x21e   :  { %3399 = vst.msk [vmem:[%s6945_s2 + $0x608] sm:$0xff] %vm3205_vm0, %v3170_v56  ;;  %v3169_v59 = vmul.f32 %v2800_v57, %v1801_v55  ;;  %v1823_v57 = vld [vmem:[%s6944_s1 + $0x6b0] sm:$0xff] }
 0x21f   :  { %v2815_v60 = vpop.permute.xlu1 %2814 }
 0x220   :  { %3398 = vst.msk [vmem:[%s6945_s2 + $0x600] sm:$0xff] %vm3205_vm0, %v3169_v59  ;;  %v3172_v62 = vmul.f32 %v2815_v60, %v1804_v58  ;;  %v1826_v60 = vld [vmem:[%s6944_s1 + $0x6c8] sm:$0xff] }
 0x221   :  { %v2810_v63 = vpop.permute.xlu0 %2809 }
 0x222   :  { %3401 = vst.msk [vmem:[%s6945_s2 + $0x618] sm:$0xff] %vm3205_vm0, %v3172_v62  ;;  %v3171_v1 = vmul.f32 %v2810_v63, %v1803_v61  ;;  %v1825_v63 = vld [vmem:[%s6944_s1 + $0x6c0] sm:$0xff] }
 0x223   :  { %v2825_v2 = vpop.permute.xlu1 %2824 }
 0x224   :  { %3400 = vst.msk [vmem:[%s6945_s2 + $0x610] sm:$0xff] %vm3205_vm0, %v3171_v1  ;;  %v3174_v4 = vmul.f32 %v2825_v2, %v1806_v0  ;;  %v1828_v2 = vld [vmem:[%s6944_s1 + $0x6d8] sm:$0xff] }
 0x225   :  { %v2820_v5 = vpop.permute.xlu0 %2819 }
 0x226   :  { %3403 = vst.msk [vmem:[%s6945_s2 + $0x628] sm:$0xff] %vm3205_vm0, %v3174_v4  ;;  %v3173_v7 = vmul.f32 %v2820_v5, %v1805_v3  ;;  %v1827_v5 = vld [vmem:[%s6944_s1 + $0x6d0] sm:$0xff] }
 0x227   :  { %v2835_v8 = vpop.permute.xlu1 %2834 }
 0x228   :  { %3402 = vst.msk [vmem:[%s6945_s2 + $0x620] sm:$0xff] %vm3205_vm0, %v3173_v7  ;;  %v3176_v10 = vmul.f32 %v2835_v8, %v1808_v6  ;;  %v1830_v8 = vld [vmem:[%s6944_s1 + $0x6e8] sm:$0xff] }
 0x229   :  { %v2830_v11 = vpop.permute.xlu0 %2829 }
 0x22a   :  { %3405 = vst.msk [vmem:[%s6945_s2 + $0x638] sm:$0xff] %vm3205_vm0, %v3176_v10  ;;  %v3175_v13 = vmul.f32 %v2830_v11, %v1807_v9  ;;  %v1829_v11 = vld [vmem:[%s6944_s1 + $0x6e0] sm:$0xff] }
 0x22b   :  { %v2845_v14 = vpop.permute.xlu1 %2844 }
 0x22c   :  { %3404 = vst.msk [vmem:[%s6945_s2 + $0x630] sm:$0xff] %vm3205_vm0, %v3175_v13  ;;  %v3178_v16 = vmul.f32 %v2845_v14, %v1810_v12  ;;  %v1832_v14 = vld [vmem:[%s6944_s1 + $0x6f8] sm:$0xff] }
 0x22d   :  { %v2840_v17 = vpop.permute.xlu0 %2839 }
 0x22e   :  { %3407 = vst.msk [vmem:[%s6945_s2 + $0x648] sm:$0xff] %vm3205_vm0, %v3178_v16  ;;  %v3177_v19 = vmul.f32 %v2840_v17, %v1809_v15  ;;  %v1831_v17 = vld [vmem:[%s6944_s1 + $0x6f0] sm:$0xff] }
 0x22f   :  { %v2855_v20 = vpop.permute.xlu1 %2854 }
 0x230   :  { %3406 = vst.msk [vmem:[%s6945_s2 + $0x640] sm:$0xff] %vm3205_vm0, %v3177_v19  ;;  %v3180_v22 = vmul.f32 %v2855_v20, %v1812_v18  ;;  %v1834_v20 = vld [vmem:[%s6944_s1 + $0x708] sm:$0xff] }
 0x231   :  { %v2850_v23 = vpop.permute.xlu0 %2849 }
 0x232   :  { %3409 = vst.msk [vmem:[%s6945_s2 + $0x658] sm:$0xff] %vm3205_vm0, %v3180_v22  ;;  %v3179_v25 = vmul.f32 %v2850_v23, %v1811_v21  ;;  %v1833_v23 = vld [vmem:[%s6944_s1 + $0x700] sm:$0xff] }
 0x233   :  { %v2865_v26 = vpop.permute.xlu1 %2864 }
 0x234   :  { %3408 = vst.msk [vmem:[%s6945_s2 + $0x650] sm:$0xff] %vm3205_vm0, %v3179_v25  ;;  %v3182_v28 = vmul.f32 %v2865_v26, %v1814_v24  ;;  %v1836_v26 = vld [vmem:[%s6944_s1 + $0x718] sm:$0xff] }
 0x235   :  { %v2860_v29 = vpop.permute.xlu0 %2859 }
 0x236   :  { %3411 = vst.msk [vmem:[%s6945_s2 + $0x668] sm:$0xff] %vm3205_vm0, %v3182_v28  ;;  %v3181_v31 = vmul.f32 %v2860_v29, %v1813_v27  ;;  %v1835_v29 = vld [vmem:[%s6944_s1 + $0x710] sm:$0xff] }
 0x237   :  { %v2875_v32 = vpop.permute.xlu1 %2874 }
 0x238   :  { %3410 = vst.msk [vmem:[%s6945_s2 + $0x660] sm:$0xff] %vm3205_vm0, %v3181_v31  ;;  %v3184_v34 = vmul.f32 %v2875_v32, %v1816_v30 }
 0x239   :  { %v2870_v35 = vpop.permute.xlu0 %2869 }
 0x23a   :  { %3413 = vst.msk [vmem:[%s6945_s2 + $0x678] sm:$0xff] %vm3205_vm0, %v3184_v34  ;;  %v3183_v37 = vmul.f32 %v2870_v35, %v1815_v33 }
 0x23b   :  { %v2885_v38 = vpop.permute.xlu1 %2884 }
 0x23c   :  { %3412 = vst.msk [vmem:[%s6945_s2 + $0x670] sm:$0xff] %vm3205_vm0, %v3183_v37  ;;  %v3186_v40 = vmul.f32 %v2885_v38, %v1818_v36 }
 0x23d   :  { %v2880_v41 = vpop.permute.xlu0 %2879 }
 0x23e   :  { %3415 = vst.msk [vmem:[%s6945_s2 + $0x688] sm:$0xff] %vm3205_vm0, %v3186_v40  ;;  %v3185_v43 = vmul.f32 %v2880_v41, %v1817_v39 }
 0x23f   :  { %v2895_v44 = vpop.permute.xlu1 %2894 }
 0x240   :  { %3414 = vst.msk [vmem:[%s6945_s2 + $0x680] sm:$0xff] %vm3205_vm0, %v3185_v43  ;;  %v3188_v46 = vmul.f32 %v2895_v44, %v1820_v42 }
 0x241   :  { %v2890_v47 = vpop.permute.xlu0 %2889 }
 0x242   :  { %3417 = vst.msk [vmem:[%s6945_s2 + $0x698] sm:$0xff] %vm3205_vm0, %v3188_v46  ;;  %v3187_v49 = vmul.f32 %v2890_v47, %v1819_v45 }
 0x243   :  { %v2905_v50 = vpop.permute.xlu1 %2904 }
 0x244   :  { %3416 = vst.msk [vmem:[%s6945_s2 + $0x690] sm:$0xff] %vm3205_vm0, %v3187_v49  ;;  %v3190_v52 = vmul.f32 %v2905_v50, %v1822_v48 }
 0x245   :  { %v2900_v53 = vpop.permute.xlu0 %2899 }
 0x246   :  { %3419 = vst.msk [vmem:[%s6945_s2 + $0x6a8] sm:$0xff] %vm3205_vm0, %v3190_v52  ;;  %v3189_v55 = vmul.f32 %v2900_v53, %v1821_v51 }
 0x247   :  { %v2915_v56 = vpop.permute.xlu1 %2914 }
 0x248   :  { %3418 = vst.msk [vmem:[%s6945_s2 + $0x6a0] sm:$0xff] %vm3205_vm0, %v3189_v55  ;;  %v3192_v58 = vmul.f32 %v2915_v56, %v1824_v54 }
 0x249   :  { %v2910_v59 = vpop.permute.xlu0 %2909 }
 0x24a   :  { %3421 = vst.msk [vmem:[%s6945_s2 + $0x6b8] sm:$0xff] %vm3205_vm0, %v3192_v58  ;;  %v3191_v61 = vmul.f32 %v2910_v59, %v1823_v57 }
 0x24b   :  { %v2925_v62 = vpop.permute.xlu1 %2924 }
 0x24c   :  { %3420 = vst.msk [vmem:[%s6945_s2 + $0x6b0] sm:$0xff] %vm3205_vm0, %v3191_v61  ;;  %v3194_v0 = vmul.f32 %v2925_v62, %v1826_v60 }
 0x24d   :  { %v2920_v1 = vpop.permute.xlu0 %2919 }
 0x24e   :  { %3423 = vst.msk [vmem:[%s6945_s2 + $0x6c8] sm:$0xff] %vm3205_vm0, %v3194_v0  ;;  %v3193_v3 = vmul.f32 %v2920_v1, %v1825_v63 }
 0x24f   :  { %v2935_v4 = vpop.permute.xlu1 %2934 }
 0x250   :  { %3422 = vst.msk [vmem:[%s6945_s2 + $0x6c0] sm:$0xff] %vm3205_vm0, %v3193_v3  ;;  %v3196_v6 = vmul.f32 %v2935_v4, %v1828_v2 }
 0x251   :  { %v2930_v7 = vpop.permute.xlu0 %2929 }
 0x252   :  { %3425 = vst.msk [vmem:[%s6945_s2 + $0x6d8] sm:$0xff] %vm3205_vm0, %v3196_v6  ;;  %v3195_v9 = vmul.f32 %v2930_v7, %v1827_v5 }
 0x253   :  { %v2945_v10 = vpop.permute.xlu1 %2944 }
 0x254   :  { %3424 = vst.msk [vmem:[%s6945_s2 + $0x6d0] sm:$0xff] %vm3205_vm0, %v3195_v9  ;;  %v3198_v12 = vmul.f32 %v2945_v10, %v1830_v8 }
 0x255   :  { %v2940_v13 = vpop.permute.xlu0 %2939 }
 0x256   :  { %3427 = vst.msk [vmem:[%s6945_s2 + $0x6e8] sm:$0xff] %vm3205_vm0, %v3198_v12  ;;  %v3197_v15 = vmul.f32 %v2940_v13, %v1829_v11 }
 0x257   :  { %v2955_v16 = vpop.permute.xlu1 %2954 }
 0x258   :  { %3426 = vst.msk [vmem:[%s6945_s2 + $0x6e0] sm:$0xff] %vm3205_vm0, %v3197_v15  ;;  %v3200_v18 = vmul.f32 %v2955_v16, %v1832_v14 }
 0x259   :  { %v2950_v19 = vpop.permute.xlu0 %2949 }
 0x25a   :  { %3429 = vst.msk [vmem:[%s6945_s2 + $0x6f8] sm:$0xff] %vm3205_vm0, %v3200_v18  ;;  %v3199_v21 = vmul.f32 %v2950_v19, %v1831_v17 }
 0x25b   :  { %v2965_v22 = vpop.permute.xlu1 %2964 }
 0x25c   :  { %3428 = vst.msk [vmem:[%s6945_s2 + $0x6f0] sm:$0xff] %vm3205_vm0, %v3199_v21  ;;  %v3202_v24 = vmul.f32 %v2965_v22, %v1834_v20 }
 0x25d   :  { %v2960_v25 = vpop.permute.xlu0 %2959 }
 0x25e   :  { %3431 = vst.msk [vmem:[%s6945_s2 + $0x708] sm:$0xff] %vm3205_vm0, %v3202_v24  ;;  %v3201_v27 = vmul.f32 %v2960_v25, %v1833_v23 }
 0x25f   :  { %v2975_v28 = vpop.permute.xlu1 %2974 }
 0x260   :  { %3430 = vst.msk [vmem:[%s6945_s2 + $0x700] sm:$0xff] %vm3205_vm0, %v3201_v27  ;;  %v3204_v30 = vmul.f32 %v2975_v28, %v1836_v26 }
 0x261   :  { %v2970_v31 = vpop.permute.xlu0 %2969 }
 0x262   :  { %3433 = vst.msk [vmem:[%s6945_s2 + $0x718] sm:$0xff] %vm3205_vm0, %v3204_v30  ;;  %v3203_v32 = vmul.f32 %v2970_v31, %v1835_v29 }
 0x264   :  { %3432 = vst.msk [vmem:[%s6945_s2 + $0x710] sm:$0xff] %vm3205_vm0, %v3203_v32 }

</bundles_post_ra>
